<compile_context>
chip_gen: v6e
topology: v6e:2x2x1
jax: 0.10.0
libtpu: 0.0.40
codegen_flags: <defaults>
</compile_context>

<pallas_src>
import jax
import jax.numpy as jnp
from jax.experimental import pallas as pl
from jax.experimental.pallas import tpu as pltpu


# ---------------------------------------------------------------------------
# Host-side weight folding: one matrix per conv, row taps stacked along K.
# ---------------------------------------------------------------------------
def _fold_conv_weight(w, W, H, dilation, dtype):
    """Fold a 'same'-padded dilated KxK conv (HWIO weight) acting on packed
    (rows, W*Cin) activations into (row_shifts, M):

      row_shifts : valid row shifts dh = kh*dilation - pad with |dh| < H
      M          : (len(row_shifts)*W*Cin, W*Cout) such that
                   out = concat_t(act shifted by row_shifts[t], lanes) @ M.
    Column taps with |kw*dilation - pad| >= W (entirely in the zero padding)
    are dropped; the kw axis is folded block-Toeplitz via kron."""
    K, _, cin, cout = w.shape
    pad = dilation * (K // 2)
    shifts, mats = [], []
    for kh in range(K):
        dh = kh * dilation - pad
        if abs(dh) >= H:
            continue                      # row tap sees only zero padding
        m = jnp.zeros((W * cin, W * cout), jnp.float32)
        for kw in range(K):
            dw = kw * dilation - pad
            if abs(dw) >= W:
                continue                  # column tap sees only zero padding
            # S[j+dw, j] = 1  <=>  eye(W, k=-dw); kron places w[kh, kw] on that
            # block diagonal of the (W*Cin, W*Cout) matrix.
            m = m + jnp.kron(jnp.eye(W, k=-dw, dtype=jnp.float32),
                             w[kh, kw].astype(jnp.float32))
        shifts.append(dh)
        mats.append(m)
    # TODO(synk): at production W only ~K/W of each matrix is nonzero -- switch
    # to banded (nonzero block-diagonal) tiles before scaling this layout up.
    return shifts, jnp.concatenate(mats, axis=0).astype(dtype)


# ---------------------------------------------------------------------------
# Fused whole-layer kernel (one batch tile of Bt images per grid step).
# ---------------------------------------------------------------------------
def _make_layer_kernel(n_blocks, c1_shifts, c2_shifts, out_shifts,
                       *, H, R, Bt, P, mxu_dtype):
    """refs = (x, ss, bo, *w_mats, out, pad_scratch)."""

    def kernel(*refs):
        x_ref, ss_ref, bo_ref = refs[:3]
        w_refs = refs[3:-2]
        o_ref, pad_ref = refs[-2], refs[-1]

        # Zero-padded staging slab: rows [P, P+R) hold the current conv input,
        # the P rows above/below stay zero so shifted reads fall into zeros.
        # (Unconditional zeroing: with "parallel" grid sharding each core owns
        #  its own scratch, so a program_id==0 guard would be unsafe.)
        pad_ref[...] = jnp.zeros_like(pad_ref)

        # Per-image row index of every row of the (R, W*C) batch-tile slab;
        # only needed to mask cross-image rows when Bt > 1.
        row = (jax.lax.broadcasted_iota(jnp.int32, (R, 1), 0) % H
               if Bt > 1 else None)

        def conv(src_f32, w_ref, shifts):
            """One 'same' dilated conv == ONE MXU matmul (row taps folded into K).
            Accumulation happens inside the matmul (f32), no VMEM accumulator."""
            if len(shifts) == 1 and shifts[0] == 0:
                lhs = src_f32                              # 1x1-equivalent tap
            else:
                pad_ref[P:P + R, :] = src_f32              # sublane-aligned store
                pieces = []
                for dh in shifts:                          # static unroll
                    if dh == 0:
                        piece = src_f32
                    else:
                        piece = pad_ref[P + dh:P + dh + R, :]   # static-offset load
                        if Bt > 1:                         # mask cross-image rows
                            valid = (row < H - dh) if dh > 0 else (row >= -dh)
                            piece = piece * valid.astype(piece.dtype)
                    pieces.append(piece)
                lhs = jnp.concatenate(pieces, axis=-1)     # (R, len(shifts)*W*C)
            # single cast per conv; bf16 operands, f32 accumulation on the MXU
            # TODO(synk): on v7x one could drive the MRB explicitly
            # (matmul_push_rhs/acc_lhs/pop); unnecessary here since each conv
            # is already a single matmul.
            return jnp.dot(lhs.astype(mxu_dtype), w_ref[...],
                           preferred_element_type=jnp.float32)

        a = x_ref[...].astype(jnp.float32)                 # (R, W*C)
        for b in range(n_blocks):                          # static unroll
            scale = ss_ref[2 * b:2 * b + 1, :]             # (1, W*C)
            shift = ss_ref[2 * b + 1:2 * b + 2, :]
            t = jnp.maximum(a * scale + shift, 0.0)        # bn1 + relu1
            # conv1 (dropout p=0 -> identity) + relu2
            h = jnp.maximum(conv(t, w_refs[2 * b], c1_shifts[b]), 0.0)
            # conv2 + residual
            a = conv(h, w_refs[2 * b + 1], c2_shifts[b]) + a
        # conv_output: 7x7, dilation 1, padding 3, bias
        out = conv(a, w_refs[2 * n_blocks], out_shifts) + bo_ref[...]
        o_ref[...] = out.astype(o_ref.dtype)

    return kernel


# ---------------------------------------------------------------------------
# ResLayer forward (NCHW in / NCHW out, like the PyTorch module)
# ---------------------------------------------------------------------------
def res_layer_forward(x, blocks, w_out, b_out, *,
                      mxu_dtype=jnp.bfloat16, batch_tile=None):
    """x: (N, C, H, W).  mxu_dtype: dtype fed to the MXU (f32 accumulation);
    bf16 is the native MXU rate on v5e/v6e/v7x and halves weight DMA/VMEM.
    Pass jnp.float32 for a bit-accurate (slower) path."""
    N, C, H, W = x.shape
    cout = w_out.shape[-1]
    wc, wco = W * C, W * cout
    eps = 1e-5

    # --- parameter folding (host-side glue, tiny) ----------------------------
    ss_rows, w_mats, c1_shifts, c2_shifts = [], [], [], []
    for p in blocks:
        scale = p["gamma"] / jnp.sqrt(p["var"] + eps)
        shift = p["beta"] - p["mean"] * scale
        ss_rows += [jnp.tile(scale, W), jnp.tile(shift, W)]
        s1, m1 = _fold_conv_weight(p["w1"], W, H, int(p["d1"]), mxu_dtype)
        s2, m2 = _fold_conv_weight(p["w2"], W, H, int(p["d2"]), mxu_dtype)
        c1_shifts.append(s1); c2_shifts.append(s2)
        w_mats += [m1, m2]
    out_shifts, m_out = _fold_conv_weight(w_out, W, H, 1, mxu_dtype)
    w_mats.append(m_out)
    ss = jnp.stack(ss_rows).astype(jnp.float32)            # (2*n_blocks, W*C)
    bo = jnp.tile(b_out, W).reshape(1, wco).astype(jnp.float32)

    # --- batch tile: grow the matmul M dimension, keep >= 2 grid steps -------
    if batch_tile is None:
        batch_tile = 1
        for bt in range(1, N + 1):
            if N % bt == 0 and bt * H <= 512 and (N < 2 or N // bt >= 2):
                batch_tile = bt
    Bt = batch_tile
    assert N % Bt == 0
    R = Bt * H                                              # matmul M per step
    grid = (N // Bt,)

    # zero-padding rows above/below the staging slab (sublane-aligned)
    all_shifts = [d for s in (c1_shifts + c2_shifts + [out_shifts]) for d in s]
    max_dh = max([abs(d) for d in all_shifts] + [0])
    P = -(-max_dh // 8) * 8

    # NCHW -> lane-dense packed rows (N*H, W*C)
    xp = jnp.transpose(x, (0, 2, 3, 1)).reshape(N * H, wc)

    kernel = _make_layer_kernel(len(blocks), c1_shifts, c2_shifts, out_shifts,
                                H=H, R=R, Bt=Bt, P=P, mxu_dtype=mxu_dtype)

    # --- VMEM budget (generation-aware) + advisory cost estimate -------------
    nbytes = lambda a: a.size * a.dtype.itemsize
    param_bytes = nbytes(ss) + nbytes(bo) + sum(nbytes(m) for m in w_mats)
    io_bytes_step = 2 * R * (wc + wco) * jnp.dtype(x.dtype).itemsize  # dbl-buffered
    max_taps = max(len(s) for s in (c1_shifts + c2_shifts + [out_shifts]))
    live_bytes = 8 * R * max(max_taps * wc, wco) * 4        # lhs / intermediates
    scratch_bytes = (2 * P + R) * wc * 4
    needed = 2 * param_bytes + io_bytes_step + scratch_bytes + live_bytes + (2 << 20)
    try:
        phys = int(pltpu.get_tpu_info().vmem_capacity_bytes)
    except Exception:
        phys = 64 * 1024 * 1024                             # conservative (v7x)
    cap = min(112 * 1024 * 1024, phys - 12 * 1024 * 1024)   # leave headroom
    vmem_limit = int(min(max(needed, 32 * 1024 * 1024), cap))

    flops = 0
    for shifts in c1_shifts + c2_shifts:
        flops += 2 * N * H * len(shifts) * wc * wc
    flops += 2 * N * H * len(out_shifts) * wc * wco
    bytes_accessed = (param_bytes + nbytes(xp)
                      + N * H * wco * jnp.dtype(x.dtype).itemsize)

    out_shape = jax.ShapeDtypeStruct((N * H, wco), x.dtype)

    def _build(single_buffer_params):
        def pspec(shape):
            if single_buffer_params:
                # grid-invariant parameter slabs: no double buffering
                return pl.BlockSpec(shape, lambda n: (0, 0),
                                    pipeline_mode=pl.Buffered(1))
            return pl.BlockSpec(shape, lambda n: (0, 0))

        in_specs = ([pl.BlockSpec((R, wc), lambda n: (n, 0)),
                     pspec(ss.shape), pspec(bo.shape)]
                    + [pspec(m.shape) for m in w_mats])
        return pl.pallas_call(
            kernel,
            out_shape=out_shape,
            grid=grid,
            in_specs=in_specs,
            out_specs=pl.BlockSpec((R, wco), lambda n: (n, 0)),
            scratch_shapes=[pltpu.VMEM((2 * P + R, wc), jnp.float32)],
            compiler_params=pltpu.CompilerParams(
                dimension_semantics=("parallel",),
                vmem_limit_bytes=vmem_limit),
            cost_estimate=pl.CostEstimate(flops=int(flops), transcendentals=0,
                                          bytes_accessed=int(bytes_accessed)),
        )

    try:
        out_packed = _build(True)(xp, ss, bo, *w_mats)
    except Exception:
        # pl.Buffered(1) pipeline_mode not available on this jax version:
        # fall back to default double-buffered parameter slabs.
        out_packed = _build(False)(xp, ss, bo, *w_mats)

    return out_packed.reshape(N, H, W, cout).transpose(0, 3, 1, 2)


# ---------------------------------------------------------------------------
# Pure-JAX reference (lax.conv_general_dilated, NCHW) for correctness checking
# ---------------------------------------------------------------------------
def _conv_ref(x, w, dilation, padding, bias=None):
    out = jax.lax.conv_general_dilated(
        x, w, window_strides=(1, 1),
        padding=((padding, padding), (padding, padding)),
        rhs_dilation=(dilation, dilation),
        dimension_numbers=("NCHW", "HWIO", "NCHW"),
        precision=jax.lax.Precision.HIGHEST)
    if bias is not None:
        out = out + bias.reshape(1, -1, 1, 1)
    return out


def res_layer_ref(x, blocks, w_out, b_out):
    eps = 1e-5
    h = x
    for p in blocks:
        scale = (p["gamma"] / jnp.sqrt(p["var"] + eps)).reshape(1, -1, 1, 1)
        shift = p["beta"].reshape(1, -1, 1, 1) - p["mean"].reshape(1, -1, 1, 1) * scale
        t = jnp.maximum(h * scale + shift, 0.0)
        t = jnp.maximum(_conv_ref(t, p["w1"], p["d1"], p["d1"]), 0.0)
        h = _conv_ref(t, p["w2"], p["d2"], p["d2"]) + h
    return _conv_ref(h, w_out, 1, 3, bias=b_out)


# ---------------------------------------------------------------------------
if __name__ == "__main__":
    N, H, W = 4, 16, 16
    dim_in, dim_out = 8, 8          # W * dim_in = 128 -> lane-dense slabs
    n_blocks, ksize = 2, 3

    key = jax.random.PRNGKey(0)
    kiter = iter(jax.random.split(key, 64))
    nk = lambda: next(kiter)

    # PyTorch-layout input: NCHW
    x = jax.random.normal(nk(), (N, dim_in, H, W), jnp.float32)

    blocks = []
    for i in range(n_blocks):
        fan = dim_in * ksize * ksize
        blocks.append(dict(
            gamma=jax.random.uniform(nk(), (dim_in,), jnp.float32, 0.5, 1.5),
            beta=jax.random.normal(nk(), (dim_in,), jnp.float32) * 0.1,
            mean=jax.random.normal(nk(), (dim_in,), jnp.float32) * 0.1,
            var=jax.random.uniform(nk(), (dim_in,), jnp.float32, 0.5, 1.5),
            w1=jax.random.normal(nk(), (ksize, ksize, dim_in, dim_in), jnp.float32)
               * (2.0 / fan) ** 0.5,
            w2=jax.random.normal(nk(), (ksize, ksize, dim_in, dim_in), jnp.float32)
               * (2.0 / fan) ** 0.5,
            d1=12 * (4 - i % 4),      # dilation1 as in ResLayer.__init__
            d2=2 ** (i % 4),          # dilation2 as in ResLayer.__init__
        ))

    fan_out = dim_in * 7 * 7
    w_out = (jax.random.normal(nk(), (7, 7, dim_in, dim_out), jnp.float32)
             * (2.0 / fan_out) ** 0.5)
    b_out = jax.random.normal(nk(), (dim_out,), jnp.float32) * 0.1

    ref = jax.block_until_ready(res_layer_ref(x, blocks, w_out, b_out))

    # f32 MXU path: validates the Toeplitz / row-shift / fold-K logic.
    out_f32 = jax.block_until_ready(
        res_layer_forward(x, blocks, w_out, b_out, mxu_dtype=jnp.float32))
    assert out_f32.shape == (N, dim_out, H, W) and out_f32.dtype == jnp.float32
    if not jnp.allclose(out_f32, ref, atol=2e-2, rtol=2e-2):
        raise AssertionError(
            f"f32 path mismatch: max|diff|={float(jnp.max(jnp.abs(out_f32 - ref)))}")

    # Default (performance) path: bf16 MXU inputs, f32 accumulation.
    out = jax.block_until_ready(res_layer_forward(x, blocks, w_out, b_out))
    assert out.shape == (N, dim_out, H, W) and out.dtype == jnp.float32
    if not jnp.allclose(out, ref, atol=6e-2, rtol=6e-2):
        raise AssertionError(
            f"bf16 path mismatch: max|diff|={float(jnp.max(jnp.abs(out - ref)))}")

    print("KERNEL_OK")
</pallas_src>

<mosaic_0001>
module attributes {stable_mosaic.version = 11 : i64} {
  func.func @kernel(%arg0: i32, %arg1: memref<32x128xf32, #tpu.memory_space<vmem>>, %arg2: memref<4x128xf32, #tpu.memory_space<vmem>>, %arg3: memref<1x128xf32, #tpu.memory_space<vmem>>, %arg4: memref<128x128xf32, #tpu.memory_space<vmem>>, %arg5: memref<384x128xf32, #tpu.memory_space<vmem>>, %arg6: memref<128x128xf32, #tpu.memory_space<vmem>>, %arg7: memref<384x128xf32, #tpu.memory_space<vmem>>, %arg8: memref<896x128xf32, #tpu.memory_space<vmem>>, %arg9: memref<32x128xf32, #tpu.memory_space<vmem>>, %arg10: memref<48x128xf32, #tpu.memory_space<vmem>>) attributes {dimension_semantics = [#tpu.dimension_semantics<parallel>], iteration_bounds = array<i64: 2>, scalar_prefetch = 0 : i64, scratch_operands = 1 : i64, tpu.core_type = #tpu.core_type<tc>, window_params = [{transform_indices = @transform_0, window_bounds = array<i64: 32, 128>}, {pipeline_mode = #tpu.pipeline_mode<synchronous>, transform_indices = @transform_1, window_bounds = array<i64: 4, 128>}, {pipeline_mode = #tpu.pipeline_mode<synchronous>, transform_indices = @transform_2, window_bounds = array<i64: 1, 128>}, {pipeline_mode = #tpu.pipeline_mode<synchronous>, transform_indices = @transform_3, window_bounds = array<i64: 128, 128>}, {pipeline_mode = #tpu.pipeline_mode<synchronous>, transform_indices = @transform_4, window_bounds = array<i64: 384, 128>}, {pipeline_mode = #tpu.pipeline_mode<synchronous>, transform_indices = @transform_5, window_bounds = array<i64: 128, 128>}, {pipeline_mode = #tpu.pipeline_mode<synchronous>, transform_indices = @transform_6, window_bounds = array<i64: 384, 128>}, {pipeline_mode = #tpu.pipeline_mode<synchronous>, transform_indices = @transform_7, window_bounds = array<i64: 896, 128>}, {transform_indices = @transform_8, window_bounds = array<i64: 32, 128>}]} {
    %cst = arith.constant 0.000000e+00 : f32
    %0 = vector.broadcast %cst : f32 to vector<48x128xf32>
    %c0 = arith.constant 0 : index
    %c0_0 = arith.constant 0 : index
    %1 = vector.load %arg10[%c0, %c0_0] : memref<48x128xf32, #tpu.memory_space<vmem>>, vector<48x128xf32>
    tpu.vector_store %arg10[%c0, %c0_0], %0 {strides = array<i32>} : memref<48x128xf32, #tpu.memory_space<vmem>>, vector<48x128xf32>,
    %2 = tpu.iota {dimensions = array<i32: 0>} : vector<32x1xi32>
    %c16_i32 = arith.constant 16 : i32
    %c0_i32 = arith.constant 0 : i32
    %3 = arith.cmpi eq, %c16_i32, %c0_i32 : i32
    %c1_i32 = arith.constant 1 : i32
    %4 = arith.select %3, %c1_i32, %c16_i32 : i32
    %5 = vector.broadcast %4 : i32 to vector<32x1xi32>
    %6 = arith.remsi %2, %5 : vector<32x1xi32>
    %c0_i32_1 = arith.constant 0 : i32
    %7 = vector.broadcast %c0_i32_1 : i32 to vector<32x1xi32>
    %8 = arith.cmpi ne, %6, %7 : vector<32x1xi32>
    %c0_i32_2 = arith.constant 0 : i32
    %9 = vector.broadcast %c0_i32_2 : i32 to vector<32x1xi32>
    %10 = arith.cmpi slt, %6, %9 : vector<32x1xi32>
    %c0_i32_3 = arith.constant 0 : i32
    %11 = arith.cmpi slt, %4, %c0_i32_3 : i32
    %12 = vector.broadcast %11 : i1 to vector<32x1xi1>
    %13 = vector.broadcast %12 : vector<32x1xi1> to vector<32x1xi1>
    %14 = arith.xori %10, %13 : vector<32x1xi1>
    %15 = arith.andi %14, %8 : vector<32x1xi1>
    %16 = vector.broadcast %4 : i32 to vector<32x1xi32>
    %17 = arith.addi %6, %16 : vector<32x1xi32>
    %18 = arith.select %15, %17, %6 : vector<32x1xi1>, vector<32x1xi32>
    %c0_4 = arith.constant 0 : index
    %c0_5 = arith.constant 0 : index
    %19 = vector.load %arg1[%c0_4, %c0_5] : memref<32x128xf32, #tpu.memory_space<vmem>>, vector<32x128xf32>
    %c0_6 = arith.constant 0 : index
    %c0_7 = arith.constant 0 : index
    %20 = vector.load %arg2[%c0_6, %c0_7] : memref<4x128xf32, #tpu.memory_space<vmem>>, vector<1x128xf32>
    %c1 = arith.constant 1 : index
    %c0_8 = arith.constant 0 : index
    %21 = vector.load %arg2[%c1, %c0_8] : memref<4x128xf32, #tpu.memory_space<vmem>>, vector<1x128xf32>
    %22 = vector.broadcast %20 : vector<1x128xf32> to vector<32x128xf32>
    %23 = arith.mulf %19, %22 : vector<32x128xf32>
    %24 = vector.broadcast %21 : vector<1x128xf32> to vector<32x128xf32>
    %25 = arith.addf %23, %24 : vector<32x128xf32>
    %cst_9 = arith.constant 0.000000e+00 : f32
    %26 = vector.broadcast %cst_9 : f32 to vector<32x128xf32>
    %27 = arith.maximumf %25, %26 : vector<32x128xf32>
    %c0_10 = arith.constant 0 : index
    %c0_11 = arith.constant 0 : index
    %28 = vector.load %arg4[%c0_10, %c0_11] : memref<128x128xf32, #tpu.memory_space<vmem>>, vector<128x128xf32>
    %cst_12 = arith.constant dense<0.000000e+00> : vector<32x128xf32>
    %29 = tpu.matmul %27, %28, %cst_12 {dimension_numbers = #tpu.dot_dimension_numbers<[1], [0], [0], [1], [0, 0, 1, 1], [], []>} : vector<32x128xf32>, vector<128x128xf32>, vector<32x128xf32> -> vector<32x128xf32>
    %cst_13 = arith.constant 0.000000e+00 : f32
    %30 = vector.broadcast %cst_13 : f32 to vector<32x128xf32>
    %31 = arith.maximumf %29, %30 : vector<32x128xf32>
    %c8 = arith.constant 8 : index
    %c0_14 = arith.constant 0 : index
    %32 = vector.load %arg10[%c8, %c0_14] : memref<48x128xf32, #tpu.memory_space<vmem>>, vector<32x128xf32>
    tpu.vector_store %arg10[%c8, %c0_14], %31 {strides = array<i32>} : memref<48x128xf32, #tpu.memory_space<vmem>>, vector<32x128xf32>,
    %c7 = arith.constant 7 : index
    %c0_15 = arith.constant 0 : index
    %33 = vector.load %arg10[%c7, %c0_15] : memref<48x128xf32, #tpu.memory_space<vmem>>, vector<32x128xf32>
    %c1_i32_16 = arith.constant 1 : i32
    %34 = vector.broadcast %c1_i32_16 : i32 to vector<32x1xi32>
    %35 = arith.cmpi sge, %18, %34 : vector<32x1xi32>
    %36 = arith.extui %35 : vector<32x1xi1> to vector<32x1xi32>
    %37 = arith.sitofp %36 : vector<32x1xi32> to vector<32x1xf32>
    %38 = vector.broadcast %37 : vector<32x1xf32> to vector<32x128xf32>
    %39 = arith.mulf %33, %38 : vector<32x128xf32>
    %c9 = arith.constant 9 : index
    %c0_17 = arith.constant 0 : index
    %40 = vector.load %arg10[%c9, %c0_17] : memref<48x128xf32, #tpu.memory_space<vmem>>, vector<32x128xf32>
    %c15_i32 = arith.constant 15 : i32
    %41 = vector.broadcast %c15_i32 : i32 to vector<32x1xi32>
    %42 = arith.cmpi slt, %18, %41 : vector<32x1xi32>
    %43 = arith.extui %42 : vector<32x1xi1> to vector<32x1xi32>
    %44 = arith.sitofp %43 : vector<32x1xi32> to vector<32x1xf32>
    %45 = vector.broadcast %44 : vector<32x1xf32> to vector<32x128xf32>
    %46 = arith.mulf %40, %45 : vector<32x128xf32>
    %47 = tpu.concatenate %39, %31, %46 in 1 : vector<32x128xf32>, vector<32x128xf32>, vector<32x128xf32> -> vector<32x384xf32>
    %c0_18 = arith.constant 0 : index
    %c0_19 = arith.constant 0 : index
    %48 = vector.load %arg5[%c0_18, %c0_19] : memref<384x128xf32, #tpu.memory_space<vmem>>, vector<384x128xf32>
    %cst_20 = arith.constant dense<0.000000e+00> : vector<32x128xf32>
    %49 = tpu.matmul %47, %48, %cst_20 {dimension_numbers = #tpu.dot_dimension_numbers<[1], [0], [0], [1], [0, 0, 1, 1], [], []>} : vector<32x384xf32>, vector<384x128xf32>, vector<32x128xf32> -> vector<32x128xf32>
    %50 = arith.addf %49, %19 : vector<32x128xf32>
    %c2 = arith.constant 2 : index
    %c0_21 = arith.constant 0 : index
    %51 = vector.load %arg2[%c2, %c0_21] : memref<4x128xf32, #tpu.memory_space<vmem>>, vector<1x128xf32>
    %c3 = arith.constant 3 : index
    %c0_22 = arith.constant 0 : index
    %52 = vector.load %arg2[%c3, %c0_22] : memref<4x128xf32, #tpu.memory_space<vmem>>, vector<1x128xf32>
    %53 = vector.broadcast %51 : vector<1x128xf32> to vector<32x128xf32>
    %54 = arith.mulf %50, %53 : vector<32x128xf32>
    %55 = vector.broadcast %52 : vector<1x128xf32> to vector<32x128xf32>
    %56 = arith.addf %54, %55 : vector<32x128xf32>
    %cst_23 = arith.constant 0.000000e+00 : f32
    %57 = vector.broadcast %cst_23 : f32 to vector<32x128xf32>
    %58 = arith.maximumf %56, %57 : vector<32x128xf32>
    %c0_24 = arith.constant 0 : index
    %c0_25 = arith.constant 0 : index
    %59 = vector.load %arg6[%c0_24, %c0_25] : memref<128x128xf32, #tpu.memory_space<vmem>>, vector<128x128xf32>
    %cst_26 = arith.constant dense<0.000000e+00> : vector<32x128xf32>
    %60 = tpu.matmul %58, %59, %cst_26 {dimension_numbers = #tpu.dot_dimension_numbers<[1], [0], [0], [1], [0, 0, 1, 1], [], []>} : vector<32x128xf32>, vector<128x128xf32>, vector<32x128xf32> -> vector<32x128xf32>
    %cst_27 = arith.constant 0.000000e+00 : f32
    %61 = vector.broadcast %cst_27 : f32 to vector<32x128xf32>
    %62 = arith.maximumf %60, %61 : vector<32x128xf32>
    %c8_28 = arith.constant 8 : index
    %c0_29 = arith.constant 0 : index
    %63 = vector.load %arg10[%c8_28, %c0_29] : memref<48x128xf32, #tpu.memory_space<vmem>>, vector<32x128xf32>
    tpu.vector_store %arg10[%c8_28, %c0_29], %62 {strides = array<i32>} : memref<48x128xf32, #tpu.memory_space<vmem>>, vector<32x128xf32>,
    %c6 = arith.constant 6 : index
    %c0_30 = arith.constant 0 : index
    %64 = vector.load %arg10[%c6, %c0_30] : memref<48x128xf32, #tpu.memory_space<vmem>>, vector<32x128xf32>
    %c2_i32 = arith.constant 2 : i32
    %65 = vector.broadcast %c2_i32 : i32 to vector<32x1xi32>
    %66 = arith.cmpi sge, %18, %65 : vector<32x1xi32>
    %67 = arith.extui %66 : vector<32x1xi1> to vector<32x1xi32>
    %68 = arith.sitofp %67 : vector<32x1xi32> to vector<32x1xf32>
    %69 = vector.broadcast %68 : vector<32x1xf32> to vector<32x128xf32>
    %70 = arith.mulf %64, %69 : vector<32x128xf32>
    %c10 = arith.constant 10 : index
    %c0_31 = arith.constant 0 : index
    %71 = vector.load %arg10[%c10, %c0_31] : memref<48x128xf32, #tpu.memory_space<vmem>>, vector<32x128xf32>
    %c14_i32 = arith.constant 14 : i32
    %72 = vector.broadcast %c14_i32 : i32 to vector<32x1xi32>
    %73 = arith.cmpi slt, %18, %72 : vector<32x1xi32>
    %74 = arith.extui %73 : vector<32x1xi1> to vector<32x1xi32>
    %75 = arith.sitofp %74 : vector<32x1xi32> to vector<32x1xf32>
    %76 = vector.broadcast %75 : vector<32x1xf32> to vector<32x128xf32>
    %77 = arith.mulf %71, %76 : vector<32x128xf32>
    %78 = tpu.concatenate %70, %62, %77 in 1 : vector<32x128xf32>, vector<32x128xf32>, vector<32x128xf32> -> vector<32x384xf32>
    %c0_32 = arith.constant 0 : index
    %c0_33 = arith.constant 0 : index
    %79 = vector.load %arg7[%c0_32, %c0_33] : memref<384x128xf32, #tpu.memory_space<vmem>>, vector<384x128xf32>
    %cst_34 = arith.constant dense<0.000000e+00> : vector<32x128xf32>
    %80 = tpu.matmul %78, %79, %cst_34 {dimension_numbers = #tpu.dot_dimension_numbers<[1], [0], [0], [1], [0, 0, 1, 1], [], []>} : vector<32x384xf32>, vector<384x128xf32>, vector<32x128xf32> -> vector<32x128xf32>
    %81 = arith.addf %80, %50 : vector<32x128xf32>
    %c8_35 = arith.constant 8 : index
    %c0_36 = arith.constant 0 : index
    %82 = vector.load %arg10[%c8_35, %c0_36] : memref<48x128xf32, #tpu.memory_space<vmem>>, vector<32x128xf32>
    tpu.vector_store %arg10[%c8_35, %c0_36], %81 {strides = array<i32>} : memref<48x128xf32, #tpu.memory_space<vmem>>, vector<32x128xf32>,
    %c5 = arith.constant 5 : index
    %c0_37 = arith.constant 0 : index
    %83 = vector.load %arg10[%c5, %c0_37] : memref<48x128xf32, #tpu.memory_space<vmem>>, vector<32x128xf32>
    %c3_i32 = arith.constant 3 : i32
    %84 = vector.broadcast %c3_i32 : i32 to vector<32x1xi32>
    %85 = arith.cmpi sge, %18, %84 : vector<32x1xi32>
    %86 = arith.extui %85 : vector<32x1xi1> to vector<32x1xi32>
    %87 = arith.sitofp %86 : vector<32x1xi32> to vector<32x1xf32>
    %88 = vector.broadcast %87 : vector<32x1xf32> to vector<32x128xf32>
    %89 = arith.mulf %83, %88 : vector<32x128xf32>
    %c6_38 = arith.constant 6 : index
    %c0_39 = arith.constant 0 : index
    %90 = vector.load %arg10[%c6_38, %c0_39] : memref<48x128xf32, #tpu.memory_space<vmem>>, vector<32x128xf32>
    %c2_i32_40 = arith.constant 2 : i32
    %91 = vector.broadcast %c2_i32_40 : i32 to vector<32x1xi32>
    %92 = arith.cmpi sge, %18, %91 : vector<32x1xi32>
    %93 = arith.extui %92 : vector<32x1xi1> to vector<32x1xi32>
    %94 = arith.sitofp %93 : vector<32x1xi32> to vector<32x1xf32>
    %95 = vector.broadcast %94 : vector<32x1xf32> to vector<32x128xf32>
    %96 = arith.mulf %90, %95 : vector<32x128xf32>
    %c7_41 = arith.constant 7 : index
    %c0_42 = arith.constant 0 : index
    %97 = vector.load %arg10[%c7_41, %c0_42] : memref<48x128xf32, #tpu.memory_space<vmem>>, vector<32x128xf32>
    %c1_i32_43 = arith.constant 1 : i32
    %98 = vector.broadcast %c1_i32_43 : i32 to vector<32x1xi32>
    %99 = arith.cmpi sge, %18, %98 : vector<32x1xi32>
    %100 = arith.extui %99 : vector<32x1xi1> to vector<32x1xi32>
    %101 = arith.sitofp %100 : vector<32x1xi32> to vector<32x1xf32>
    %102 = vector.broadcast %101 : vector<32x1xf32> to vector<32x128xf32>
    %103 = arith.mulf %97, %102 : vector<32x128xf32>
    %c9_44 = arith.constant 9 : index
    %c0_45 = arith.constant 0 : index
    %104 = vector.load %arg10[%c9_44, %c0_45] : memref<48x128xf32, #tpu.memory_space<vmem>>, vector<32x128xf32>
    %c15_i32_46 = arith.constant 15 : i32
    %105 = vector.broadcast %c15_i32_46 : i32 to vector<32x1xi32>
    %106 = arith.cmpi slt, %18, %105 : vector<32x1xi32>
    %107 = arith.extui %106 : vector<32x1xi1> to vector<32x1xi32>
    %108 = arith.sitofp %107 : vector<32x1xi32> to vector<32x1xf32>
    %109 = vector.broadcast %108 : vector<32x1xf32> to vector<32x128xf32>
    %110 = arith.mulf %104, %109 : vector<32x128xf32>
    %c10_47 = arith.constant 10 : index
    %c0_48 = arith.constant 0 : index
    %111 = vector.load %arg10[%c10_47, %c0_48] : memref<48x128xf32, #tpu.memory_space<vmem>>, vector<32x128xf32>
    %c14_i32_49 = arith.constant 14 : i32
    %112 = vector.broadcast %c14_i32_49 : i32 to vector<32x1xi32>
    %113 = arith.cmpi slt, %18, %112 : vector<32x1xi32>
    %114 = arith.extui %113 : vector<32x1xi1> to vector<32x1xi32>
    %115 = arith.sitofp %114 : vector<32x1xi32> to vector<32x1xf32>
    %116 = vector.broadcast %115 : vector<32x1xf32> to vector<32x128xf32>
    %117 = arith.mulf %111, %116 : vector<32x128xf32>
    %c11 = arith.constant 11 : index
    %c0_50 = arith.constant 0 : index
    %118 = vector.load %arg10[%c11, %c0_50] : memref<48x128xf32, #tpu.memory_space<vmem>>, vector<32x128xf32>
    %c13_i32 = arith.constant 13 : i32
    %119 = vector.broadcast %c13_i32 : i32 to vector<32x1xi32>
    %120 = arith.cmpi slt, %18, %119 : vector<32x1xi32>
    %121 = arith.extui %120 : vector<32x1xi1> to vector<32x1xi32>
    %122 = arith.sitofp %121 : vector<32x1xi32> to vector<32x1xf32>
    %123 = vector.broadcast %122 : vector<32x1xf32> to vector<32x128xf32>
    %124 = arith.mulf %118, %123 : vector<32x128xf32>
    %125 = tpu.concatenate %89, %96, %103, %81, %110, %117, %124 in 1 : vector<32x128xf32>, vector<32x128xf32>, vector<32x128xf32>, vector<32x128xf32>, vector<32x128xf32>, vector<32x128xf32>, vector<32x128xf32> -> vector<32x896xf32>
    %c0_51 = arith.constant 0 : index
    %c0_52 = arith.constant 0 : index
    %126 = vector.load %arg8[%c0_51, %c0_52] : memref<896x128xf32, #tpu.memory_space<vmem>>, vector<896x128xf32>
    %cst_53 = arith.constant dense<0.000000e+00> : vector<32x128xf32>
    %127 = tpu.matmul %125, %126, %cst_53 {dimension_numbers = #tpu.dot_dimension_numbers<[1], [0], [0], [1], [0, 0, 1, 1], [], []>} : vector<32x896xf32>, vector<896x128xf32>, vector<32x128xf32> -> vector<32x128xf32>
    %c0_54 = arith.constant 0 : index
    %c0_55 = arith.constant 0 : index
    %128 = vector.load %arg3[%c0_54, %c0_55] : memref<1x128xf32, #tpu.memory_space<vmem>>, vector<1x128xf32>
    %129 = vector.broadcast %128 : vector<1x128xf32> to vector<32x128xf32>
    %130 = arith.addf %127, %129 : vector<32x128xf32>
    %c0_56 = arith.constant 0 : index
    %c0_57 = arith.constant 0 : index
    %131 = vector.load %arg9[%c0_56, %c0_57] : memref<32x128xf32, #tpu.memory_space<vmem>>, vector<32x128xf32>
    tpu.vector_store %arg9[%c0_56, %c0_57], %130 {strides = array<i32>} : memref<32x128xf32, #tpu.memory_space<vmem>>, vector<32x128xf32>,
    return
  }
  func.func @transform_0(%arg0: i32) -> (i32, i32) {
    %c0_i32 = arith.constant 0 : i32
    %c0_i32_0 = arith.constant 0 : i32
    return %arg0, %c0_i32 : i32, i32
  }
  func.func @transform_1(%arg0: i32) -> (i32, i32) {
    %c0_i32 = arith.constant 0 : i32
    %c0_i32_0 = arith.constant 0 : i32
    %c0_i32_1 = arith.constant 0 : i32
    return %c0_i32, %c0_i32_0 : i32, i32
  }
  func.func @transform_2(%arg0: i32) -> (i32, i32) {
    %c0_i32 = arith.constant 0 : i32
    %c0_i32_0 = arith.constant 0 : i32
    %c0_i32_1 = arith.constant 0 : i32
    return %c0_i32, %c0_i32_0 : i32, i32
  }
  func.func @transform_3(%arg0: i32) -> (i32, i32) {
    %c0_i32 = arith.constant 0 : i32
    %c0_i32_0 = arith.constant 0 : i32
    %c0_i32_1 = arith.constant 0 : i32
    return %c0_i32, %c0_i32_0 : i32, i32
  }
  func.func @transform_4(%arg0: i32) -> (i32, i32) {
    %c0_i32 = arith.constant 0 : i32
    %c0_i32_0 = arith.constant 0 : i32
    %c0_i32_1 = arith.constant 0 : i32
    return %c0_i32, %c0_i32_0 : i32, i32
  }
  func.func @transform_5(%arg0: i32) -> (i32, i32) {
    %c0_i32 = arith.constant 0 : i32
    %c0_i32_0 = arith.constant 0 : i32
    %c0_i32_1 = arith.constant 0 : i32
    return %c0_i32, %c0_i32_0 : i32, i32
  }
  func.func @transform_6(%arg0: i32) -> (i32, i32) {
    %c0_i32 = arith.constant 0 : i32
    %c0_i32_0 = arith.constant 0 : i32
    %c0_i32_1 = arith.constant 0 : i32
    return %c0_i32, %c0_i32_0 : i32, i32
  }
  func.func @transform_7(%arg0: i32) -> (i32, i32) {
    %c0_i32 = arith.constant 0 : i32
    %c0_i32_0 = arith.constant 0 : i32
    %c0_i32_1 = arith.constant 0 : i32
    return %c0_i32, %c0_i32_0 : i32, i32
  }
  func.func @transform_8(%arg0: i32) -> (i32, i32) {
    %c0_i32 = arith.constant 0 : i32
    %c0_i32_0 = arith.constant 0 : i32
    return %arg0, %c0_i32 : i32, i32
  }
}

module attributes {stable_mosaic.version = 11 : i64} {
  func.func @kernel(%arg0: i32, %arg1: memref<32x128xf32, #tpu.memory_space<vmem>>, %arg2: memref<4x128xf32, #tpu.memory_space<vmem>>, %arg3: memref<1x128xf32, #tpu.memory_space<vmem>>, %arg4: memref<128x128xf32, #tpu.memory_space<vmem>>, %arg5: memref<384x128xf32, #tpu.memory_space<vmem>>, %arg6: memref<128x128xf32, #tpu.memory_space<vmem>>, %arg7: memref<384x128xf32, #tpu.memory_space<vmem>>, %arg8: memref<896x128xf32, #tpu.memory_space<vmem>>, %arg9: memref<32x128xf32, #tpu.memory_space<vmem>>, %arg10: memref<48x128xf32, #tpu.memory_space<vmem>>) attributes {dimension_semantics = [#tpu.dimension_semantics<parallel>], iteration_bounds = array<i64: 2>, scalar_prefetch = 0 : i64, scratch_operands = 1 : i64, tpu.core_type = #tpu.core_type<tc>, window_params = [{transform_indices = @transform_0, window_bounds = array<i64: 32, 128>}, {pipeline_mode = #tpu.pipeline_mode<synchronous>, transform_indices = @transform_1, window_bounds = array<i64: 4, 128>}, {pipeline_mode = #tpu.pipeline_mode<synchronous>, transform_indices = @transform_2, window_bounds = array<i64: 1, 128>}, {pipeline_mode = #tpu.pipeline_mode<synchronous>, transform_indices = @transform_3, window_bounds = array<i64: 128, 128>}, {pipeline_mode = #tpu.pipeline_mode<synchronous>, transform_indices = @transform_4, window_bounds = array<i64: 384, 128>}, {pipeline_mode = #tpu.pipeline_mode<synchronous>, transform_indices = @transform_5, window_bounds = array<i64: 128, 128>}, {pipeline_mode = #tpu.pipeline_mode<synchronous>, transform_indices = @transform_6, window_bounds = array<i64: 384, 128>}, {pipeline_mode = #tpu.pipeline_mode<synchronous>, transform_indices = @transform_7, window_bounds = array<i64: 896, 128>}, {transform_indices = @transform_8, window_bounds = array<i64: 32, 128>}]} {
    %cst = arith.constant 0.000000e+00 : f32
    %0 = vector.broadcast %cst : f32 to vector<48x128xf32>
    %c0 = arith.constant 0 : index
    %c0_0 = arith.constant 0 : index
    %1 = vector.load %arg10[%c0, %c0_0] : memref<48x128xf32, #tpu.memory_space<vmem>>, vector<48x128xf32>
    tpu.vector_store %arg10[%c0, %c0_0], %0 {strides = array<i32>} : memref<48x128xf32, #tpu.memory_space<vmem>>, vector<48x128xf32>,
    %2 = tpu.iota {dimensions = array<i32: 0>} : vector<32x1xi32>
    %c16_i32 = arith.constant 16 : i32
    %c0_i32 = arith.constant 0 : i32
    %3 = arith.cmpi eq, %c16_i32, %c0_i32 : i32
    %c1_i32 = arith.constant 1 : i32
    %4 = arith.select %3, %c1_i32, %c16_i32 : i32
    %5 = vector.broadcast %4 : i32 to vector<32x1xi32>
    %6 = arith.remsi %2, %5 : vector<32x1xi32>
    %c0_i32_1 = arith.constant 0 : i32
    %7 = vector.broadcast %c0_i32_1 : i32 to vector<32x1xi32>
    %8 = arith.cmpi ne, %6, %7 : vector<32x1xi32>
    %c0_i32_2 = arith.constant 0 : i32
    %9 = vector.broadcast %c0_i32_2 : i32 to vector<32x1xi32>
    %10 = arith.cmpi slt, %6, %9 : vector<32x1xi32>
    %c0_i32_3 = arith.constant 0 : i32
    %11 = arith.cmpi slt, %4, %c0_i32_3 : i32
    %12 = vector.broadcast %11 : i1 to vector<32x1xi1>
    %13 = vector.broadcast %12 : vector<32x1xi1> to vector<32x1xi1>
    %14 = arith.xori %10, %13 : vector<32x1xi1>
    %15 = arith.andi %14, %8 : vector<32x1xi1>
    %16 = vector.broadcast %4 : i32 to vector<32x1xi32>
    %17 = arith.addi %6, %16 : vector<32x1xi32>
    %18 = arith.select %15, %17, %6 : vector<32x1xi1>, vector<32x1xi32>
    %c0_4 = arith.constant 0 : index
    %c0_5 = arith.constant 0 : index
    %19 = vector.load %arg1[%c0_4, %c0_5] : memref<32x128xf32, #tpu.memory_space<vmem>>, vector<32x128xf32>
    %c0_6 = arith.constant 0 : index
    %c0_7 = arith.constant 0 : index
    %20 = vector.load %arg2[%c0_6, %c0_7] : memref<4x128xf32, #tpu.memory_space<vmem>>, vector<1x128xf32>
    %c1 = arith.constant 1 : index
    %c0_8 = arith.constant 0 : index
    %21 = vector.load %arg2[%c1, %c0_8] : memref<4x128xf32, #tpu.memory_space<vmem>>, vector<1x128xf32>
    %22 = vector.broadcast %20 : vector<1x128xf32> to vector<32x128xf32>
    %23 = arith.mulf %19, %22 : vector<32x128xf32>
    %24 = vector.broadcast %21 : vector<1x128xf32> to vector<32x128xf32>
    %25 = arith.addf %23, %24 : vector<32x128xf32>
    %cst_9 = arith.constant 0.000000e+00 : f32
    %26 = vector.broadcast %cst_9 : f32 to vector<32x128xf32>
    %27 = arith.maximumf %25, %26 : vector<32x128xf32>
    %c0_10 = arith.constant 0 : index
    %c0_11 = arith.constant 0 : index
    %28 = vector.load %arg4[%c0_10, %c0_11] : memref<128x128xf32, #tpu.memory_space<vmem>>, vector<128x128xf32>
    %cst_12 = arith.constant dense<0.000000e+00> : vector<32x128xf32>
    %29 = tpu.matmul %27, %28, %cst_12 {dimension_numbers = #tpu.dot_dimension_numbers<[1], [0], [0], [1], [0, 0, 1, 1], [], []>} : vector<32x128xf32>, vector<128x128xf32>, vector<32x128xf32> -> vector<32x128xf32>
    %cst_13 = arith.constant 0.000000e+00 : f32
    %30 = vector.broadcast %cst_13 : f32 to vector<32x128xf32>
    %31 = arith.maximumf %29, %30 : vector<32x128xf32>
    %c8 = arith.constant 8 : index
    %c0_14 = arith.constant 0 : index
    %32 = vector.load %arg10[%c8, %c0_14] : memref<48x128xf32, #tpu.memory_space<vmem>>, vector<32x128xf32>
    tpu.vector_store %arg10[%c8, %c0_14], %31 {strides = array<i32>} : memref<48x128xf32, #tpu.memory_space<vmem>>, vector<32x128xf32>,
    %c7 = arith.constant 7 : index
    %c0_15 = arith.constant 0 : index
    %33 = vector.load %arg10[%c7, %c0_15] : memref<48x128xf32, #tpu.memory_space<vmem>>, vector<32x128xf32>
    %c1_i32_16 = arith.constant 1 : i32
    %34 = vector.broadcast %c1_i32_16 : i32 to vector<32x1xi32>
    %35 = arith.cmpi sge, %18, %34 : vector<32x1xi32>
    %36 = arith.extui %35 : vector<32x1xi1> to vector<32x1xi32>
    %37 = arith.sitofp %36 : vector<32x1xi32> to vector<32x1xf32>
    %38 = vector.broadcast %37 : vector<32x1xf32> to vector<32x128xf32>
    %39 = arith.mulf %33, %38 : vector<32x128xf32>
    %c9 = arith.constant 9 : index
    %c0_17 = arith.constant 0 : index
    %40 = vector.load %arg10[%c9, %c0_17] : memref<48x128xf32, #tpu.memory_space<vmem>>, vector<32x128xf32>
    %c15_i32 = arith.constant 15 : i32
    %41 = vector.broadcast %c15_i32 : i32 to vector<32x1xi32>
    %42 = arith.cmpi slt, %18, %41 : vector<32x1xi32>
    %43 = arith.extui %42 : vector<32x1xi1> to vector<32x1xi32>
    %44 = arith.sitofp %43 : vector<32x1xi32> to vector<32x1xf32>
    %45 = vector.broadcast %44 : vector<32x1xf32> to vector<32x128xf32>
    %46 = arith.mulf %40, %45 : vector<32x128xf32>
    %47 = tpu.concatenate %39, %31, %46 in 1 : vector<32x128xf32>, vector<32x128xf32>, vector<32x128xf32> -> vector<32x384xf32>
    %c0_18 = arith.constant 0 : index
    %c0_19 = arith.constant 0 : index
    %48 = vector.load %arg5[%c0_18, %c0_19] : memref<384x128xf32, #tpu.memory_space<vmem>>, vector<384x128xf32>
    %cst_20 = arith.constant dense<0.000000e+00> : vector<32x128xf32>
    %49 = tpu.matmul %47, %48, %cst_20 {dimension_numbers = #tpu.dot_dimension_numbers<[1], [0], [0], [1], [0, 0, 1, 1], [], []>} : vector<32x384xf32>, vector<384x128xf32>, vector<32x128xf32> -> vector<32x128xf32>
    %50 = arith.addf %49, %19 : vector<32x128xf32>
    %c2 = arith.constant 2 : index
    %c0_21 = arith.constant 0 : index
    %51 = vector.load %arg2[%c2, %c0_21] : memref<4x128xf32, #tpu.memory_space<vmem>>, vector<1x128xf32>
    %c3 = arith.constant 3 : index
    %c0_22 = arith.constant 0 : index
    %52 = vector.load %arg2[%c3, %c0_22] : memref<4x128xf32, #tpu.memory_space<vmem>>, vector<1x128xf32>
    %53 = vector.broadcast %51 : vector<1x128xf32> to vector<32x128xf32>
    %54 = arith.mulf %50, %53 : vector<32x128xf32>
    %55 = vector.broadcast %52 : vector<1x128xf32> to vector<32x128xf32>
    %56 = arith.addf %54, %55 : vector<32x128xf32>
    %cst_23 = arith.constant 0.000000e+00 : f32
    %57 = vector.broadcast %cst_23 : f32 to vector<32x128xf32>
    %58 = arith.maximumf %56, %57 : vector<32x128xf32>
    %c0_24 = arith.constant 0 : index
    %c0_25 = arith.constant 0 : index
    %59 = vector.load %arg6[%c0_24, %c0_25] : memref<128x128xf32, #tpu.memory_space<vmem>>, vector<128x128xf32>
    %cst_26 = arith.constant dense<0.000000e+00> : vector<32x128xf32>
    %60 = tpu.matmul %58, %59, %cst_26 {dimension_numbers = #tpu.dot_dimension_numbers<[1], [0], [0], [1], [0, 0, 1, 1], [], []>} : vector<32x128xf32>, vector<128x128xf32>, vector<32x128xf32> -> vector<32x128xf32>
    %cst_27 = arith.constant 0.000000e+00 : f32
    %61 = vector.broadcast %cst_27 : f32 to vector<32x128xf32>
    %62 = arith.maximumf %60, %61 : vector<32x128xf32>
    %c8_28 = arith.constant 8 : index
    %c0_29 = arith.constant 0 : index
    %63 = vector.load %arg10[%c8_28, %c0_29] : memref<48x128xf32, #tpu.memory_space<vmem>>, vector<32x128xf32>
    tpu.vector_store %arg10[%c8_28, %c0_29], %62 {strides = array<i32>} : memref<48x128xf32, #tpu.memory_space<vmem>>, vector<32x128xf32>,
    %c6 = arith.constant 6 : index
    %c0_30 = arith.constant 0 : index
    %64 = vector.load %arg10[%c6, %c0_30] : memref<48x128xf32, #tpu.memory_space<vmem>>, vector<32x128xf32>
    %c2_i32 = arith.constant 2 : i32
    %65 = vector.broadcast %c2_i32 : i32 to vector<32x1xi32>
    %66 = arith.cmpi sge, %18, %65 : vector<32x1xi32>
    %67 = arith.extui %66 : vector<32x1xi1> to vector<32x1xi32>
    %68 = arith.sitofp %67 : vector<32x1xi32> to vector<32x1xf32>
    %69 = vector.broadcast %68 : vector<32x1xf32> to vector<32x128xf32>
    %70 = arith.mulf %64, %69 : vector<32x128xf32>
    %c10 = arith.constant 10 : index
    %c0_31 = arith.constant 0 : index
    %71 = vector.load %arg10[%c10, %c0_31] : memref<48x128xf32, #tpu.memory_space<vmem>>, vector<32x128xf32>
    %c14_i32 = arith.constant 14 : i32
    %72 = vector.broadcast %c14_i32 : i32 to vector<32x1xi32>
    %73 = arith.cmpi slt, %18, %72 : vector<32x1xi32>
    %74 = arith.extui %73 : vector<32x1xi1> to vector<32x1xi32>
    %75 = arith.sitofp %74 : vector<32x1xi32> to vector<32x1xf32>
    %76 = vector.broadcast %75 : vector<32x1xf32> to vector<32x128xf32>
    %77 = arith.mulf %71, %76 : vector<32x128xf32>
    %78 = tpu.concatenate %70, %62, %77 in 1 : vector<32x128xf32>, vector<32x128xf32>, vector<32x128xf32> -> vector<32x384xf32>
    %c0_32 = arith.constant 0 : index
    %c0_33 = arith.constant 0 : index
    %79 = vector.load %arg7[%c0_32, %c0_33] : memref<384x128xf32, #tpu.memory_space<vmem>>, vector<384x128xf32>
    %cst_34 = arith.constant dense<0.000000e+00> : vector<32x128xf32>
    %80 = tpu.matmul %78, %79, %cst_34 {dimension_numbers = #tpu.dot_dimension_numbers<[1], [0], [0], [1], [0, 0, 1, 1], [], []>} : vector<32x384xf32>, vector<384x128xf32>, vector<32x128xf32> -> vector<32x128xf32>
    %81 = arith.addf %80, %50 : vector<32x128xf32>
    %c8_35 = arith.constant 8 : index
    %c0_36 = arith.constant 0 : index
    %82 = vector.load %arg10[%c8_35, %c0_36] : memref<48x128xf32, #tpu.memory_space<vmem>>, vector<32x128xf32>
    tpu.vector_store %arg10[%c8_35, %c0_36], %81 {strides = array<i32>} : memref<48x128xf32, #tpu.memory_space<vmem>>, vector<32x128xf32>,
    %c5 = arith.constant 5 : index
    %c0_37 = arith.constant 0 : index
    %83 = vector.load %arg10[%c5, %c0_37] : memref<48x128xf32, #tpu.memory_space<vmem>>, vector<32x128xf32>
    %c3_i32 = arith.constant 3 : i32
    %84 = vector.broadcast %c3_i32 : i32 to vector<32x1xi32>
    %85 = arith.cmpi sge, %18, %84 : vector<32x1xi32>
    %86 = arith.extui %85 : vector<32x1xi1> to vector<32x1xi32>
    %87 = arith.sitofp %86 : vector<32x1xi32> to vector<32x1xf32>
    %88 = vector.broadcast %87 : vector<32x1xf32> to vector<32x128xf32>
    %89 = arith.mulf %83, %88 : vector<32x128xf32>
    %c6_38 = arith.constant 6 : index
    %c0_39 = arith.constant 0 : index
    %90 = vector.load %arg10[%c6_38, %c0_39] : memref<48x128xf32, #tpu.memory_space<vmem>>, vector<32x128xf32>
    %c2_i32_40 = arith.constant 2 : i32
    %91 = vector.broadcast %c2_i32_40 : i32 to vector<32x1xi32>
    %92 = arith.cmpi sge, %18, %91 : vector<32x1xi32>
    %93 = arith.extui %92 : vector<32x1xi1> to vector<32x1xi32>
    %94 = arith.sitofp %93 : vector<32x1xi32> to vector<32x1xf32>
    %95 = vector.broadcast %94 : vector<32x1xf32> to vector<32x128xf32>
    %96 = arith.mulf %90, %95 : vector<32x128xf32>
    %c7_41 = arith.constant 7 : index
    %c0_42 = arith.constant 0 : index
    %97 = vector.load %arg10[%c7_41, %c0_42] : memref<48x128xf32, #tpu.memory_space<vmem>>, vector<32x128xf32>
    %c1_i32_43 = arith.constant 1 : i32
    %98 = vector.broadcast %c1_i32_43 : i32 to vector<32x1xi32>
    %99 = arith.cmpi sge, %18, %98 : vector<32x1xi32>
    %100 = arith.extui %99 : vector<32x1xi1> to vector<32x1xi32>
    %101 = arith.sitofp %100 : vector<32x1xi32> to vector<32x1xf32>
    %102 = vector.broadcast %101 : vector<32x1xf32> to vector<32x128xf32>
    %103 = arith.mulf %97, %102 : vector<32x128xf32>
    %c9_44 = arith.constant 9 : index
    %c0_45 = arith.constant 0 : index
    %104 = vector.load %arg10[%c9_44, %c0_45] : memref<48x128xf32, #tpu.memory_space<vmem>>, vector<32x128xf32>
    %c15_i32_46 = arith.constant 15 : i32
    %105 = vector.broadcast %c15_i32_46 : i32 to vector<32x1xi32>
    %106 = arith.cmpi slt, %18, %105 : vector<32x1xi32>
    %107 = arith.extui %106 : vector<32x1xi1> to vector<32x1xi32>
    %108 = arith.sitofp %107 : vector<32x1xi32> to vector<32x1xf32>
    %109 = vector.broadcast %108 : vector<32x1xf32> to vector<32x128xf32>
    %110 = arith.mulf %104, %109 : vector<32x128xf32>
    %c10_47 = arith.constant 10 : index
    %c0_48 = arith.constant 0 : index
    %111 = vector.load %arg10[%c10_47, %c0_48] : memref<48x128xf32, #tpu.memory_space<vmem>>, vector<32x128xf32>
    %c14_i32_49 = arith.constant 14 : i32
    %112 = vector.broadcast %c14_i32_49 : i32 to vector<32x1xi32>
    %113 = arith.cmpi slt, %18, %112 : vector<32x1xi32>
    %114 = arith.extui %113 : vector<32x1xi1> to vector<32x1xi32>
    %115 = arith.sitofp %114 : vector<32x1xi32> to vector<32x1xf32>
    %116 = vector.broadcast %115 : vector<32x1xf32> to vector<32x128xf32>
    %117 = arith.mulf %111, %116 : vector<32x128xf32>
    %c11 = arith.constant 11 : index
    %c0_50 = arith.constant 0 : index
    %118 = vector.load %arg10[%c11, %c0_50] : memref<48x128xf32, #tpu.memory_space<vmem>>, vector<32x128xf32>
    %c13_i32 = arith.constant 13 : i32
    %119 = vector.broadcast %c13_i32 : i32 to vector<32x1xi32>
    %120 = arith.cmpi slt, %18, %119 : vector<32x1xi32>
    %121 = arith.extui %120 : vector<32x1xi1> to vector<32x1xi32>
    %122 = arith.sitofp %121 : vector<32x1xi32> to vector<32x1xf32>
    %123 = vector.broadcast %122 : vector<32x1xf32> to vector<32x128xf32>
    %124 = arith.mulf %118, %123 : vector<32x128xf32>
    %125 = tpu.concatenate %89, %96, %103, %81, %110, %117, %124 in 1 : vector<32x128xf32>, vector<32x128xf32>, vector<32x128xf32>, vector<32x128xf32>, vector<32x128xf32>, vector<32x128xf32>, vector<32x128xf32> -> vector<32x896xf32>
    %c0_51 = arith.constant 0 : index
    %c0_52 = arith.constant 0 : index
    %126 = vector.load %arg8[%c0_51, %c0_52] : memref<896x128xf32, #tpu.memory_space<vmem>>, vector<896x128xf32>
    %cst_53 = arith.constant dense<0.000000e+00> : vector<32x128xf32>
    %127 = tpu.matmul %125, %126, %cst_53 {dimension_numbers = #tpu.dot_dimension_numbers<[1], [0], [0], [1], [0, 0, 1, 1], [], []>} : vector<32x896xf32>, vector<896x128xf32>, vector<32x128xf32> -> vector<32x128xf32>
    %c0_54 = arith.constant 0 : index
    %c0_55 = arith.constant 0 : index
    %128 = vector.load %arg3[%c0_54, %c0_55] : memref<1x128xf32, #tpu.memory_space<vmem>>, vector<1x128xf32>
    %129 = vector.broadcast %128 : vector<1x128xf32> to vector<32x128xf32>
    %130 = arith.addf %127, %129 : vector<32x128xf32>
    %c0_56 = arith.constant 0 : index
    %c0_57 = arith.constant 0 : index
    %131 = vector.load %arg9[%c0_56, %c0_57] : memref<32x128xf32, #tpu.memory_space<vmem>>, vector<32x128xf32>
    tpu.vector_store %arg9[%c0_56, %c0_57], %130 {strides = array<i32>} : memref<32x128xf32, #tpu.memory_space<vmem>>, vector<32x128xf32>,
    return
  }
  func.func @transform_0(%arg0: i32) -> (i32, i32) {
    %c0_i32 = arith.constant 0 : i32
    %c0_i32_0 = arith.constant 0 : i32
    return %arg0, %c0_i32 : i32, i32
  }
  func.func @transform_1(%arg0: i32) -> (i32, i32) {
    %c0_i32 = arith.constant 0 : i32
    %c0_i32_0 = arith.constant 0 : i32
    %c0_i32_1 = arith.constant 0 : i32
    return %c0_i32, %c0_i32_0 : i32, i32
  }
  func.func @transform_2(%arg0: i32) -> (i32, i32) {
    %c0_i32 = arith.constant 0 : i32
    %c0_i32_0 = arith.constant 0 : i32
    %c0_i32_1 = arith.constant 0 : i32
    return %c0_i32, %c0_i32_0 : i32, i32
  }
  func.func @transform_3(%arg0: i32) -> (i32, i32) {
    %c0_i32 = arith.constant 0 : i32
    %c0_i32_0 = arith.constant 0 : i32
    %c0_i32_1 = arith.constant 0 : i32
    return %c0_i32, %c0_i32_0 : i32, i32
  }
  func.func @transform_4(%arg0: i32) -> (i32, i32) {
    %c0_i32 = arith.constant 0 : i32
    %c0_i32_0 = arith.constant 0 : i32
    %c0_i32_1 = arith.constant 0 : i32
    return %c0_i32, %c0_i32_0 : i32, i32
  }
  func.func @transform_5(%arg0: i32) -> (i32, i32) {
    %c0_i32 = arith.constant 0 : i32
    %c0_i32_0 = arith.constant 0 : i32
    %c0_i32_1 = arith.constant 0 : i32
    return %c0_i32, %c0_i32_0 : i32, i32
  }
  func.func @transform_6(%arg0: i32) -> (i32, i32) {
    %c0_i32 = arith.constant 0 : i32
    %c0_i32_0 = arith.constant 0 : i32
    %c0_i32_1 = arith.constant 0 : i32
    return %c0_i32, %c0_i32_0 : i32, i32
  }
  func.func @transform_7(%arg0: i32) -> (i32, i32) {
    %c0_i32 = arith.constant 0 : i32
    %c0_i32_0 = arith.constant 0 : i32
    %c0_i32_1 = arith.constant 0 : i32
    return %c0_i32, %c0_i32_0 : i32, i32
  }
  func.func @transform_8(%arg0: i32) -> (i32, i32) {
    %c0_i32 = arith.constant 0 : i32
    %c0_i32_0 = arith.constant 0 : i32
    return %arg0, %c0_i32 : i32, i32
  }
}

</mosaic_0001>

<bundles_post_ra>
// kernel: tpu_custom_call.1
= control target key start
LH: loop header
LB: loop body
LE: loop exit
PB: predicated region body
PF: predicated region fallthrough
CT: control target
= control target key end

     0   :  { %s3314_s0 = inlined_call_operand.hbm [shape: f32[64,128], index: 0, kind: input, shape index: {}]   ;;  %s3315_s1 = inlined_call_operand.hbm [shape: f32[4,128], index: 1, kind: input, shape index: {}]   ;;  %s3316_s2 = inlined_call_operand.vmem [shape: f32[1,128], index: 2, kind: input, shape index: {}]   ;;  %s3317_s3 = inlined_call_operand.hbm [shape: f32[128,128], index: 3, kind: input, shape index: {}]   ;;  %s3318_s4 = inlined_call_operand.hbm [shape: f32[384,128], index: 4, kind: input, shape index: {}]   ;;  %s3319_s5 = inlined_call_operand.hbm [shape: f32[128,128], index: 5, kind: input, shape index: {}]   ;;  %s3320_s6 = inlined_call_operand.hbm [shape: f32[384,128], index: 6, kind: input, shape index: {}]   ;;  %s3321_s7 = inlined_call_operand.hbm [shape: f32[896,128], index: 7, kind: input, shape index: {}]   ;;  %s3322_s8 = inlined_call_operand.hbm [shape: f32[64,128], index: 8, kind: output, shape index: {}]  }
   0x1   :  { %3329 = sst [smem:[#allocation21_spill]] %s3315_s1 }
   0x2   :  { %3330 = sst [smem:[#allocation22_spill]] %s3317_s3 }
   0x3   :  { %13 = vsyncpa [#allocation4], 0 }
   0x4   :  { %15 = vsyncpa [#allocation4 + $0x1], 0 }
   0x5   :  { %16 = vsyncpa [#allocation7], 0 }
   0x6   :  { %17 = vsyncpa [#allocation10], 0 }
   0x7   :  { %18 = vsyncpa [#allocation13], 0 }
   0x8   :  { %19 = vsyncpa [#allocation5], 0 }
   0x9   :  { %21 = vsyncpa [#allocation5 + $0x1], 0  ;;  %s2923_s27 = smov 0   ;;  %s2925_s28 = smov 0  }
   0xa   :  { %s2927_s29 = smov 0   ;;  %s2929_s30 = smov 0  }
   0xb LB: > { %s2865_s9 = smov [#allocation6]   ;;  %s2944_s11 = sadd.s32 4294967295, %s2863_s30   ;;  %s2863_s30 = sphi %s2929_s30, %s3357_s30   ;;  %s2859_s29 = sphi %s2927_s29, %s3356_s29   ;;  %s2855_s28 = sphi %s2925_s28, %s3355_s28   ;;  %s2851_s27 = sphi %s2923_s27, %s3354_s27  }
   0xc   : > { %s244_s10 = sshll.u32 %s2865_s9, 4  ;;  %p1936_p0 = scmp.ge.s32.totalorder %s2863_s30, 1  ;;  %s245_s10 = int_to_ptr.vmem [resolvable:$true] %s244_s10 }
   0xd   : > { %p3325_p1 = scmp.eq.s32.totalorder %s2944_s11, 0  ;;  %p231_p2 = scmp.lt.s32.totalorder %s2863_s30, 3 }
   0xe   : > { %s2866_s13 = smov [#allocation9]   ;;  %s2867_s16 = smov [#allocation12]  }
   0xf   : > { %p2949_p3 = pnand %p1936_p0, %p231_p2  ;;  %s270_s14 = sshll.u32 %s2866_s13, 4  ;;  %s2962_s14 = int_to_ptr.vmem [resolvable:$true] %s270_s14 }
  0x10   : > { %s296_s17 = sshll.u32 %s2867_s16, 4  ;;  %s2614_s19 = scalar_lea.vmem %s245_s10, 64  ;;  %s2964_s17 = int_to_ptr.vmem [resolvable:$true] %s296_s17 }
  0x11   : > { %s3331_s12 = scalar_select %p2949_p3, 1, 0 }
  0x12   : > { %p2518_p5 = pneg %p2949_p3  ;;  %p2615_p8 = scmp.ne.s32.totalorder %s245_s10, %s2614_s19 }
  0x13   : > { %p2622_p11 = scmp.lt.s32.totalorder %s245_s10, %s245_s10  ;;  %p2623_p12 = scmp.lt.s32.totalorder %s2614_s19, %s2614_s19 }
  0x14   : > { %p2958_p6 = pnand %p2518_p5, %p3325_p1 }
  0x15   : > { %p2624_p13 = por %p2623_p12, %p2622_p11 }
  0x16   : > { %p2968_p7 = pneg %p2958_p6 }
  0x18   : > { %p2617_p9 = pnand %p2615_p8, %p2968_p7 }
  0x1a   : > { %p2618_p10 = pneg %p2617_p9 }
  0x1c   : > { %p2625_p0 = pnand %p2624_p13, %p2618_p10 }
  0x1e   : > { %2628 = shalt.err (!%p2625_p0)
}
  0x1f   : > { %s3334_s1 = sld [smem:[#allocation21_spill]]  ;;  %s2640_s22 = scalar_lea.vmem %s2962_s14, 6144 }
  0x20   : > { %p2641_p2 = scmp.ne.s32.totalorder %s2962_s14, %s2640_s22  ;;  %p2648_p9 = scmp.lt.s32.totalorder %s2962_s14, %s2962_s14 }
  0x21   : > { %p2649_p11 = scmp.lt.s32.totalorder %s2640_s22, %s2640_s22 }
  0x22   : > { %p2643_p5 = pnand %p2641_p2, %p2968_p7 }
  0x23   : > { %p2650_p10 = por %p2649_p11, %p2648_p9 }
  0x24   : > { %p2644_p8 = pneg %p2643_p5 }
  0x25   : > { %2521 = dma.hbm_to_vmem [thread:$0]  (!%p2958_p6), %s3334_s1, 64, %s245_s10, [#allocation7]  }
  0x26   : > { %p2651_p12 = pnand %p2650_p10, %p2644_p8 }
  0x28   : > { %2654 = shalt.err (!%p2651_p12)
}
  0x29   : > { %s3323_s23 = smov 128   ;;  %s3324_s24 = smov 8  }
  0x2a   : > { %2527 = dma.hbm_to_vmem [thread:$0]  (!%p2958_p6), %s3318_s4, 6144, %s2962_s14, [#allocation10], %s3323_s23, %s3323_s23, %s3324_s24  }
  0x2b   : > { %s2666_s9 = scalar_lea.vmem %s2964_s17, 6144  ;;  %p2674_p5 = scmp.lt.s32.totalorder %s2964_s17, %s2964_s17 }
  0x2c   : > { %p2667_p13 = scmp.ne.s32.totalorder %s2964_s17, %s2666_s9  ;;  %p2675_p8 = scmp.lt.s32.totalorder %s2666_s9, %s2666_s9 }
  0x2e   : > { %p2669_p0 = pnand %p2667_p13, %p2968_p7  ;;  %p2676_p9 = por %p2675_p8, %p2674_p5 }
  0x30   : > { %p2670_p2 = pneg %p2669_p0 }
  0x32   : > { %p2677_p11 = pnand %p2676_p9, %p2670_p2 }
  0x34   : > { %2680 = shalt.err (!%p2677_p11)
}
  0x35   : > { %2533 = dma.hbm_to_vmem [thread:$0]  (!%p2958_p6), %s3320_s6, 6144, %s2964_s17, [#allocation13], %s3323_s23, %s3323_s23, %s3324_s24  }
  0x36   : > { %s2870_s14 = smov [#allocation8]   ;;  %s2871_s19 = smov [#allocation11]  }
  0x37   : > { %s257_s16 = sshll.u32 %s2870_s14, 4  ;;  %s283_s20 = sshll.u32 %s2871_s19, 4  ;;  %s258_s16 = int_to_ptr.vmem [resolvable:$true] %s257_s16  ;;  %s284_s20 = int_to_ptr.vmem [resolvable:$true] %s283_s20 }
  0x38   : > { %s2692_s21 = scalar_lea.vmem %s258_s16, 2048  ;;  %p2700_p0 = scmp.lt.s32.totalorder %s258_s16, %s258_s16 }
  0x39   : > { %p2693_p10 = scmp.ne.s32.totalorder %s258_s16, %s2692_s21  ;;  %p2701_p2 = scmp.lt.s32.totalorder %s2692_s21, %s2692_s21 }
  0x3b   : > { %p2695_p12 = pnand %p2693_p10, %p2968_p7  ;;  %p2702_p5 = por %p2701_p2, %p2700_p0 }
  0x3d   : > { %p2696_p13 = pneg %p2695_p12 }
  0x3f   : > { %p2703_p8 = pnand %p2702_p5, %p2696_p13 }
  0x41   : > { %2706 = shalt.err (!%p2703_p8)
}
  0x42   : > { %s3335_s3 = sld [smem:[#allocation22_spill]]  ;;  %s2718_s25 = scalar_lea.vmem %s284_s20, 2048 }
  0x43   : > { %p2719_p9 = scmp.ne.s32.totalorder %s284_s20, %s2718_s25  ;;  %p2726_p12 = scmp.lt.s32.totalorder %s284_s20, %s284_s20 }
  0x44   : > { %p2727_p0 = scmp.lt.s32.totalorder %s2718_s25, %s2718_s25 }
  0x45   : > { %p2721_p11 = pnand %p2719_p9, %p2968_p7 }
  0x46   : > { %p2728_p13 = por %p2727_p0, %p2726_p12 }
  0x47   : > { %p2722_p10 = pneg %p2721_p11 }
  0x48   : > { %2524 = dma.hbm_to_vmem [thread:$0]  (!%p2958_p6), %s3335_s3, 2048, %s258_s16, [#allocation7], %s3323_s23, %s3323_s23, %s3324_s24  }
  0x49   : > { %p2729_p2 = pnand %p2728_p13, %p2722_p10 }
  0x4b   : > { %2732 = shalt.err (!%p2729_p2)
}
  0x4c   : > { %2530 = dma.hbm_to_vmem [thread:$0]  (!%p2958_p6), %s3319_s5, 2048, %s284_s20, [#allocation10], %s3323_s23, %s3323_s23, %s3324_s24  }
  0x4d   : > { %s2872_s10 = smov [#allocation14]  }
  0x4e   : > { %s309_s13 = sshll.u32 %s2872_s10, 4  ;;  %s310_s13 = int_to_ptr.vmem [resolvable:$true] %s309_s13 }
  0x4f   : > { %s2744_s14 = scalar_lea.vmem %s310_s13, 14336  ;;  %p2752_p11 = scmp.lt.s32.totalorder %s310_s13, %s310_s13 }
  0x50   : > { %p2745_p5 = scmp.ne.s32.totalorder %s310_s13, %s2744_s14  ;;  %p2753_p10 = scmp.lt.s32.totalorder %s2744_s14, %s2744_s14 }
  0x52   : > { %p2747_p8 = pnand %p2745_p5, %p2968_p7  ;;  %p2754_p12 = por %p2753_p10, %p2752_p11 }
  0x54   : > { %p2748_p9 = pneg %p2747_p8 }
  0x56   : > { %p2755_p0 = pnand %p2754_p12, %p2748_p9 }
  0x58   : > { %2758 = shalt.err (!%p2755_p0)
}
  0x59   : > { %2536 = dma.hbm_to_vmem [thread:$0]  (!%p2958_p6), %s3321_s7, 14336, %s310_s13, [#allocation13], %s3323_s23, %s3323_s23, %s3324_s24  }
  0x5a   : > { %s1935_s15 = sadd.s32 4294967294, %s2863_s30   ;;  %s3041_s18 = sadd.s32 1, %s2863_s30  }
  0x5b   : > { %s31_s20 = ssub.s32 %s2863_s30, %s3041_s18  ;;  %s34_s21 = sadd.s32 1, %s2859_s29 }
  0x5c   : > { %p32_p7 = scmp.eq.s32.totalorder %s31_s20, 0  ;;  %p41_p13 = scmp.ne.s32.totalorder %s2859_s29, %s2855_s28 }
  0x5d   : > { %p42_p2 = scmp.eq.s32.totalorder %s2863_s30, 0  ;;  %p47_p5 = scmp.ne.s32.totalorder %s2855_s28, %s2851_s27 }
  0x5e   : > { %s3052_s17 = scalar_select %p32_p7, %s2859_s29, %s34_s21  }
  0x5f   : > { %p3054_p8 = por %p42_p2, %p41_p13  ;;  %p3060_p6 = por %p3325_p1, %p47_p5 }
  0x60   : > { %p218_p9 = scmp.eq.s32.totalorder %s2944_s11, 1  ;;  %p224_p11 = scmp.eq.s32.totalorder %s1935_s15, 1 }
  0x61   : > { %s3337_s25 = scalar_select %p3060_p6, 1, 0 }
  0x62   : > { %p2551_p10 = scmp.lt.s32.totalorder %s2863_s30, 2  ;;  %s323_s26 = sand.u32 1, %s2859_s29  }
  0x63   : > { %p3067_p12 = por %p218_p9, %p41_p13  ;;  %p3071_p0 = por %p224_p11, %p47_p5 }
  0x64   : > { %s1944_s13 = sshll.u32 %s323_s26, 5  ;;  %s1978_s14 = sshll.u32 %s2863_s30, 9 }
  0x65   : > { %s3338_s9 = scalar_select %p3067_p12, 1, 0 }
  0x66   : > { %s3339_s10 = scalar_select %p3071_p0, 1, 0 }
  0x67   : > { %s3079_s20 = scalar_lea.hbm %s3314_s0, %s1978_s14  ;;  %s327_s15 = scalar_lea.vmem [#allocation3], %s1944_s13 }
  0x68   : > { %s334_s21 = sshll.u32 %s327_s15, 4  ;;  %p3085_p7 = pnand %p2551_p10, %p3054_p8  ;;  %s3081_s21 = int_to_ptr.vmem [resolvable:$true] %s334_s21 }
  0x69   : > { %s3089_s24 = scalar_lea.sflag [#allocation4], %s323_s26  ;;  %s2759_s1 = scalar_lea.hbm %s3079_s20, 512 }
  0x6a   : > { %p2760_p13 = scmp.ne.s32.totalorder %s3079_s20, %s2759_s1  ;;  %p2761_p2 = pneg %p3085_p7 }
  0x6b   : > { %s2764_s13 = scalar_lea.hbm %s3314_s0, 1024  ;;  %p2765_p8 = scmp.lt.s32.totalorder %s3079_s20, %s3314_s0 }
  0x6c   : > { %p2762_p5 = pnand %p2761_p2, %p2760_p13  ;;  %p2766_p11 = scmp.lt.s32.totalorder %s2764_s13, %s2759_s1 }
  0x6e   : > { %p2763_p9 = pneg %p2762_p5  ;;  %p2767_p10 = por %p2766_p11, %p2765_p8 }
  0x70   : > { %p2768_p4 = pnand %p2767_p10, %p2763_p9 }
  0x72   : > { %2771 = shalt.err (!%p2768_p4)
}
  0x73   : > { %s2772_s22 = scalar_lea.vmem %s3081_s21, 512  ;;  %s2873_s26 = smov [#allocation3]  }
  0x74   : > { %p2773_p1 = scmp.ne.s32.totalorder %s3081_s21, %s2772_s22  ;;  %s2777_s3 = sshll.u32 %s2873_s26, 4  ;;  %s2778_s3 = int_to_ptr.vmem [resolvable:$false] %s2777_s3 }
  0x75   : > { %s2779_s14 = scalar_lea.vmem %s2778_s3, 1024  ;;  %p2780_p5 = scmp.lt.s32.totalorder %s3081_s21, %s2778_s3 }
  0x76   : > { %p2775_p0 = pnand %p2773_p1, %p2761_p2  ;;  %p2781_p12 = scmp.lt.s32.totalorder %s2779_s14, %s2772_s22 }
  0x78   : > { %p2776_p13 = pneg %p2775_p0  ;;  %p2782_p6 = por %p2781_p12, %p2780_p5 }
  0x7a   : > { %p2783_p3 = pnand %p2782_p6, %p2776_p13 }
  0x7c   : > { %2786 = shalt.err (!%p2783_p3)
}
  0x7d   : > { %s3341_s1 = smov 8   ;;  %s3342_s16 = smov 128  }
  0x7e   : > { %2540 = dma.hbm_to_vmem [thread:$0]  (!%p3085_p7), %s3079_s20, 512, %s3081_s21, %s3089_s24, %s3342_s16, %s3342_s16, %s3341_s1  }
  0x7f   : > { %p3343_p1 = scmp.ne.s32.totalorder %s3331_s12, 0 }
  0x80   : > { %s3116_s13 = sand.u32 (!%p3343_p1), 1, %s2855_s28   ;;  %p3344_p3 = scmp.ne.s32.totalorder (!%p3343_p1), %s3337_s25, 0 }
  0x81   : > { %346 = sbr.rel (%p3343_p1) target bundleno = 1288 (0x508), region = 52  ;;  %s1948_s3 = sshll.u32 (!%p3343_p1), %s3116_s13, 5 }
  0x82   : > { %s349_s19 = scalar_lea.sflag (!%p3343_p1), [#allocation4], %s3116_s13  ;;  %s3122_s23 = scalar_lea.vmem (!%p3343_p1), [#allocation3], %s1948_s3 }
  0x86   : > { %2830 = dma.done.wait (%p3344_p3), %s349_s19, 512  }
  0x87   : > { %2832 = vsyncadd (%p3344_p3), %s349_s19, 4294966784  ;;  %p3345_p4 = scmp.eq.s32.totalorder %s2944_s11, 0 }
  0x89   : > { %2834 = dma.done.wait (%p3345_p4), [#allocation7], 2112   ;;  %p3346_p6 = pmov %p3345_p4 }
  0x8a   : > { %p3347_p12 = pmov %p3345_p4 }
  0x8b   : > { %2836 = vsyncadd (%p3346_p6), [#allocation7], 4294965184 }
  0x8c   : > { %2838 = dma.done.wait (%p3347_p12), [#allocation10], 8192   ;;  %p3348_p0 = pmov %p3345_p4 }
  0x8e   : > { %2840 = vsyncadd (%p3348_p0), [#allocation10], 4294959104  ;;  %p3349_p7 = pmov %p3348_p0 }
  0x8f   : > { %p3350_p2 = pmov %p3348_p0 }
  0x90   : > { %2842 = dma.done.wait (%p3349_p7), [#allocation13], 20480  }
  0x91   : > { %2844 = vsyncadd (%p3350_p2), [#allocation13], 4294946816  ;;  %v2874_v0 = vmov 0.0   ;;  %v511_v1 = vld [vmem:[#allocation8 + $0x78] sm:$0xff]  ;;  %v510_v2 = vld [vmem:[#allocation8 + $0x70] sm:$0xff]  ;;  %s408_s25 = scalar_lea.vmem [#allocation15], %s1948_s3 }
  0x92   : > { %411 = vst [vmem:[#allocation2] sm:$0xff] %v2874_v0  ;;  %416 = vst [vmem:[#allocation2 + $0x28] sm:$0xff] %v2874_v0  ;;  %2300 = vmatprep.subr.mxu0 %v511_v1  ;;  %v509_v3 = vld [vmem:[#allocation8 + $0x68] sm:$0xff]  ;;  %v508_v4 = vld [vmem:[#allocation8 + $0x60] sm:$0xff]  ;;  %s1805_s20 = sshll.u32 %s408_s25, 4  ;;  %s1979_s21 = sshll.u32 %s2944_s11, 9  ;;  %s3266_s20 = int_to_ptr.vmem [resolvable:$true] %s1805_s20 }
  0x93   : > { %2301 = vmatpush3.msra.mxu0 %v511_v1  ;;  %v3143_v5 = vld [vmem:[%s3122_s23] sm:$0xff]  ;;  %v506_v12 = vld [vmem:[#allocation8 + $0x50] sm:$0xff]  ;;  %v505_v16 = vld [vmem:[#allocation8 + $0x48] sm:$0xff]  ;;  %s3271_s26 = scalar_lea.hbm %s3322_s8, %s1979_s21  ;;  %s1792_s14 = scalar_lea.sflag [#allocation5], %s3116_s13 }
  0x94   : > { %2302 = vmatprep.subr.mxu0 %v510_v2  ;;  %v3145_v6 = vld [vmem:[#allocation6] ss:$0 sm:$0xff]  ;;  %v3147_v8 = vld [vmem:[#allocation6 + $0x1] ss:$0 sm:$0xff]  ;;  %v675_v14 = vld [vmem:[#allocation9 + $0xf0] sm:$0xff]  ;;  %s2787_s1 = scalar_lea.vmem %s3266_s20, 512 }
  0x95   : > { %2303 = vmatpush3.msra.mxu0 %v510_v2  ;;  %v507_v7 = vld [vmem:[#allocation8 + $0x58] sm:$0xff]  ;;  %v480_v9 = vmul.f32 %v3145_v6, %v3143_v5  ;;  %v659_v15 = vld [vmem:[#allocation9 + $0x70] sm:$0xff]  ;;  %v674_v18 = vld [vmem:[#allocation9 + $0xe8] sm:$0xff]  ;;  %p2788_p9 = scmp.ne.s32.totalorder %s3266_s20, %s2787_s1  ;;  %p3351_p8 = scmp.ne.s32.totalorder %s3338_s9, 0 }
  0x96   : > { %2304 = vmatprep.subr.mxu0 %v509_v3  ;;  %v676_v10 = vld [vmem:[#allocation9 + $0xf8] sm:$0xff]  ;;  %v658_v19 = vld [vmem:[#allocation9 + $0x68] sm:$0xff]  ;;  %v504_v20 = vld [vmem:[#allocation8 + $0x40] sm:$0xff]  ;;  %s2875_s11 = smov [#allocation15]  }
  0x97   : > { %2305 = vmatpush3.msra.mxu0 %v509_v3  ;;  %v660_v11 = vld [vmem:[#allocation9 + $0x78] sm:$0xff]  ;;  %v488_v13 = vadd.f32 %v3147_v8, %v480_v9  ;;  %2000 = vmatprep.subr.mxu1 %v676_v10  ;;  %v673_v21 = vld [vmem:[#allocation9 + $0xe0] sm:$0xff]  ;;  %v502_v26 = vld [vmem:[#allocation8 + $0x30] sm:$0xff]  ;;  %p2789_p11 = pnand %p2788_p9, %p3351_p8  ;;  %s2791_s16 = sshll.u32 %s2875_s11, 4  ;;  %s2792_s16 = int_to_ptr.vmem [resolvable:$false] %s2791_s16 }
  0x98   : > { %2306 = vmatprep.subr.mxu0 %v508_v4  ;;  %2001 = vmatpush3.msra.mxu1 %v660_v11  ;;  %v657_v22 = vld [vmem:[#allocation9 + $0x60] sm:$0xff]  ;;  %v503_v23 = vld [vmem:[#allocation8 + $0x38] sm:$0xff]  ;;  %v671_v27 = vld [vmem:[#allocation9 + $0xd0] sm:$0xff]  ;;  %s2793_s3 = scalar_lea.vmem %s2792_s16, 1024  ;;  %p2794_p13 = scmp.lt.s32.totalorder %s3266_s20, %s2792_s16 }
  0x99   : > { %2307 = vmatpush3.msra.mxu0 %v508_v4  ;;  %v492_v17 = vmax.f32 %v488_v13, 0.0  ;;  %2002 = vmatprep.subr.mxu1 %v675_v14  ;;  %v672_v24 = vld [vmem:[#allocation9 + $0xd8] sm:$0xff]  ;;  %v655_v28 = vld [vmem:[#allocation9 + $0x50] sm:$0xff]  ;;  %v501_v29 = vld [vmem:[#allocation8 + $0x28] sm:$0xff]  ;;  %p2790_p10 = pneg %p2789_p11  ;;  %p2795_p5 = scmp.lt.s32.totalorder %s2793_s3, %s2787_s1 }
  0x9a   : > { %2308 = vmatprep.subr.mxu0 %v507_v7  ;;  %2003 = vmatpush3.msra.mxu1 %v659_v15  ;;  %v656_v25 = vld [vmem:[#allocation9 + $0x58] sm:$0xff]  ;;  %v3153_v30 = vld [vmem:[%s3122_s23 + $0x8] sm:$0xff]  ;;  %v3156_v32 = vld [vmem:[%s3122_s23 + $0x10] sm:$0xff] }
  0x9b   : > { %2309 = vmatpush3.msra.mxu0 %v507_v7  ;;  %2332 = vmatprep.mubr.f32.mxu0 %v492_v17  ;;  %v670_v31 = vld [vmem:[#allocation9 + $0xc8] sm:$0xff]  ;;  %v500_v34 = vld [vmem:[#allocation8 + $0x20] sm:$0xff]  ;;  %v481_v36 = vmul.f32 %v3145_v6, %v3153_v30  ;;  %v499_v38 = vld [vmem:[#allocation8 + $0x18] sm:$0xff]  ;;  %v482_v39 = vmul.f32 %v3145_v6, %v3156_v32  ;;  %p2796_p1 = por %p2795_p5, %p2794_p13 }
  0x9c   : > { %2310 = vmatprep.subr.mxu0 %v506_v12  ;;  %2004 = vmatprep.subr.mxu1 %v674_v18  ;;  %v654_v33 = vld [vmem:[#allocation9 + $0x48] sm:$0xff]  ;;  %v669_v35 = vld [vmem:[#allocation9 + $0xc0] sm:$0xff]  ;;  %v3163_v40 = vld [vmem:[%s3122_s23 + $0x18] sm:$0xff] }
  0x9d   : > { %2311 = vmatpush3.msra.mxu0 %v506_v12  ;;  %2005 = vmatpush3.msra.mxu1 %v658_v19  ;;  %v653_v37 = vld [vmem:[#allocation9 + $0x40] sm:$0xff]  ;;  %v668_v41 = vld [vmem:[#allocation9 + $0xb8] sm:$0xff]  ;;  %v498_v42 = vld [vmem:[#allocation8 + $0x10] sm:$0xff]  ;;  %v489_v43 = vadd.f32 %v3147_v8, %v481_v36  ;;  %v483_v44 = vmul.f32 %v3145_v6, %v3163_v40  ;;  %v490_v46 = vadd.f32 %v3147_v8, %v482_v39  ;;  %p2797_p3 = pnand %p2796_p1, %p2790_p10 }
  0x9e   : > { %2312 = vmatprep.subr.mxu0 %v505_v16  ;;  %2006 = vmatprep.subr.mxu1 %v673_v21  ;;  %v497_v45 = vld [vmem:[#allocation8 + $0x8] sm:$0xff]  ;;  %v496_v47 = vld [vmem:[#allocation8] sm:$0xff]  ;;  %v692_v51 = vld [vmem:[#allocation9 + $0x178] sm:$0xff] }
  0x9f   : > { %2313 = vmatpush3.msra.mxu0 %v505_v16  ;;  %2007 = vmatpush3.msra.mxu1 %v657_v22  ;;  %v493_v48 = vmax.f32 %v489_v43, 0.0  ;;  %v491_v49 = vadd.f32 %v3147_v8, %v483_v44  ;;  %v494_v50 = vmax.f32 %v490_v46, 0.0  ;;  %v691_v52 = vld [vmem:[#allocation9 + $0x170] sm:$0xff]  ;;  %v690_v54 = vld [vmem:[#allocation9 + $0x168] sm:$0xff]  ;;  %v689_v55 = vld [vmem:[#allocation9 + $0x160] sm:$0xff]  ;;  %v417_v22 = vlaneseq }
  0xa0   : > { %2314 = vmatprep.subr.mxu0 %v504_v20  ;;  %2008 = vmatprep.subr.mxu1 %v672_v24  ;;  %v688_v56 = vld [vmem:[#allocation9 + $0x158] sm:$0xff]  ;;  %v687_v57 = vld [vmem:[#allocation9 + $0x150] sm:$0xff]  ;;  %v686_v58 = vld [vmem:[#allocation9 + $0x148] sm:$0xff] }
  0xa1   : > { %2315 = vmatpush3.msra.mxu0 %v504_v20  ;;  %2009 = vmatpush3.msra.mxu1 %v656_v25  ;;  %v495_v53 = vmax.f32 %v491_v49, 0.0  ;;  %v652_v59 = vld [vmem:[#allocation9 + $0x38] sm:$0xff]  ;;  %v667_v60 = vld [vmem:[#allocation9 + $0xb0] sm:$0xff]  ;;  %v685_v61 = vld [vmem:[#allocation9 + $0x140] sm:$0xff] }
  0xa2   : > { %2316 = vmatprep.subr.mxu0 %v503_v23  ;;  %2010 = vmatprep.subr.mxu1 %v671_v27  ;;  %v651_v62 = vld [vmem:[#allocation9 + $0x30] sm:$0xff]  ;;  %v666_v63 = vld [vmem:[#allocation9 + $0xa8] sm:$0xff]  ;;  %v684_v1 = vld [vmem:[#allocation9 + $0x138] sm:$0xff] }
  0xa3   : > { %2317 = vmatpush3.msra.mxu0 %v503_v23  ;;  %2011 = vmatpush3.msra.mxu1 %v655_v28  ;;  %v650_v2 = vld [vmem:[#allocation9 + $0x28] sm:$0xff]  ;;  %v665_v3 = vld [vmem:[#allocation9 + $0xa0] sm:$0xff]  ;;  %v683_v4 = vld [vmem:[#allocation9 + $0x130] sm:$0xff]  ;;  %v418_v23 = vshrl.u32 %v417_v22, 7 }
  0xa4   : > { %2318 = vmatprep.subr.mxu0 %v502_v26  ;;  %2012 = vmatprep.subr.mxu1 %v670_v31  ;;  %v649_v6 = vld [vmem:[#allocation9 + $0x20] sm:$0xff]  ;;  %v664_v7 = vld [vmem:[#allocation9 + $0x98] sm:$0xff]  ;;  %v682_v8 = vld [vmem:[#allocation9 + $0x128] sm:$0xff] }
  0xa5   : > { %2319 = vmatpush3.msra.mxu0 %v502_v26  ;;  %2013 = vmatpush3.msra.mxu1 %v654_v33  ;;  %v648_v9 = vld [vmem:[#allocation9 + $0x18] sm:$0xff]  ;;  %v663_v10 = vld [vmem:[#allocation9 + $0x90] sm:$0xff]  ;;  %v681_v11 = vld [vmem:[#allocation9 + $0x120] sm:$0xff]  ;;  %v3170_v27 = vand.u32 15, %v418_v23 }
  0xa6   : > { %2320 = vmatprep.subr.mxu0 %v501_v29  ;;  %2014 = vmatprep.subr.mxu1 %v669_v35  ;;  %v647_v12 = vld [vmem:[#allocation9 + $0x10] sm:$0xff]  ;;  %v662_v13 = vld [vmem:[#allocation9 + $0x88] sm:$0xff]  ;;  %v680_v14 = vld [vmem:[#allocation9 + $0x118] sm:$0xff] }
  0xa7   : > { %2321 = vmatpush3.msra.mxu0 %v501_v29  ;;  %2015 = vmatpush3.msra.mxu1 %v653_v37  ;;  %v646_v15 = vld [vmem:[#allocation9 + $0x8] sm:$0xff]  ;;  %v661_v16 = vld [vmem:[#allocation9 + $0x80] sm:$0xff]  ;;  %v679_v17 = vld [vmem:[#allocation9 + $0x110] sm:$0xff]  ;;  %v419_v29 = vadd.s32 8, %v418_v23  ;;  %vm609_vm0 = vcmp.ge.s32.totalorder %v3170_v27, 1  ;;  %v420_v37 = vadd.s32 16, %v418_v23 }
  0xa8   : > { %2322 = vmatprep.subr.mxu0 %v500_v34  ;;  %2016 = vmatprep.subr.mxu1 %v668_v41  ;;  %v645_v18 = vld [vmem:[#allocation9] sm:$0xff]  ;;  %v678_v19 = vld [vmem:[#allocation9 + $0x108] sm:$0xff]  ;;  %v900_v21 = vld [vmem:[#allocation11 + $0x78] sm:$0xff]  ;;  %v3176_v39 = vsel %vm609_vm0, 1.0, %v2874_v0  ;;  %vm998_vm4 = vcmp.ge.s32.totalorder %v3170_v27, 2  ;;  %vm1260_vm8 = vcmp.ge.s32.totalorder %v3170_v27, 3 }
  0xa9   : > { %2323 = vmatpush3.msra.mxu0 %v500_v34  ;;  %2017 = vmatpush3.msra.mxu1 %v652_v59  ;;  %v677_v20 = vld [vmem:[#allocation9 + $0x100] sm:$0xff]  ;;  %v3173_v36 = vand.u32 15, %v419_v29  ;;  %v3179_v41 = vand.u32 15, %v420_v37  ;;  %v1060_v22 = vld [vmem:[#allocation12 + $0xd0] sm:$0xff]  ;;  %v1057_v29 = vld [vmem:[#allocation12 + $0xb8] sm:$0xff] }
  0xaa   : > { %2324 = vmatprep.subr.mxu0 %v499_v38  ;;  %2018 = vmatprep.subr.mxu1 %v667_v60  ;;  %v897_v59 = vld [vmem:[#allocation11 + $0x60] sm:$0xff]  ;;  %v896_v60 = vld [vmem:[#allocation11 + $0x58] sm:$0xff]  ;;  %v1438_v27 = vld [vmem:[#allocation14 + $0x370] sm:$0xff] }
  0xab   : > { %2325 = vmatpush3.msra.mxu0 %v499_v38  ;;  %2019 = vmatpush3.msra.mxu1 %v651_v62  ;;  %v421_v38 = vadd.s32 24, %v418_v23  ;;  %vm630_vm1 = vcmp.lt.s32.totalorder %v3173_v36, 15  ;;  %vm611_vm2 = vcmp.ge.s32.totalorder %v3179_v41, 1  ;;  %v895_v62 = vld [vmem:[#allocation11 + $0x50] sm:$0xff]  ;;  %vm1000_vm5 = vcmp.ge.s32.totalorder %v3179_v41, 2 }
  0xac   : > { %2326 = vmatprep.subr.mxu0 %v498_v42  ;;  %2020 = vmatprep.subr.mxu1 %v666_v63  ;;  %v3185_v46 = vsel %vm630_vm1, 1.0, %v2874_v0  ;;  %v894_v63 = vld [vmem:[#allocation11 + $0x48] sm:$0xff]  ;;  %v1044_v23 = vld [vmem:[#allocation12 + $0x50] sm:$0xff]  ;;  %vm1019_vm6 = vcmp.lt.s32.totalorder %v3173_v36, 14  ;;  %vm1262_vm9 = vcmp.ge.s32.totalorder %v3179_v41, 3  ;;  %v1419_v41 = vld [vmem:[#allocation14 + $0x2d8] sm:$0xff] }
  0xad   : > { %2327 = vmatpush3.msra.mxu0 %v498_v42  ;;  %2021 = vmatpush3.msra.mxu1 %v650_v2  ;;  %v3181_v42 = vand.u32 15, %v421_v38  ;;  %v892_v2 = vld [vmem:[#allocation11 + $0x38] sm:$0xff]  ;;  %vm1313_vm10 = vcmp.lt.s32.totalorder %v3173_v36, 13  ;;  %v1392_v36 = vld [vmem:[#allocation14 + $0x200] sm:$0xff] }
  0xae   : > { %2328 = vmatprep.subr.mxu0 %v497_v45  ;;  %2022 = vmatprep.subr.mxu1 %v665_v3  ;;  %v891_v3 = vld [vmem:[#allocation11 + $0x30] sm:$0xff] }
  0xaf   : > { %2329 = vmatpush3.msra.mxu0 %v497_v45  ;;  %2023 = vmatpush3.msra.mxu1 %v649_v6  ;;  %vm632_vm3 = vcmp.lt.s32.totalorder %v3181_v42, 15  ;;  %v889_v6 = vld [vmem:[#allocation11 + $0x20] sm:$0xff]  ;;  %vm1021_vm7 = vcmp.lt.s32.totalorder %v3181_v42, 14  ;;  %vm1315_vm11 = vcmp.lt.s32.totalorder %v3181_v42, 13 }
  0xb0   : > { %2330 = vmatprep.subr.mxu0 %v496_v47  ;;  %2024 = vmatprep.subr.mxu1 %v664_v7  ;;  %v888_v7 = vld [vmem:[#allocation11 + $0x18] sm:$0xff] }
  0xb1   : > { %2331 = vmatpush3.msra.mxu0 %v496_v47  ;;  %2025 = vmatpush3.msra.mxu1 %v648_v9  ;;  %v899_v47 = vld [vmem:[#allocation11 + $0x70] sm:$0xff]  ;;  %v886_v9 = vld [vmem:[#allocation11 + $0x8] sm:$0xff] }
  0xb2   : > { %2333 = vmatmul.mubr.f32.vlgmr.msra.gmra.mxu0 %v493_v48  ;;  %2338 = vmatprep.subr.mxu0 %v692_v51 }
  0xb3   : > { %2335 = vmatprep.mubr.f32.mxu0 %v494_v50  ;;  %2339 = vmatpush3.msra.mxu0 %v692_v51  ;;  %v898_v51 = vld [vmem:[#allocation11 + $0x68] sm:$0xff] }
  0xb4   : > { %2340 = vmatprep.subr.mxu0 %v691_v52  ;;  %2026 = vmatprep.subr.mxu1 %v663_v10  ;;  %v885_v10 = vld [vmem:[#allocation11] sm:$0xff] }
  0xb5   : > { %2341 = vmatpush3.msra.mxu0 %v691_v52  ;;  %2027 = vmatpush3.msra.mxu1 %v647_v12  ;;  %v1049_v12 = vld [vmem:[#allocation12 + $0x78] sm:$0xff] }
  0xb6   : > { %2336 = vmatmul.mubr.f32.gmra.mxu0 %v495_v53  ;;  %2342 = vmatprep.subr.mxu0 %v690_v54 }
  0xb7   : > { %2343 = vmatpush3.msra.mxu0 %v690_v54  ;;  %2028 = vmatprep.subr.mxu1 %v662_v13  ;;  %v3191_v54 = vsel %vm611_vm2, 1.0, %v2874_v0  ;;  %v1064_v13 = vld [vmem:[#allocation12 + $0xf0] sm:$0xff] }
  0xb8   : > { %2344 = vmatprep.subr.mxu0 %v689_v55  ;;  %2029 = vmatpush3.msra.mxu1 %v646_v15  ;;  %v1063_v15 = vld [vmem:[#allocation12 + $0xe8] sm:$0xff] }
  0xb9   : > { %2345 = vmatpush3.msra.mxu0 %v689_v55  ;;  %2030 = vmatprep.subr.mxu1 %v661_v16  ;;  %v1047_v16 = vld [vmem:[#allocation12 + $0x68] sm:$0xff] }
  0xba   : > { %2346 = vmatprep.subr.mxu0 %v688_v56  ;;  %2031 = vmatpush3.msra.mxu1 %v645_v18  ;;  %v1062_v18 = vld [vmem:[#allocation12 + $0xe0] sm:$0xff] }
  0xbb   : > { %2347 = vmatpush3.msra.mxu0 %v688_v56  ;;  %2376 = vmatprep.subr.mxu1 %v900_v21  ;;  %v3194_v56 = vsel %vm632_vm3, 1.0, %v2874_v0 }
  0xbc   : > { %2348 = vmatprep.subr.mxu0 %v687_v57 }
  0xbd   : > { %2349 = vmatpush3.msra.mxu0 %v687_v57 }
  0xbe   : > { %2350 = vmatprep.subr.mxu0 %v686_v58 }
  0xbf   : > { %2351 = vmatpush3.msra.mxu0 %v686_v58 }
  0xc0   : > { %2352 = vmatprep.subr.mxu0 %v685_v61 }
  0xc1   : > { %2353 = vmatpush3.msra.mxu0 %v685_v61 }
  0xc2   : > { %2354 = vmatprep.subr.mxu0 %v684_v1 }
  0xc3   : > { %2355 = vmatpush3.msra.mxu0 %v684_v1  ;;  %v893_v1 = vld [vmem:[#allocation11 + $0x40] sm:$0xff] }
  0xc4   : > { %2356 = vmatprep.subr.mxu0 %v683_v4 }
  0xc5   : > { %2357 = vmatpush3.msra.mxu0 %v683_v4  ;;  %v890_v4 = vld [vmem:[#allocation11 + $0x28] sm:$0xff] }
  0xc6   : > { %2358 = vmatprep.subr.mxu0 %v682_v8 }
  0xc7   : > { %2359 = vmatpush3.msra.mxu0 %v682_v8  ;;  %v887_v8 = vld [vmem:[#allocation11 + $0x10] sm:$0xff] }
  0xc8   : > { %2360 = vmatprep.subr.mxu0 %v681_v11 }
  0xc9   : > { %2361 = vmatpush3.msra.mxu0 %v681_v11  ;;  %v1065_v11 = vld [vmem:[#allocation12 + $0xf8] sm:$0xff] }
  0xca   : > { %2362 = vmatprep.subr.mxu0 %v680_v14 }
  0xcb   : > { %2363 = vmatpush3.msra.mxu0 %v680_v14  ;;  %v1048_v14 = vld [vmem:[#allocation12 + $0x70] sm:$0xff] }
  0xcc   : > { %2364 = vmatprep.subr.mxu0 %v679_v17 }
  0xcd   : > { %2365 = vmatpush3.msra.mxu0 %v679_v17  ;;  %v3198_v17 = vld [vmem:[#allocation12 + $0x178] sm:$0xff] }
  0xce   : > { %2366 = vmatprep.subr.mxu0 %v678_v19 }
  0xcf   : > { %2367 = vmatpush3.msra.mxu0 %v678_v19  ;;  %v1046_v19 = vld [vmem:[#allocation12 + $0x60] sm:$0xff] }
  0xd0   : > { %2368 = vmatprep.subr.mxu0 %v677_v20 }
  0xd1   : > { %2369 = vmatpush3.msra.mxu0 %v677_v20  ;;  %v1061_v20 = vld [vmem:[#allocation12 + $0xd8] sm:$0xff] }
  0xd2   : > { %2084 = vmatprep.subr.mxu0 %v1065_v11 }
 0x172   : > { %v2334_v24 = vpop.f32.mrf.mxu0 }
 0x173   : > { %v598_v25 = vmax.f32 %v2334_v24, 0.0  ;;  %v1059_v24 = vld [vmem:[#allocation12 + $0xc8] sm:$0xff] }
 0x174   : > { %v578_v26 = vpop.f32.mrf.mxu0 }
 0x175   : > { %602 = vst [vmem:[#allocation2 + $0x10] sm:$0xff] %v598_v25  ;;  %v597_v28 = vmax.f32 %v578_v26, 0.0  ;;  %v1058_v26 = vld [vmem:[#allocation12 + $0xc0] sm:$0xff] }
 0x176   : > { %v2337_v31 = vpop.f32.mrf.mxu0 }
 0x177   : > { %601 = vst [vmem:[#allocation2 + $0x8] sm:$0xff] %v597_v28  ;;  %v600_v33 = vmax.f32 %v2337_v31, 0.0  ;;  %757 = vmatprep.mubr.f32.mxu1 %v597_v28  ;;  %v1042_v28 = vld [vmem:[#allocation12 + $0x40] sm:$0xff] }
 0x178   : > { %v588_v34 = vpop.f32.mrf.mxu0 }
 0x179   : > { %604 = vst [vmem:[#allocation2 + $0x20] sm:$0xff] %v600_v33  ;;  %v599_v35 = vmax.f32 %v588_v34, 0.0 }
 0x17b   : > { %603 = vst [vmem:[#allocation2 + $0x18] sm:$0xff] %v599_v35 }
 0x17e   : > { %v625_v43 = vld [vmem:[#allocation2 + $0x9] sm:$0xff] }
 0x17f   : > { %v605_v44 = vld [vmem:[#allocation2 + $0x7] sm:$0xff]  ;;  %2370 = vmatprep.mubr.f32.mxu0 %v625_v43  ;;  %v606_v52 = vld [vmem:[#allocation2 + $0xf] sm:$0xff] }
 0x180   : > { %v621_v45 = vmul.f32 %v3176_v39, %v605_v44  ;;  %v628_v55 = vld [vmem:[#allocation2 + $0x21] sm:$0xff]  ;;  %v1962_v44 = vld [vmem:[#allocation6 + $0x2] ss:$0 sm:$0xff] }
 0x181   : > { %v644_v58 = vmul.f32 %v3194_v56, %v628_v55 }
 0x182   : > { %758 = vmatmul.mubr.f32.vlgmr.msra.gmra.mxu1 %v621_v45  ;;  %v626_v48 = vld [vmem:[#allocation2 + $0x11] sm:$0xff]  ;;  %v627_v50 = vld [vmem:[#allocation2 + $0x19] sm:$0xff] }
 0x183   : > { %762 = vmatprep.mubr.f32.mxu1 %v598_v25  ;;  %2377 = vmatpush3.msra.mxu1 %v900_v21  ;;  %v642_v49 = vmul.f32 %v3185_v46, %v626_v48  ;;  %v607_v53 = vld [vmem:[#allocation2 + $0x17] sm:$0xff]  ;;  %v608_v61 = vld [vmem:[#allocation2 + $0x1f] sm:$0xff]  ;;  %v1045_v21 = vld [vmem:[#allocation12 + $0x58] sm:$0xff] }
 0x184   : > { %2378 = vmatprep.subr.mxu1 %v899_v47  ;;  %v623_v57 = vmul.f32 %v3191_v54, %v607_v53  ;;  %v1043_v25 = vld [vmem:[#allocation12 + $0x48] sm:$0xff] }
 0x185   : > { %2379 = vmatpush3.msra.mxu1 %v899_v47  ;;  %2371 = vmatmul.mubr.f32.vlgmr.msra.gmra.mxu0 %v642_v49  ;;  %v1963_v49 = vld [vmem:[#allocation6 + $0x3] ss:$0 sm:$0xff] }
 0x186   : > { %763 = vmatmul.mubr.f32.gmra.mxu1 %v606_v52  ;;  %2373 = vmatprep.mubr.f32.mxu0 %v627_v50 }
 0x187   : > { %767 = vmatprep.mubr.f32.mxu1 %v599_v35  ;;  %2380 = vmatprep.subr.mxu1 %v898_v51 }
 0x188   : > { %2381 = vmatpush3.msra.mxu1 %v898_v51  ;;  %2085 = vmatpush3.msra.mxu0 %v1049_v12 }
 0x189   : > { %2374 = vmatmul.mubr.f32.gmra.mxu0 %v644_v58  ;;  %2382 = vmatprep.subr.mxu1 %v897_v59 }
 0x18a   : > { %768 = vmatmul.mubr.f32.gmra.mxu1 %v623_v57  ;;  %2086 = vmatprep.subr.mxu0 %v1064_v13  ;;  %v1078_v13 = vld [vmem:[#allocation12 + $0x160] sm:$0xff] }
 0x18b   : > { %772 = vmatprep.mubr.f32.mxu1 %v600_v33  ;;  %2383 = vmatpush3.msra.mxu1 %v897_v59 }
 0x18c   : > { %2384 = vmatprep.subr.mxu1 %v896_v60  ;;  %2087 = vmatpush3.msra.mxu0 %v1048_v14 }
 0x18d   : > { %2385 = vmatpush3.msra.mxu1 %v896_v60  ;;  %2088 = vmatprep.subr.mxu0 %v1063_v15  ;;  %v1077_v15 = vld [vmem:[#allocation12 + $0x158] sm:$0xff] }
 0x18e   : > { %773 = vmatmul.mubr.f32.gmra.mxu1 %v608_v61  ;;  %2386 = vmatprep.subr.mxu1 %v895_v62 }
 0x18f   : > { %2387 = vmatpush3.msra.mxu1 %v895_v62  ;;  %2089 = vmatpush3.msra.mxu0 %v1047_v16  ;;  %v1041_v16 = vld [vmem:[#allocation12 + $0x38] sm:$0xff] }
 0x190   : > { %2388 = vmatprep.subr.mxu1 %v894_v63  ;;  %2090 = vmatprep.subr.mxu0 %v1062_v18  ;;  %v1076_v18 = vld [vmem:[#allocation12 + $0x150] sm:$0xff] }
 0x191   : > { %2389 = vmatpush3.msra.mxu1 %v894_v63  ;;  %2091 = vmatpush3.msra.mxu0 %v1046_v19  ;;  %v1040_v19 = vld [vmem:[#allocation12 + $0x30] sm:$0xff] }
 0x192   : > { %2390 = vmatprep.subr.mxu1 %v893_v1  ;;  %2092 = vmatprep.subr.mxu0 %v1061_v20  ;;  %v1055_v20 = vld [vmem:[#allocation12 + $0xa8] sm:$0xff] }
 0x193   : > { %2391 = vmatpush3.msra.mxu1 %v893_v1  ;;  %2093 = vmatpush3.msra.mxu0 %v1045_v21  ;;  %v1075_v21 = vld [vmem:[#allocation12 + $0x148] sm:$0xff] }
 0x194   : > { %2392 = vmatprep.subr.mxu1 %v892_v2  ;;  %2094 = vmatprep.subr.mxu0 %v1060_v22  ;;  %v1039_v22 = vld [vmem:[#allocation12 + $0x28] sm:$0xff] }
 0x195   : > { %2393 = vmatpush3.msra.mxu1 %v892_v2  ;;  %2095 = vmatpush3.msra.mxu0 %v1044_v23  ;;  %v1054_v23 = vld [vmem:[#allocation12 + $0xa0] sm:$0xff] }
 0x196   : > { %2394 = vmatprep.subr.mxu1 %v891_v3  ;;  %2096 = vmatprep.subr.mxu0 %v1059_v24  ;;  %v1074_v24 = vld [vmem:[#allocation12 + $0x140] sm:$0xff] }
 0x197   : > { %2395 = vmatpush3.msra.mxu1 %v891_v3  ;;  %2097 = vmatpush3.msra.mxu0 %v1043_v25  ;;  %v1038_v25 = vld [vmem:[#allocation12 + $0x20] sm:$0xff] }
 0x198   : > { %2396 = vmatprep.subr.mxu1 %v890_v4  ;;  %2098 = vmatprep.subr.mxu0 %v1058_v26  ;;  %v1053_v26 = vld [vmem:[#allocation12 + $0x98] sm:$0xff] }
 0x199   : > { %2397 = vmatpush3.msra.mxu1 %v890_v4  ;;  %2099 = vmatpush3.msra.mxu0 %v1042_v28  ;;  %v1073_v28 = vld [vmem:[#allocation12 + $0x138] sm:$0xff] }
 0x19a   : > { %2398 = vmatprep.subr.mxu1 %v889_v6  ;;  %2100 = vmatprep.subr.mxu0 %v1057_v29  ;;  %v1037_v29 = vld [vmem:[#allocation12 + $0x18] sm:$0xff] }
 0x19b   : > { %2399 = vmatpush3.msra.mxu1 %v889_v6  ;;  %2101 = vmatpush3.msra.mxu0 %v1041_v16 }
 0x19c   : > { %2400 = vmatprep.subr.mxu1 %v888_v7 }
 0x19d   : > { %2401 = vmatpush3.msra.mxu1 %v888_v7 }
 0x19e   : > { %2402 = vmatprep.subr.mxu1 %v887_v8 }
 0x19f   : > { %2403 = vmatpush3.msra.mxu1 %v887_v8  ;;  %v1080_v8 = vld [vmem:[#allocation12 + $0x170] sm:$0xff] }
 0x1a0   : > { %2404 = vmatprep.subr.mxu1 %v886_v9 }
 0x1a1   : > { %2405 = vmatpush3.msra.mxu1 %v886_v9 }
 0x1a2   : > { %2406 = vmatprep.subr.mxu1 %v885_v10 }
 0x1a3   : > { %2407 = vmatpush3.msra.mxu1 %v885_v10 }
 0x1a4   : > { %2414 = vmatprep.subr.mxu1 %v3198_v17 }
 0x242   : > { %v2032_v31 = vpop.f32.mrf.mxu1 }
 0x244   : > { %v2033_v33 = vpop.f32.mrf.mxu1 }
 0x245   : > { %v2034_v34 = vadd.f32 %v2033_v33, %v2032_v31  ;;  %v2372_v37 = vpop.f32.mrf.mxu0  ;;  %v1052_v31 = vld [vmem:[#allocation12 + $0x90] sm:$0xff] }
 0x246   : > { %v2035_v35 = vpop.f32.mrf.mxu1  ;;  %v1072_v33 = vld [vmem:[#allocation12 + $0x130] sm:$0xff] }
 0x247   : > { %v760_v38 = vadd.f32 %v2034_v34, %v3143_v5  ;;  %v844_v45 = vpop.f32.mrf.mxu0  ;;  %v1036_v34 = vld [vmem:[#allocation12 + $0x10] sm:$0xff] }
 0x248   : > { %v2036_v43 = vpop.f32.mrf.mxu1 }
 0x249   : > { %v2037_v47 = vadd.f32 %v2036_v43, %v2035_v35  ;;  %v3202_v48 = vadd.f32 %v844_v45, %v760_v38  ;;  %v2375_v53 = vpop.f32.mrf.mxu0  ;;  %v1051_v35 = vld [vmem:[#allocation12 + $0x88] sm:$0xff]  ;;  %v1050_v43 = vld [vmem:[#allocation12 + $0x80] sm:$0xff] }
 0x24a   : > { %v2038_v50 = vpop.f32.mrf.mxu1  ;;  %v1035_v38 = vld [vmem:[#allocation12 + $0x8] sm:$0xff]  ;;  %v1034_v45 = vld [vmem:[#allocation12] sm:$0xff] }
 0x24b   : > { %v765_v51 = vadd.f32 %v2037_v47, %v3153_v30  ;;  %v869_v52 = vmul.f32 %v1962_v44, %v3202_v48  ;;  %v854_v63 = vpop.f32.mrf.mxu0  ;;  %v1069_v47 = vld [vmem:[#allocation12 + $0x118] sm:$0xff] }
 0x24c   : > { %v2039_v55 = vpop.f32.mrf.mxu1 }
 0x24d   : > { %v3206_v57 = vadd.f32 %v2372_v37, %v765_v51  ;;  %v2040_v58 = vadd.f32 %v2039_v55, %v2038_v50  ;;  %v877_v59 = vadd.f32 %v1963_v49, %v869_v52  ;;  %v1071_v37 = vld [vmem:[#allocation12 + $0x128] sm:$0xff]  ;;  %v1066_v51 = vld [vmem:[#allocation12 + $0x100] sm:$0xff]  ;;  %v1391_v52 = vld [vmem:[#allocation14 + $0x1f8] sm:$0xff] }
 0x24e   : > { %v2041_v60 = vpop.f32.mrf.mxu1  ;;  %v1067_v50 = vld [vmem:[#allocation12 + $0x108] sm:$0xff] }
 0x24f   : > { %v870_v5 = vmul.f32 %v1962_v44, %v3206_v57  ;;  %v770_v61 = vadd.f32 %v2040_v58, %v3156_v32  ;;  %v881_v62 = vmax.f32 %v877_v59, 0.0  ;;  %v1079_v32 = vld [vmem:[#allocation12 + $0x168] sm:$0xff] }
 0x250   : > { %v2042_v1 = vpop.f32.mrf.mxu1 }
 0x251   : > { %v878_v2 = vadd.f32 %v1963_v49, %v870_v5  ;;  %v3210_v3 = vadd.f32 %v854_v63, %v770_v61  ;;  %v2043_v30 = vadd.f32 %v2042_v1, %v2041_v60  ;;  %2408 = vmatprep.mubr.f32.mxu1 %v881_v62  ;;  %v3220_v63 = vsel %vm998_vm4, 1.0, %v2874_v0 }
 0x253   : > { %v882_v4 = vmax.f32 %v878_v2, 0.0  ;;  %v871_v6 = vmul.f32 %v1962_v44, %v3210_v3  ;;  %v775_v7 = vadd.f32 %v2043_v30, %v3163_v40 }
 0x255   : > { %v3214_v9 = vadd.f32 %v2375_v53, %v775_v7  ;;  %2409 = vmatmul.mubr.f32.vlgmr.msra.gmra.mxu1 %v882_v4  ;;  %v879_v10 = vadd.f32 %v1963_v49, %v871_v6  ;;  %v1359_v53 = vld [vmem:[#allocation14 + $0xf8] sm:$0xff]  ;;  %v1358_v7 = vld [vmem:[#allocation14 + $0xf0] sm:$0xff] }
 0x256   : > { %2415 = vmatpush3.msra.mxu1 %v3198_v17  ;;  %v1056_v17 = vld [vmem:[#allocation12 + $0xb0] sm:$0xff]  ;;  %v1343_v6 = vld [vmem:[#allocation14 + $0x78] sm:$0xff] }
 0x257   : > { %v883_v11 = vmax.f32 %v879_v10, 0.0  ;;  %v872_v12 = vmul.f32 %v1962_v44, %v3214_v9  ;;  %2416 = vmatprep.subr.mxu1 %v1080_v8  ;;  %2102 = vmatprep.subr.mxu0 %v1056_v17  ;;  %v1070_v44 = vld [vmem:[#allocation12 + $0x120] sm:$0xff]  ;;  %v1357_v10 = vld [vmem:[#allocation14 + $0xe8] sm:$0xff] }
 0x258   : > { %2417 = vmatpush3.msra.mxu1 %v1080_v8  ;;  %2103 = vmatpush3.msra.mxu0 %v1040_v19  ;;  %v1342_v8 = vld [vmem:[#allocation14 + $0x70] sm:$0xff] }
 0x259   : > { %2411 = vmatprep.mubr.f32.mxu1 %v883_v11  ;;  %v880_v14 = vadd.f32 %v1963_v49, %v872_v12  ;;  %2418 = vmatprep.subr.mxu1 %v1079_v32  ;;  %v1068_v49 = vld [vmem:[#allocation12 + $0x110] sm:$0xff]  ;;  %v3226_v12 = vsel %vm1000_vm5, 1.0, %v2874_v0 }
 0x25a   : > { %2419 = vmatpush3.msra.mxu1 %v1079_v32  ;;  %2104 = vmatprep.subr.mxu0 %v1055_v20  ;;  %v1341_v32 = vld [vmem:[#allocation14 + $0x68] sm:$0xff]  ;;  %v3235_v20 = vsel %vm1021_vm7, 1.0, %v2874_v0 }
 0x25b   : > { %v884_v40 = vmax.f32 %v880_v14, 0.0  ;;  %2420 = vmatprep.subr.mxu1 %v1078_v13  ;;  %2105 = vmatpush3.msra.mxu0 %v1039_v22  ;;  %v1356_v14 = vld [vmem:[#allocation14 + $0xe0] sm:$0xff]  ;;  %v1355_v22 = vld [vmem:[#allocation14 + $0xd8] sm:$0xff] }
 0x25c   : > { %2421 = vmatpush3.msra.mxu1 %v1078_v13  ;;  %2106 = vmatprep.subr.mxu0 %v1054_v23  ;;  %v3229_v13 = vsel %vm1019_vm6, 1.0, %v2874_v0  ;;  %v1373_v0 = vld [vmem:[#allocation14 + $0x168] sm:$0xff] }
 0x25d   : > { %2412 = vmatmul.mubr.f32.gmra.mxu1 %v884_v40  ;;  %2422 = vmatprep.subr.mxu1 %v1077_v15 }
 0x25e   : > { %2423 = vmatpush3.msra.mxu1 %v1077_v15  ;;  %2107 = vmatpush3.msra.mxu0 %v1038_v25  ;;  %v1340_v15 = vld [vmem:[#allocation14 + $0x60] sm:$0xff] }
 0x25f   : > { %2424 = vmatprep.subr.mxu1 %v1076_v18  ;;  %2108 = vmatprep.subr.mxu0 %v1053_v26  ;;  %v1374_v26 = vld [vmem:[#allocation14 + $0x170] sm:$0xff] }
 0x260   : > { %2425 = vmatpush3.msra.mxu1 %v1076_v18  ;;  %2109 = vmatpush3.msra.mxu0 %v1037_v29  ;;  %v1389_v29 = vld [vmem:[#allocation14 + $0x1e8] sm:$0xff] }
 0x261   : > { %2426 = vmatprep.subr.mxu1 %v1075_v21  ;;  %2110 = vmatprep.subr.mxu0 %v1052_v31  ;;  %v1388_v31 = vld [vmem:[#allocation14 + $0x1e0] sm:$0xff] }
 0x262   : > { %2427 = vmatpush3.msra.mxu1 %v1075_v21  ;;  %2111 = vmatpush3.msra.mxu0 %v1036_v34  ;;  %v1375_v21 = vld [vmem:[#allocation14 + $0x178] sm:$0xff] }
 0x263   : > { %2428 = vmatprep.subr.mxu1 %v1074_v24  ;;  %2112 = vmatprep.subr.mxu0 %v1051_v35  ;;  %v1387_v34 = vld [vmem:[#allocation14 + $0x1d8] sm:$0xff] }
 0x264   : > { %2429 = vmatpush3.msra.mxu1 %v1074_v24  ;;  %2113 = vmatpush3.msra.mxu0 %v1035_v38  ;;  %v1390_v24 = vld [vmem:[#allocation14 + $0x1f0] sm:$0xff]  ;;  %v1371_v35 = vld [vmem:[#allocation14 + $0x158] sm:$0xff] }
 0x265   : > { %2430 = vmatprep.subr.mxu1 %v1073_v28  ;;  %2114 = vmatprep.subr.mxu0 %v1050_v43  ;;  %v1386_v38 = vld [vmem:[#allocation14 + $0x1d0] sm:$0xff] }
 0x266   : > { %2431 = vmatpush3.msra.mxu1 %v1073_v28  ;;  %2115 = vmatpush3.msra.mxu0 %v1034_v45  ;;  %v1354_v43 = vld [vmem:[#allocation14 + $0xd0] sm:$0xff] }
 0x267   : > { %2432 = vmatprep.subr.mxu1 %v1072_v33  ;;  %2148 = vmatprep.subr.mxu0 %v1359_v53  ;;  %v1338_v45 = vld [vmem:[#allocation14 + $0x50] sm:$0xff]  ;;  %v1352_v53 = vld [vmem:[#allocation14 + $0xc0] sm:$0xff] }
 0x268   : > { %2433 = vmatpush3.msra.mxu1 %v1072_v33  ;;  %v1372_v33 = vld [vmem:[#allocation14 + $0x160] sm:$0xff] }
 0x269   : > { %2434 = vmatprep.subr.mxu1 %v1071_v37 }
 0x26a   : > { %2435 = vmatpush3.msra.mxu1 %v1071_v37  ;;  %v1339_v37 = vld [vmem:[#allocation14 + $0x58] sm:$0xff] }
 0x26b   : > { %2436 = vmatprep.subr.mxu1 %v1070_v44 }
 0x26c   : > { %2437 = vmatpush3.msra.mxu1 %v1070_v44  ;;  %v1370_v44 = vld [vmem:[#allocation14 + $0x150] sm:$0xff] }
 0x26d   : > { %2438 = vmatprep.subr.mxu1 %v1069_v47 }
 0x26e   : > { %2439 = vmatpush3.msra.mxu1 %v1069_v47  ;;  %v1385_v47 = vld [vmem:[#allocation14 + $0x1c8] sm:$0xff] }
 0x26f   : > { %2440 = vmatprep.subr.mxu1 %v1068_v49 }
 0x270   : > { %2441 = vmatpush3.msra.mxu1 %v1068_v49  ;;  %v1353_v49 = vld [vmem:[#allocation14 + $0xc8] sm:$0xff] }
 0x271   : > { %2442 = vmatprep.subr.mxu1 %v1067_v50 }
 0x272   : > { %2443 = vmatpush3.msra.mxu1 %v1067_v50  ;;  %v1369_v50 = vld [vmem:[#allocation14 + $0x148] sm:$0xff] }
 0x273   : > { %2444 = vmatprep.subr.mxu1 %v1066_v51 }
 0x274   : > { %2445 = vmatpush3.msra.mxu1 %v1066_v51  ;;  %v1337_v51 = vld [vmem:[#allocation14 + $0x48] sm:$0xff] }
 0x275   : > { %2192 = vmatprep.subr.mxu1 %v1391_v52  ;;  %v1384_v52 = vld [vmem:[#allocation14 + $0x1c0] sm:$0xff] }
 0x315   : > { %v2410_v55 = vpop.f32.mrf.mxu1 }
 0x316   : > { %v987_v58 = vmax.f32 %v2410_v55, 0.0  ;;  %v1368_v55 = vld [vmem:[#allocation14 + $0x140] sm:$0xff] }
 0x317   : > { %v967_v59 = vpop.f32.mrf.mxu1 }
 0x318   : > { %991 = vst [vmem:[#allocation2 + $0x10] sm:$0xff] %v987_v58  ;;  %v986_v60 = vmax.f32 %v967_v59, 0.0  ;;  %v1383_v59 = vld [vmem:[#allocation14 + $0x1b8] sm:$0xff] }
 0x31a   : > { %990 = vst [vmem:[#allocation2 + $0x8] sm:$0xff] %v986_v60  ;;  %1146 = vmatprep.mubr.f32.mxu0 %v986_v60  ;;  %v1351_v60 = vld [vmem:[#allocation14 + $0xb8] sm:$0xff] }
 0x31d   : > { %v2413_v5 = vpop.f32.mrf.mxu1 }
 0x31e   : > { %v989_v61 = vmax.f32 %v2413_v5, 0.0  ;;  %v1367_v5 = vld [vmem:[#allocation14 + $0x138] sm:$0xff] }
 0x31f   : > { %v977_v62 = vpop.f32.mrf.mxu1 }
 0x320   : > { %993 = vst [vmem:[#allocation2 + $0x20] sm:$0xff] %v989_v61  ;;  %v988_v1 = vmax.f32 %v977_v62, 0.0  ;;  %v1382_v62 = vld [vmem:[#allocation14 + $0x1b0] sm:$0xff] }
 0x321   : > { %v1014_v2 = vld [vmem:[#allocation2 + $0xa] sm:$0xff] }
 0x322   : > { %v994_v30 = vld [vmem:[#allocation2 + $0x6] sm:$0xff]  ;;  %992 = vst [vmem:[#allocation2 + $0x18] sm:$0xff] %v988_v1  ;;  %2446 = vmatprep.mubr.f32.mxu1 %v1014_v2  ;;  %v995_v11 = vld [vmem:[#allocation2 + $0xe] sm:$0xff] }
 0x323   : > { %v1010_v4 = vmul.f32 %v3220_v63, %v994_v30  ;;  %v1366_v2 = vld [vmem:[#allocation14 + $0x130] sm:$0xff] }
 0x324   : > { %v1334_v30 = vld [vmem:[#allocation14 + $0x30] sm:$0xff] }
 0x325   : > { %1147 = vmatmul.mubr.f32.vlgmr.msra.gmra.mxu0 %v1010_v4  ;;  %v1381_v4 = vld [vmem:[#allocation14 + $0x1a8] sm:$0xff] }
 0x326   : > { %1151 = vmatprep.mubr.f32.mxu0 %v987_v58  ;;  %2149 = vmatpush3.msra.mxu0 %v1343_v6  ;;  %v1336_v58 = vld [vmem:[#allocation14 + $0x40] sm:$0xff]  ;;  %v1349_v6 = vld [vmem:[#allocation14 + $0xa8] sm:$0xff] }
 0x327   : > { %2150 = vmatprep.subr.mxu0 %v1358_v7  ;;  %v1017_v19 = vld [vmem:[#allocation2 + $0x22] sm:$0xff] }
 0x328   : > { %2151 = vmatpush3.msra.mxu0 %v1342_v8  ;;  %v1033_v25 = vmul.f32 %v3235_v20, %v1017_v19  ;;  %v1365_v7 = vld [vmem:[#allocation14 + $0x128] sm:$0xff]  ;;  %v1346_v19 = vld [vmem:[#allocation14 + $0x90] sm:$0xff] }
 0x329   : > { %1152 = vmatmul.mubr.f32.gmra.mxu0 %v995_v11  ;;  %2152 = vmatprep.subr.mxu0 %v1357_v10  ;;  %v996_v40 = vld [vmem:[#allocation2 + $0x16] sm:$0xff]  ;;  %v997_v28 = vld [vmem:[#allocation2 + $0x1e] sm:$0xff] }
 0x32a   : > { %1156 = vmatprep.mubr.f32.mxu0 %v988_v1  ;;  %v1015_v16 = vld [vmem:[#allocation2 + $0x12] sm:$0xff]  ;;  %2153 = vmatpush3.msra.mxu0 %v1341_v32  ;;  %v1012_v17 = vmul.f32 %v3226_v12, %v996_v40  ;;  %v1016_v23 = vld [vmem:[#allocation2 + $0x1a] sm:$0xff]  ;;  %v1350_v1 = vld [vmem:[#allocation14 + $0xb0] sm:$0xff] }
 0x32b   : > { %v1031_v18 = vmul.f32 %v3229_v13, %v1015_v16  ;;  %2154 = vmatprep.subr.mxu0 %v1356_v14  ;;  %v1333_v8 = vld [vmem:[#allocation14 + $0x28] sm:$0xff]  ;;  %v1380_v10 = vld [vmem:[#allocation14 + $0x1a0] sm:$0xff]  ;;  %v1347_v40 = vld [vmem:[#allocation14 + $0x98] sm:$0xff] }
 0x32c   : > { %2155 = vmatpush3.msra.mxu0 %v1340_v15  ;;  %v1348_v32 = vld [vmem:[#allocation14 + $0xa0] sm:$0xff]  ;;  %v1379_v15 = vld [vmem:[#allocation14 + $0x198] sm:$0xff] }
 0x32d   : > { %1157 = vmatmul.mubr.f32.gmra.mxu0 %v1012_v17  ;;  %2447 = vmatmul.mubr.f32.vlgmr.msra.gmra.mxu1 %v1031_v18  ;;  %v1364_v11 = vld [vmem:[#allocation14 + $0x120] sm:$0xff]  ;;  %v1363_v16 = vld [vmem:[#allocation14 + $0x118] sm:$0xff]  ;;  %v1378_v18 = vld [vmem:[#allocation14 + $0x190] sm:$0xff] }
 0x32e   : > { %1161 = vmatprep.mubr.f32.mxu0 %v989_v61  ;;  %2449 = vmatprep.mubr.f32.mxu1 %v1016_v23  ;;  %v1335_v61 = vld [vmem:[#allocation14 + $0x38] sm:$0xff]  ;;  %v1332_v14 = vld [vmem:[#allocation14 + $0x20] sm:$0xff]  ;;  %v1377_v23 = vld [vmem:[#allocation14 + $0x188] sm:$0xff] }
 0x32f   : > { %2193 = vmatpush3.msra.mxu1 %v1375_v21  ;;  %2156 = vmatprep.subr.mxu0 %v1355_v22  ;;  %v1331_v17 = vld [vmem:[#allocation14 + $0x18] sm:$0xff]  ;;  %v1362_v21 = vld [vmem:[#allocation14 + $0x110] sm:$0xff] }
 0x330   : > { %2194 = vmatprep.subr.mxu1 %v1390_v24  ;;  %2157 = vmatpush3.msra.mxu0 %v1339_v37  ;;  %v1330_v22 = vld [vmem:[#allocation14 + $0x10] sm:$0xff]  ;;  %v1345_v24 = vld [vmem:[#allocation14 + $0x88] sm:$0xff] }
 0x331   : > { %1162 = vmatmul.mubr.f32.gmra.mxu0 %v997_v28  ;;  %2450 = vmatmul.mubr.f32.gmra.mxu1 %v1033_v25  ;;  %v1361_v25 = vld [vmem:[#allocation14 + $0x108] sm:$0xff]  ;;  %v1376_v28 = vld [vmem:[#allocation14 + $0x180] sm:$0xff] }
 0x332   : > { %2195 = vmatpush3.msra.mxu1 %v1374_v26  ;;  %2158 = vmatprep.subr.mxu0 %v1354_v43  ;;  %v1329_v26 = vld [vmem:[#allocation14 + $0x8] sm:$0xff] }
 0x333   : > { %2196 = vmatprep.subr.mxu1 %v1389_v29  ;;  %2159 = vmatpush3.msra.mxu0 %v1338_v45  ;;  %v1344_v29 = vld [vmem:[#allocation14 + $0x80] sm:$0xff] }
 0x334   : > { %2197 = vmatpush3.msra.mxu1 %v1373_v0  ;;  %2160 = vmatprep.subr.mxu0 %v1353_v49  ;;  %v1360_v0 = vld [vmem:[#allocation14 + $0x100] sm:$0xff] }
 0x335   : > { %2198 = vmatprep.subr.mxu1 %v1388_v31  ;;  %2161 = vmatpush3.msra.mxu0 %v1337_v51  ;;  %v1328_v31 = vld [vmem:[#allocation14] sm:$0xff] }
 0x336   : > { %2199 = vmatpush3.msra.mxu1 %v1372_v33  ;;  %2162 = vmatprep.subr.mxu0 %v1352_v53  ;;  %v1439_v33 = vld [vmem:[#allocation14 + $0x378] sm:$0xff] }
 0x337   : > { %2200 = vmatprep.subr.mxu1 %v1387_v34  ;;  %2163 = vmatpush3.msra.mxu0 %v1336_v58  ;;  %v1423_v34 = vld [vmem:[#allocation14 + $0x2f8] sm:$0xff] }
 0x338   : > { %2201 = vmatpush3.msra.mxu1 %v1371_v35  ;;  %2164 = vmatprep.subr.mxu0 %v1351_v60 }
 0x339   : > { %2202 = vmatprep.subr.mxu1 %v1386_v38  ;;  %2165 = vmatpush3.msra.mxu0 %v1335_v61 }
 0x33a   : > { %2203 = vmatpush3.msra.mxu1 %v1370_v44  ;;  %2166 = vmatprep.subr.mxu0 %v1350_v1 }
 0x33b   : > { %2204 = vmatprep.subr.mxu1 %v1385_v47  ;;  %2167 = vmatpush3.msra.mxu0 %v1334_v30 }
 0x33c   : > { %2205 = vmatpush3.msra.mxu1 %v1369_v50  ;;  %2168 = vmatprep.subr.mxu0 %v1349_v6 }
 0x33d   : > { %2206 = vmatprep.subr.mxu1 %v1384_v52  ;;  %2169 = vmatpush3.msra.mxu0 %v1333_v8 }
 0x33e   : > { %2207 = vmatpush3.msra.mxu1 %v1368_v55  ;;  %2170 = vmatprep.subr.mxu0 %v1348_v32 }
 0x33f   : > { %2208 = vmatprep.subr.mxu1 %v1383_v59  ;;  %2171 = vmatpush3.msra.mxu0 %v1332_v14  ;;  %v1407_v14 = vld [vmem:[#allocation14 + $0x278] sm:$0xff] }
 0x340   : > { %2209 = vmatpush3.msra.mxu1 %v1367_v5  ;;  %2172 = vmatprep.subr.mxu0 %v1347_v40  ;;  %v1406_v40 = vld [vmem:[#allocation14 + $0x270] sm:$0xff] }
 0x341   : > { %2210 = vmatprep.subr.mxu1 %v1382_v62  ;;  %2173 = vmatpush3.msra.mxu0 %v1331_v17  ;;  %v1421_v17 = vld [vmem:[#allocation14 + $0x2e8] sm:$0xff] }
 0x342   : > { %2211 = vmatpush3.msra.mxu1 %v1366_v2  ;;  %2174 = vmatprep.subr.mxu0 %v1346_v19 }
 0x343   : > { %2212 = vmatprep.subr.mxu1 %v1381_v4  ;;  %2175 = vmatpush3.msra.mxu0 %v1330_v22 }
 0x344   : > { %2213 = vmatpush3.msra.mxu1 %v1365_v7  ;;  %2176 = vmatprep.subr.mxu0 %v1345_v24 }
 0x345   : > { %2214 = vmatprep.subr.mxu1 %v1380_v10  ;;  %2177 = vmatpush3.msra.mxu0 %v1329_v26  ;;  %v1435_v26 = vld [vmem:[#allocation14 + $0x358] sm:$0xff] }
 0x346   : > { %2215 = vmatpush3.msra.mxu1 %v1364_v11  ;;  %2178 = vmatprep.subr.mxu0 %v1344_v29 }
 0x347   : > { %2216 = vmatprep.subr.mxu1 %v1379_v15  ;;  %2179 = vmatpush3.msra.mxu0 %v1328_v31 }
 0x348   : > { %2217 = vmatpush3.msra.mxu1 %v1363_v16  ;;  %2236 = vmatprep.subr.mxu0 %v1423_v34  ;;  %v1437_v16 = vld [vmem:[#allocation14 + $0x368] sm:$0xff]  ;;  %v1418_v34 = vld [vmem:[#allocation14 + $0x2d0] sm:$0xff] }
 0x349   : > { %2218 = vmatprep.subr.mxu1 %v1378_v18  ;;  %v1405_v18 = vld [vmem:[#allocation14 + $0x268] sm:$0xff] }
 0x34a   : > { %2219 = vmatpush3.msra.mxu1 %v1362_v21  ;;  %v1436_v21 = vld [vmem:[#allocation14 + $0x360] sm:$0xff] }
 0x34b   : > { %2220 = vmatprep.subr.mxu1 %v1377_v23  ;;  %v1420_v23 = vld [vmem:[#allocation14 + $0x2e0] sm:$0xff] }
 0x34c   : > { %2221 = vmatpush3.msra.mxu1 %v1361_v25  ;;  %v1404_v25 = vld [vmem:[#allocation14 + $0x260] sm:$0xff] }
 0x34d   : > { %2222 = vmatprep.subr.mxu1 %v1376_v28 }
 0x34e   : > { %2223 = vmatpush3.msra.mxu1 %v1360_v0 }
 0x34f   : > { %2452 = vmatprep.subr.mxu1 %v1439_v33 }
 0x3e5   : > { %v2116_v35 = vpop.f32.mrf.mxu0 }
 0x3e7   : > { %v2117_v37 = vpop.f32.mrf.mxu0 }
 0x3e8   : > { %v2118_v43 = vadd.f32 %v2117_v37, %v2116_v35  ;;  %v1402_v37 = vld [vmem:[#allocation14 + $0x250] sm:$0xff] }
 0x3e9   : > { %v2119_v38 = vpop.f32.mrf.mxu0 }
 0x3ea   : > { %v1149_v51 = vadd.f32 %v2118_v43, %v3202_v48  ;;  %v1417_v43 = vld [vmem:[#allocation14 + $0x2c8] sm:$0xff] }
 0x3eb   : > { %v2120_v44 = vpop.f32.mrf.mxu0 }
 0x3ec   : > { %v2121_v45 = vadd.f32 %v2120_v44, %v2119_v38  ;;  %v1433_v38 = vld [vmem:[#allocation14 + $0x348] sm:$0xff] }
 0x3ed   : > { %v2122_v47 = vpop.f32.mrf.mxu0  ;;  %v2448_v49 = vpop.f32.mrf.mxu1  ;;  %v1401_v44 = vld [vmem:[#allocation14 + $0x248] sm:$0xff] }
 0x3ee   : > { %v1154_v50 = vadd.f32 %v2121_v45, %v3206_v57  ;;  %v3243_v57 = vld [vmem:[#allocation2] sm:$0xff]  ;;  %v1432_v45 = vld [vmem:[#allocation14 + $0x340] sm:$0xff] }
 0x3ef   : > { %v2123_v52 = vpop.f32.mrf.mxu0  ;;  %v1233_v53 = vpop.f32.mrf.mxu1  ;;  %v1968_v4 = vsel %vm1260_vm8, 1.0, %v3243_v57  ;;  %v1969_v29 = vsel %vm1262_vm9, 1.0, %v3243_v57 }
 0x3f0   : > { %v1239_v55 = vadd.f32 %v2448_v49, %v1154_v50  ;;  %v2124_v58 = vadd.f32 %v2123_v52, %v2122_v47  ;;  %v1234_v59 = vadd.f32 %v1233_v53, %v1149_v51  ;;  %v1416_v49 = vld [vmem:[#allocation14 + $0x2c0] sm:$0xff]  ;;  %v1431_v52 = vld [vmem:[#allocation14 + $0x338] sm:$0xff] }
 0x3f1   : > { %v2125_v60 = vpop.f32.mrf.mxu0  ;;  %v2451_v5 = vpop.f32.mrf.mxu1  ;;  %v1400_v51 = vld [vmem:[#allocation14 + $0x240] sm:$0xff] }
 0x3f2   : > { %1253 = vst [vmem:[#allocation2 + $0x10] sm:$0xff] %v1239_v55  ;;  %1252 = vst [vmem:[#allocation2 + $0x8] sm:$0xff] %v1234_v59  ;;  %1596 = vmatprep.mubr.f32.mxu1 %v1234_v59  ;;  %v1159_v61 = vadd.f32 %v2124_v58, %v3210_v3  ;;  %v1399_v58 = vld [vmem:[#allocation14 + $0x238] sm:$0xff]  ;;  %v1430_v59 = vld [vmem:[#allocation14 + $0x330] sm:$0xff] }
 0x3f3   : > { %v2126_v62 = vpop.f32.mrf.mxu0  ;;  %v1243_v1 = vpop.f32.mrf.mxu1 }
 0x3f4   : > { %v2127_v2 = vadd.f32 %v2126_v62, %v2125_v60  ;;  %v1244_v30 = vadd.f32 %v1243_v1, %v1159_v61  ;;  %v1414_v60 = vld [vmem:[#allocation14 + $0x2b0] sm:$0xff]  ;;  %v1429_v61 = vld [vmem:[#allocation14 + $0x328] sm:$0xff] }
 0x3f5   : > { %v1413_v62 = vld [vmem:[#allocation14 + $0x2a8] sm:$0xff] }
 0x3f6   : > { %v1164_v48 = vadd.f32 %v2127_v2, %v3214_v9  ;;  %1254 = vst [vmem:[#allocation2 + $0x18] sm:$0xff] %v1244_v30  ;;  %v1422_v9 = vld [vmem:[#allocation14 + $0x2f0] sm:$0xff]  ;;  %v1397_v1 = vld [vmem:[#allocation14 + $0x228] sm:$0xff]  ;;  %v1428_v2 = vld [vmem:[#allocation14 + $0x320] sm:$0xff] }
 0x3f8   : > { %v1249_v6 = vadd.f32 %v2451_v5, %v1164_v48  ;;  %v1398_v5 = vld [vmem:[#allocation14 + $0x230] sm:$0xff]  ;;  %v1396_v48 = vld [vmem:[#allocation14 + $0x220] sm:$0xff] }
 0x3f9   : > { %v1276_v7 = vld [vmem:[#allocation2 + $0x6] sm:$0xff]  ;;  %v1277_v15 = vld [vmem:[#allocation2 + $0xe] sm:$0xff] }
 0x3fa   : > { %v1284_v8 = vld [vmem:[#allocation2 + $0x7] sm:$0xff]  ;;  %v1280_v32 = vmul.f32 %v3220_v63, %v1276_v7  ;;  %1255 = vst [vmem:[#allocation2 + $0x20] sm:$0xff] %v1249_v6  ;;  %v1285_v63 = vld [vmem:[#allocation2 + $0xf] sm:$0xff] }
 0x3fb   : > { %v1256_v10 = vld [vmem:[#allocation2 + $0x5] sm:$0xff]  ;;  %v1288_v3 = vmul.f32 %v3176_v39, %v1284_v8  ;;  %v1257_v19 = vld [vmem:[#allocation2 + $0xd] sm:$0xff] }
 0x3fc   : > { %v1272_v11 = vmul.f32 %v1968_v4, %v1256_v10  ;;  %1511 = vmatprep.mubr.f32.mxu0 %v1280_v32  ;;  %v1308_v50 = vld [vmem:[#allocation2 + $0xb] sm:$0xff] }
 0x3fd   : > { %1597 = vmatmul.mubr.f32.vlgmr.msra.gmra.mxu1 %v1288_v3  ;;  %v1278_v39 = vld [vmem:[#allocation2 + $0x16] sm:$0xff]  ;;  %v1300_v53 = vld [vmem:[#allocation2 + $0xa] sm:$0xff] }
 0x3fe   : > { %2453 = vmatpush3.msra.mxu1 %v1439_v33  ;;  %1512 = vmatmul.mubr.f32.vlgmr.msra.gmra.mxu0 %v1272_v11  ;;  %v1282_v22 = vmul.f32 %v3226_v12, %v1278_v39  ;;  %v1286_v24 = vld [vmem:[#allocation2 + $0x17] sm:$0xff]  ;;  %v1403_v12 = vld [vmem:[#allocation14 + $0x258] sm:$0xff]  ;;  %v1434_v33 = vld [vmem:[#allocation14 + $0x350] sm:$0xff] }
 0x3ff   : > { %1601 = vmatprep.mubr.f32.mxu1 %v1239_v55  ;;  %2237 = vmatpush3.msra.mxu0 %v1407_v14  ;;  %v1258_v28 = vld [vmem:[#allocation2 + $0x15] sm:$0xff]  ;;  %v1290_v0 = vmul.f32 %v3191_v54, %v1286_v24  ;;  %v1415_v55 = vld [vmem:[#allocation14 + $0x2b8] sm:$0xff]  ;;  %v1426_v8 = vld [vmem:[#allocation14 + $0x310] sm:$0xff] }
 0x400   : > { %2454 = vmatprep.subr.mxu1 %v1438_v27  ;;  %1516 = vmatprep.mubr.f32.mxu0 %v1277_v15  ;;  %v1274_v31 = vmul.f32 %v1969_v29, %v1258_v28  ;;  %v1427_v4 = vld [vmem:[#allocation14 + $0x318] sm:$0xff]  ;;  %v1410_v10 = vld [vmem:[#allocation14 + $0x290] sm:$0xff]  ;;  %v1425_v3 = vld [vmem:[#allocation14 + $0x308] sm:$0xff]  ;;  %v1970_v15 = vsel %vm1313_vm10, 1.0, %v3243_v57 }
 0x401   : > { %2238 = vmatprep.subr.mxu0 %v1422_v9  ;;  %2455 = vmatpush3.msra.mxu1 %v1438_v27  ;;  %v1279_v35 = vld [vmem:[#allocation2 + $0x1e] sm:$0xff]  ;;  %v1395_v7 = vld [vmem:[#allocation14 + $0x218] sm:$0xff]  ;;  %v1424_v27 = vld [vmem:[#allocation14 + $0x300] sm:$0xff] }
 0x402   : > { %2239 = vmatpush3.msra.mxu0 %v1406_v40  ;;  %2456 = vmatprep.subr.mxu1 %v1437_v16  ;;  %v1287_v54 = vld [vmem:[#allocation2 + $0x1f] sm:$0xff]  ;;  %v1309_v9 = vld [vmem:[#allocation2 + $0x13] sm:$0xff] }
 0x403   : > { %1602 = vmatmul.mubr.f32.gmra.mxu1 %v1285_v63  ;;  %2240 = vmatprep.subr.mxu0 %v1421_v17  ;;  %v1259_v47 = vld [vmem:[#allocation2 + $0x1d] sm:$0xff]  ;;  %v1408_v40 = vld [vmem:[#allocation14 + $0x280] sm:$0xff]  ;;  %v1325_v17 = vmul.f32 %v1970_v15, %v1309_v9  ;;  %v1971_v63 = vsel %vm1315_vm11, 1.0, %v3243_v57 }
 0x404   : > { %2457 = vmatpush3.msra.mxu1 %v1437_v16  ;;  %1517 = vmatmul.mubr.f32.gmra.mxu0 %v1257_v19  ;;  %v1394_v32 = vld [vmem:[#allocation14 + $0x210] sm:$0xff]  ;;  %v1409_v11 = vld [vmem:[#allocation14 + $0x288] sm:$0xff]  ;;  %v1301_v16 = vld [vmem:[#allocation2 + $0x12] sm:$0xff] }
 0x405   : > { %1606 = vmatprep.mubr.f32.mxu1 %v1244_v30  ;;  %2241 = vmatpush3.msra.mxu0 %v1405_v18  ;;  %v1412_v30 = vld [vmem:[#allocation14 + $0x2a0] sm:$0xff]  ;;  %v1393_v14 = vld [vmem:[#allocation14 + $0x208] sm:$0xff]  ;;  %v1292_v18 = vld [vmem:[#allocation2 + $0x9] sm:$0xff] }
 0x406   : > { %2458 = vmatprep.subr.mxu1 %v1436_v21  ;;  %1521 = vmatprep.mubr.f32.mxu0 %v1282_v22  ;;  %v1311_v39 = vld [vmem:[#allocation2 + $0x23] sm:$0xff]  ;;  %v1310_v19 = vld [vmem:[#allocation2 + $0x1b] sm:$0xff]  ;;  %v1293_v22 = vld [vmem:[#allocation2 + $0x11] sm:$0xff] }
 0x407   : > { %2242 = vmatprep.subr.mxu0 %v1420_v23  ;;  %2459 = vmatpush3.msra.mxu1 %v1436_v21  ;;  %v1305_v21 = vmul.f32 %v3229_v13, %v1301_v16  ;;  %v1327_v42 = vmul.f32 %v1971_v63, %v1311_v39  ;;  %v1297_v23 = vmul.f32 %v3185_v46, %v1293_v22  ;;  %v1302_v24 = vld [vmem:[#allocation2 + $0x1a] sm:$0xff] }
 0x408   : > { %2243 = vmatpush3.msra.mxu0 %v1404_v25  ;;  %2460 = vmatprep.subr.mxu1 %v1435_v26  ;;  %v1303_v25 = vld [vmem:[#allocation2 + $0x22] sm:$0xff] }
 0x409   : > { %1607 = vmatmul.mubr.f32.gmra.mxu1 %v1290_v0  ;;  %2244 = vmatprep.subr.mxu0 %v1419_v41  ;;  %v1307_v57 = vmul.f32 %v3235_v20, %v1303_v25  ;;  %v1295_v28 = vld [vmem:[#allocation2 + $0x21] sm:$0xff] }
 0x40a   : > { %2461 = vmatpush3.msra.mxu1 %v1435_v26  ;;  %1522 = vmatmul.mubr.f32.gmra.mxu0 %v1274_v31  ;;  %v1294_v26 = vld [vmem:[#allocation2 + $0x19] sm:$0xff]  ;;  %v1299_v13 = vmul.f32 %v3194_v56, %v1295_v28 }
 0x40b   : > { %1611 = vmatprep.mubr.f32.mxu1 %v1249_v6  ;;  %2245 = vmatpush3.msra.mxu0 %v1403_v12  ;;  %v1411_v6 = vld [vmem:[#allocation14 + $0x298] sm:$0xff] }
 0x40c   : > { %2462 = vmatprep.subr.mxu1 %v1434_v33  ;;  %1526 = vmatprep.mubr.f32.mxu0 %v1279_v35 }
 0x40d   : > { %2246 = vmatprep.subr.mxu0 %v1418_v34  ;;  %2463 = vmatpush3.msra.mxu1 %v1434_v33 }
 0x40e   : > { %2247 = vmatpush3.msra.mxu0 %v1402_v37  ;;  %2464 = vmatprep.subr.mxu1 %v1433_v38 }
 0x40f   : > { %1612 = vmatmul.mubr.f32.gmra.mxu1 %v1287_v54  ;;  %2248 = vmatprep.subr.mxu0 %v1417_v43 }
 0x410   : > { %2465 = vmatpush3.msra.mxu1 %v1433_v38  ;;  %1527 = vmatmul.mubr.f32.gmra.mxu0 %v1259_v47 }
 0x411   : > { %2249 = vmatpush3.msra.mxu0 %v1401_v44  ;;  %2466 = vmatprep.subr.mxu1 %v1432_v45  ;;  %v1972_v44 = vld [vmem:[%s3316_s2] ss:$0 sm:$0xff] }
 0x412   : > { %2484 = vmatprep.mubr.f32.mxu1 %v1308_v50  ;;  %2250 = vmatprep.subr.mxu0 %v1416_v49 }
 0x413   : > { %1681 = vmatprep.mubr.f32.mxu0 %v1300_v53  ;;  %2467 = vmatpush3.msra.mxu1 %v1432_v45 }
 0x414   : > { %2251 = vmatpush3.msra.mxu0 %v1400_v51  ;;  %2468 = vmatprep.subr.mxu1 %v1431_v52 }
 0x415   : > { %2252 = vmatprep.subr.mxu0 %v1415_v55  ;;  %2469 = vmatpush3.msra.mxu1 %v1431_v52 }
 0x416   : > { %2253 = vmatpush3.msra.mxu0 %v1399_v58  ;;  %2470 = vmatprep.subr.mxu1 %v1430_v59 }
 0x417   : > { %2254 = vmatprep.subr.mxu0 %v1414_v60  ;;  %2471 = vmatpush3.msra.mxu1 %v1430_v59 }
 0x418   : > { %2255 = vmatpush3.msra.mxu0 %v1398_v5  ;;  %2472 = vmatprep.subr.mxu1 %v1429_v61 }
 0x419   : > { %2256 = vmatprep.subr.mxu0 %v1413_v62  ;;  %2473 = vmatpush3.msra.mxu1 %v1429_v61 }
 0x41a   : > { %2257 = vmatpush3.msra.mxu0 %v1397_v1  ;;  %2474 = vmatprep.subr.mxu1 %v1428_v2 }
 0x41b   : > { %2258 = vmatprep.subr.mxu0 %v1412_v30  ;;  %2475 = vmatpush3.msra.mxu1 %v1428_v2 }
 0x41c   : > { %2259 = vmatpush3.msra.mxu0 %v1396_v48  ;;  %2476 = vmatprep.subr.mxu1 %v1427_v4 }
 0x41d   : > { %2260 = vmatprep.subr.mxu0 %v1411_v6  ;;  %2477 = vmatpush3.msra.mxu1 %v1427_v4 }
 0x41e   : > { %2261 = vmatpush3.msra.mxu0 %v1395_v7  ;;  %2478 = vmatprep.subr.mxu1 %v1426_v8 }
 0x41f   : > { %2262 = vmatprep.subr.mxu0 %v1410_v10  ;;  %2479 = vmatpush3.msra.mxu1 %v1426_v8 }
 0x420   : > { %2263 = vmatpush3.msra.mxu0 %v1394_v32  ;;  %2480 = vmatprep.subr.mxu1 %v1425_v3 }
 0x421   : > { %2264 = vmatprep.subr.mxu0 %v1409_v11  ;;  %2481 = vmatpush3.msra.mxu1 %v1425_v3 }
 0x422   : > { %2265 = vmatpush3.msra.mxu0 %v1393_v14  ;;  %2482 = vmatprep.subr.mxu1 %v1424_v27 }
 0x423   : > { %2266 = vmatprep.subr.mxu0 %v1408_v40  ;;  %2483 = vmatpush3.msra.mxu1 %v1424_v27 }
 0x424   : > { %2267 = vmatpush3.msra.mxu0 %v1392_v36  ;;  %2485 = vmatmul.mubr.f32.vlgmr.msra.gmra.mxu1 %v1325_v17 }
 0x425   : > { %1682 = vmatmul.mubr.f32.vlgmr.msra.gmra.mxu0 %v1292_v18  ;;  %2487 = vmatprep.mubr.f32.mxu1 %v1310_v19 }
 0x426   : > { %1686 = vmatprep.mubr.f32.mxu0 %v1305_v21 }
 0x428   : > { %2488 = vmatmul.mubr.f32.gmra.mxu1 %v1327_v42 }
 0x429   : > { %1687 = vmatmul.mubr.f32.gmra.mxu0 %v1297_v23 }
 0x42a   : > { %1691 = vmatprep.mubr.f32.mxu0 %v1302_v24 }
 0x42d   : > { %1692 = vmatmul.mubr.f32.gmra.mxu0 %v1294_v26 }
 0x42e   : > { %1696 = vmatprep.mubr.f32.mxu0 %v1307_v57 }
 0x431   : > { %1697 = vmatmul.mubr.f32.gmra.mxu0 %v1299_v13 }
 0x4bd   : > { %v2224_v41 = vpop.f32.mrf.mxu1 }
 0x4be   : > { %v2180_v29 = vpop.f32.mrf.mxu0 }
 0x4bf   : > { %v2225_v31 = vpop.f32.mrf.mxu1 }
 0x4c0   : > { %v2181_v0 = vpop.f32.mrf.mxu0  ;;  %v2226_v52 = vadd.f32 %v2225_v31, %v2224_v41 }
 0x4c1   : > { %v2182_v20 = vadd.f32 %v2181_v0, %v2180_v29 }
 0x4c3   : > { %v2227_v46 = vpop.f32.mrf.mxu1  ;;  %v1514_v49 = vadd.f32 %v2182_v20, %v1972_v44 }
 0x4c4   : > { %v2183_v12 = vpop.f32.mrf.mxu0 }
 0x4c5   : > { %v2228_v34 = vpop.f32.mrf.mxu1  ;;  %v1599_v60 = vadd.f32 %v2226_v52, %v1514_v49 }
 0x4c6   : > { %v2184_v33 = vpop.f32.mrf.mxu0  ;;  %v2229_v61 = vadd.f32 %v2228_v34, %v2227_v46 }
 0x4c7   : > { %v2185_v45 = vadd.f32 %v2184_v33, %v2183_v12 }
 0x4c9   : > { %v2230_v37 = vpop.f32.mrf.mxu1  ;;  %v1519_v53 = vadd.f32 %v2185_v45, %v1972_v44 }
 0x4ca   : > { %v2186_v35 = vpop.f32.mrf.mxu0 }
 0x4cb   : > { %v2231_v43 = vpop.f32.mrf.mxu1  ;;  %v1604_v30 = vadd.f32 %v2229_v61, %v1519_v53 }
 0x4cc   : > { %v2187_v38 = vpop.f32.mrf.mxu0  ;;  %v2232_v32 = vadd.f32 %v2231_v43, %v2230_v37 }
 0x4cd   : > { %v2188_v59 = vadd.f32 %v2187_v38, %v2186_v35 }
 0x4cf   : > { %v2233_v56 = vpop.f32.mrf.mxu1  ;;  %v1524_v4 = vadd.f32 %v2188_v59, %v1972_v44 }
 0x4d0   : > { %v2189_v54 = vpop.f32.mrf.mxu0 }
 0x4d1   : > { %v2234_v50 = vpop.f32.mrf.mxu1  ;;  %v1609_v15 = vadd.f32 %v2232_v32, %v1524_v4 }
 0x4d2   : > { %v2190_v47 = vpop.f32.mrf.mxu0  ;;  %v2235_v16 = vadd.f32 %v2234_v50, %v2233_v56 }
 0x4d3   : > { %v2191_v6 = vadd.f32 %v2190_v47, %v2189_v54 }
 0x4d5   : > { %v1529_v27 = vadd.f32 %v2191_v6, %v1972_v44 }
 0x4d7   : > { %v1614_v19 = vadd.f32 %v2235_v16, %v1529_v27 }
 0x4e4   : > { %v2486_v55 = vpop.f32.mrf.mxu1 }
 0x4e5   : > { %v2268_v51 = vpop.f32.mrf.mxu0 }
 0x4e6   : > { %v1768_v2 = vpop.f32.mrf.mxu1 }
 0x4e7   : > { %v2269_v58 = vpop.f32.mrf.mxu0 }
 0x4e8   : > { %v2270_v5 = vadd.f32 %v2269_v58, %v2268_v51  ;;  %v2489_v11 = vpop.f32.mrf.mxu1 }
 0x4e9   : > { %v2271_v62 = vpop.f32.mrf.mxu0 }
 0x4ea   : > { %v1684_v1 = vadd.f32 %v2270_v5, %v1599_v60  ;;  %v1778_v39 = vpop.f32.mrf.mxu1 }
 0x4eb   : > { %v2272_v48 = vpop.f32.mrf.mxu0 }
 0x4ec   : > { %v1769_v7 = vadd.f32 %v1768_v2, %v1684_v1  ;;  %v2273_v8 = vadd.f32 %v2272_v48, %v2271_v62 }
 0x4ed   : > { %v2274_v10 = vpop.f32.mrf.mxu0 }
 0x4ee   : > { %1787 = vst [vmem:[%s408_s25] sm:$0xff] %v1769_v7  ;;  %v1689_v3 = vadd.f32 %v2273_v8, %v1604_v30 }
 0x4ef   : > { %v2275_v14 = vpop.f32.mrf.mxu0 }
 0x4f0   : > { %v1774_v9 = vadd.f32 %v2486_v55, %v1689_v3  ;;  %v2276_v40 = vadd.f32 %v2275_v14, %v2274_v10 }
 0x4f1   : > { %v2277_v36 = vpop.f32.mrf.mxu0 }
 0x4f2   : > { %1788 = vst [vmem:[%s408_s25 + $0x8] sm:$0xff] %v1774_v9  ;;  %v1694_v17 = vadd.f32 %v2276_v40, %v1609_v15 }
 0x4f3   : > { %v2278_v63 = vpop.f32.mrf.mxu0 }
 0x4f4   : > { %v1779_v18 = vadd.f32 %v1778_v39, %v1694_v17  ;;  %v2279_v21 = vadd.f32 %v2278_v63, %v2277_v36 }
 0x4f6   : > { %1789 = vst [vmem:[%s408_s25 + $0x10] sm:$0xff] %v1779_v18  ;;  %v1699_v22 = vadd.f32 %v2279_v21, %v1614_v19 }
 0x4f8   : > { %v1784_v42 = vadd.f32 %v2489_v11, %v1699_v22 }
 0x4fa   : > { %1790 = vst [vmem:[%s408_s25 + $0x18] sm:$0xff] %v1784_v42 }
 0x4fb   : > { %2800 = shalt.err (!%p2797_p3)
}
 0x4fc   : > { %s2801_s19 = scalar_lea.hbm %s3271_s26, 512  ;;  %s2805_s24 = scalar_lea.hbm %s3322_s8, 1024 }
 0x4fd   : > { %p2802_p4 = scmp.ne.s32.totalorder %s3271_s26, %s2801_s19  ;;  %p2806_p0 = scmp.lt.s32.totalorder %s3271_s26, %s3322_s8 }
 0x4fe   : > { %p2807_p7 = scmp.lt.s32.totalorder %s2805_s24, %s2801_s19 }
 0x4ff   : > { %p2803_p6 = pnand %p2802_p4, %p3351_p8 }
 0x500   : > { %p2808_p2 = por %p2807_p7, %p2806_p0 }
 0x501   : > { %p2804_p12 = pneg %p2803_p6 }
 0x503   : > { %p2809_p9 = pnand %p2808_p2, %p2804_p12 }
 0x505   : > { %2812 = shalt.err (!%p2809_p9)
}
 0x506   : > { %s2876_s15 = smov 128   ;;  %s2877_s22 = smov 8  }
 0x507   : > { %2516 = dma.vmem_to_hbm [thread:$0]  (%p3351_p8), %s3266_s20, 512, %s3271_s26, %s1792_s14, %s2876_s15, %s2876_s15, %s2877_s22  }
 0x508 PF: > { %s1820_s1 = sand.u32 1, %s2851_s27   ;;  %p3352_p11 = scmp.ne.s32.totalorder %s3339_s10, 0 }
 0x509   : > { %p3353_p10 = scmp.ge.s32.totalorder %s2863_s30, 2  ;;  %s1821_s11 = scalar_lea.sflag [#allocation5], %s1820_s1 }
 0x50b   : > { %p2542_p13 = pnand %p3353_p10, %p3352_p11 }
 0x50d   : > { %p2543_p5 = pneg %p2542_p13 }
 0x50f   : > { %2846 = dma.done.wait (%p2543_p5), %s1821_s11, 512  }
 0x510   : > { %2848 = vsyncadd (%p2543_p5), %s1821_s11, 4294966784  ;;  %p24_p1 = scmp.ge.s32.totalorder %s3041_s18, 4   ;;  %s3354_s27 = smov %s2855_s28 }
 0x511   : > { %s3355_s28 = smov %s2859_s29  ;;  %s3356_s29 = smov %s3052_s17 }
 0x512   : > { %s3357_s30 = smov %s3041_s18  ;;  %26 = sbr.rel (!%p24_p1) target bundleno = 11 (0xb), region = 121 }
 0x517   :  { %1826 = vsyncpa [#allocation4], 1 }
 0x518   :  { %1828 = vsyncpa [#allocation4 + $0x1], 1 }
 0x519   :  { %1829 = vsyncpa [#allocation7], 1 }
 0x51a   :  { %1830 = vsyncpa [#allocation10], 1 }
 0x51b   :  { %1831 = vsyncpa [#allocation13], 1 }
 0x51c   :  { %1832 = vsyncpa [#allocation5], 1 }
 0x51d   :  { %1834 = vsyncpa [#allocation5 + $0x1], 1 }

// kernel: tpu_custom_call.1
= control target key start
LH: loop header
LB: loop body
LE: loop exit
PB: predicated region body
PF: predicated region fallthrough
CT: control target
= control target key end

     0   :  { %s3314_s0 = inlined_call_operand.hbm [shape: f32[64,128], index: 0, kind: input, shape index: {}]   ;;  %s3315_s1 = inlined_call_operand.hbm [shape: f32[4,128], index: 1, kind: input, shape index: {}]   ;;  %s3316_s2 = inlined_call_operand.vmem [shape: f32[1,128], index: 2, kind: input, shape index: {}]   ;;  %s3317_s3 = inlined_call_operand.hbm [shape: f32[128,128], index: 3, kind: input, shape index: {}]   ;;  %s3318_s4 = inlined_call_operand.hbm [shape: f32[384,128], index: 4, kind: input, shape index: {}]   ;;  %s3319_s5 = inlined_call_operand.hbm [shape: f32[128,128], index: 5, kind: input, shape index: {}]   ;;  %s3320_s6 = inlined_call_operand.hbm [shape: f32[384,128], index: 6, kind: input, shape index: {}]   ;;  %s3321_s7 = inlined_call_operand.hbm [shape: f32[896,128], index: 7, kind: input, shape index: {}]   ;;  %s3322_s8 = inlined_call_operand.hbm [shape: f32[64,128], index: 8, kind: output, shape index: {}]  }
   0x1   :  { %3329 = sst [smem:[#allocation21_spill]] %s3315_s1 }
   0x2   :  { %3330 = sst [smem:[#allocation22_spill]] %s3317_s3 }
   0x3   :  { %13 = vsyncpa [#allocation4], 0 }
   0x4   :  { %15 = vsyncpa [#allocation4 + $0x1], 0 }
   0x5   :  { %16 = vsyncpa [#allocation7], 0 }
   0x6   :  { %17 = vsyncpa [#allocation10], 0 }
   0x7   :  { %18 = vsyncpa [#allocation13], 0 }
   0x8   :  { %19 = vsyncpa [#allocation5], 0 }
   0x9   :  { %21 = vsyncpa [#allocation5 + $0x1], 0  ;;  %s2923_s27 = smov 0   ;;  %s2925_s28 = smov 0  }
   0xa   :  { %s2927_s29 = smov 0   ;;  %s2929_s30 = smov 0  }
   0xb LB: > { %s2865_s9 = smov [#allocation6]   ;;  %s2944_s11 = sadd.s32 4294967295, %s2863_s30   ;;  %s2863_s30 = sphi %s2929_s30, %s3357_s30   ;;  %s2859_s29 = sphi %s2927_s29, %s3356_s29   ;;  %s2855_s28 = sphi %s2925_s28, %s3355_s28   ;;  %s2851_s27 = sphi %s2923_s27, %s3354_s27  }
   0xc   : > { %s244_s10 = sshll.u32 %s2865_s9, 4  ;;  %p1936_p0 = scmp.ge.s32.totalorder %s2863_s30, 1  ;;  %s245_s10 = int_to_ptr.vmem [resolvable:$true] %s244_s10 }
   0xd   : > { %p3325_p1 = scmp.eq.s32.totalorder %s2944_s11, 0  ;;  %p231_p2 = scmp.lt.s32.totalorder %s2863_s30, 3 }
   0xe   : > { %s2866_s13 = smov [#allocation9]   ;;  %s2867_s16 = smov [#allocation12]  }
   0xf   : > { %p2949_p3 = pnand %p1936_p0, %p231_p2  ;;  %s270_s14 = sshll.u32 %s2866_s13, 4  ;;  %s2962_s14 = int_to_ptr.vmem [resolvable:$true] %s270_s14 }
  0x10   : > { %s296_s17 = sshll.u32 %s2867_s16, 4  ;;  %s2614_s19 = scalar_lea.vmem %s245_s10, 64  ;;  %s2964_s17 = int_to_ptr.vmem [resolvable:$true] %s296_s17 }
  0x11   : > { %s3331_s12 = scalar_select %p2949_p3, 1, 0 }
  0x12   : > { %p2518_p5 = pneg %p2949_p3  ;;  %p2615_p8 = scmp.ne.s32.totalorder %s245_s10, %s2614_s19 }
  0x13   : > { %p2622_p11 = scmp.lt.s32.totalorder %s245_s10, %s245_s10  ;;  %p2623_p12 = scmp.lt.s32.totalorder %s2614_s19, %s2614_s19 }
  0x14   : > { %p2958_p6 = pnand %p2518_p5, %p3325_p1 }
  0x15   : > { %p2624_p13 = por %p2623_p12, %p2622_p11 }
  0x16   : > { %p2968_p7 = pneg %p2958_p6 }
  0x18   : > { %p2617_p9 = pnand %p2615_p8, %p2968_p7 }
  0x1a   : > { %p2618_p10 = pneg %p2617_p9 }
  0x1c   : > { %p2625_p0 = pnand %p2624_p13, %p2618_p10 }
  0x1e   : > { %2628 = shalt.err (!%p2625_p0)
}
  0x1f   : > { %s3334_s1 = sld [smem:[#allocation21_spill]]  ;;  %s2640_s22 = scalar_lea.vmem %s2962_s14, 6144 }
  0x20   : > { %p2641_p2 = scmp.ne.s32.totalorder %s2962_s14, %s2640_s22  ;;  %p2648_p9 = scmp.lt.s32.totalorder %s2962_s14, %s2962_s14 }
  0x21   : > { %p2649_p11 = scmp.lt.s32.totalorder %s2640_s22, %s2640_s22 }
  0x22   : > { %p2643_p5 = pnand %p2641_p2, %p2968_p7 }
  0x23   : > { %p2650_p10 = por %p2649_p11, %p2648_p9 }
  0x24   : > { %p2644_p8 = pneg %p2643_p5 }
  0x25   : > { %2521 = dma.hbm_to_vmem [thread:$0]  (!%p2958_p6), %s3334_s1, 64, %s245_s10, [#allocation7]  }
  0x26   : > { %p2651_p12 = pnand %p2650_p10, %p2644_p8 }
  0x28   : > { %2654 = shalt.err (!%p2651_p12)
}
  0x29   : > { %s3323_s23 = smov 128   ;;  %s3324_s24 = smov 8  }
  0x2a   : > { %2527 = dma.hbm_to_vmem [thread:$0]  (!%p2958_p6), %s3318_s4, 6144, %s2962_s14, [#allocation10], %s3323_s23, %s3323_s23, %s3324_s24  }
  0x2b   : > { %s2666_s9 = scalar_lea.vmem %s2964_s17, 6144  ;;  %p2674_p5 = scmp.lt.s32.totalorder %s2964_s17, %s2964_s17 }
  0x2c   : > { %p2667_p13 = scmp.ne.s32.totalorder %s2964_s17, %s2666_s9  ;;  %p2675_p8 = scmp.lt.s32.totalorder %s2666_s9, %s2666_s9 }
  0x2e   : > { %p2669_p0 = pnand %p2667_p13, %p2968_p7  ;;  %p2676_p9 = por %p2675_p8, %p2674_p5 }
  0x30   : > { %p2670_p2 = pneg %p2669_p0 }
  0x32   : > { %p2677_p11 = pnand %p2676_p9, %p2670_p2 }
  0x34   : > { %2680 = shalt.err (!%p2677_p11)
}
  0x35   : > { %2533 = dma.hbm_to_vmem [thread:$0]  (!%p2958_p6), %s3320_s6, 6144, %s2964_s17, [#allocation13], %s3323_s23, %s3323_s23, %s3324_s24  }
  0x36   : > { %s2870_s14 = smov [#allocation8]   ;;  %s2871_s19 = smov [#allocation11]  }
  0x37   : > { %s257_s16 = sshll.u32 %s2870_s14, 4  ;;  %s283_s20 = sshll.u32 %s2871_s19, 4  ;;  %s258_s16 = int_to_ptr.vmem [resolvable:$true] %s257_s16  ;;  %s284_s20 = int_to_ptr.vmem [resolvable:$true] %s283_s20 }
  0x38   : > { %s2692_s21 = scalar_lea.vmem %s258_s16, 2048  ;;  %p2700_p0 = scmp.lt.s32.totalorder %s258_s16, %s258_s16 }
  0x39   : > { %p2693_p10 = scmp.ne.s32.totalorder %s258_s16, %s2692_s21  ;;  %p2701_p2 = scmp.lt.s32.totalorder %s2692_s21, %s2692_s21 }
  0x3b   : > { %p2695_p12 = pnand %p2693_p10, %p2968_p7  ;;  %p2702_p5 = por %p2701_p2, %p2700_p0 }
  0x3d   : > { %p2696_p13 = pneg %p2695_p12 }
  0x3f   : > { %p2703_p8 = pnand %p2702_p5, %p2696_p13 }
  0x41   : > { %2706 = shalt.err (!%p2703_p8)
}
  0x42   : > { %s3335_s3 = sld [smem:[#allocation22_spill]]  ;;  %s2718_s25 = scalar_lea.vmem %s284_s20, 2048 }
  0x43   : > { %p2719_p9 = scmp.ne.s32.totalorder %s284_s20, %s2718_s25  ;;  %p2726_p12 = scmp.lt.s32.totalorder %s284_s20, %s284_s20 }
  0x44   : > { %p2727_p0 = scmp.lt.s32.totalorder %s2718_s25, %s2718_s25 }
  0x45   : > { %p2721_p11 = pnand %p2719_p9, %p2968_p7 }
  0x46   : > { %p2728_p13 = por %p2727_p0, %p2726_p12 }
  0x47   : > { %p2722_p10 = pneg %p2721_p11 }
  0x48   : > { %2524 = dma.hbm_to_vmem [thread:$0]  (!%p2958_p6), %s3335_s3, 2048, %s258_s16, [#allocation7], %s3323_s23, %s3323_s23, %s3324_s24  }
  0x49   : > { %p2729_p2 = pnand %p2728_p13, %p2722_p10 }
  0x4b   : > { %2732 = shalt.err (!%p2729_p2)
}
  0x4c   : > { %2530 = dma.hbm_to_vmem [thread:$0]  (!%p2958_p6), %s3319_s5, 2048, %s284_s20, [#allocation10], %s3323_s23, %s3323_s23, %s3324_s24  }
  0x4d   : > { %s2872_s10 = smov [#allocation14]  }
  0x4e   : > { %s309_s13 = sshll.u32 %s2872_s10, 4  ;;  %s310_s13 = int_to_ptr.vmem [resolvable:$true] %s309_s13 }
  0x4f   : > { %s2744_s14 = scalar_lea.vmem %s310_s13, 14336  ;;  %p2752_p11 = scmp.lt.s32.totalorder %s310_s13, %s310_s13 }
  0x50   : > { %p2745_p5 = scmp.ne.s32.totalorder %s310_s13, %s2744_s14  ;;  %p2753_p10 = scmp.lt.s32.totalorder %s2744_s14, %s2744_s14 }
  0x52   : > { %p2747_p8 = pnand %p2745_p5, %p2968_p7  ;;  %p2754_p12 = por %p2753_p10, %p2752_p11 }
  0x54   : > { %p2748_p9 = pneg %p2747_p8 }
  0x56   : > { %p2755_p0 = pnand %p2754_p12, %p2748_p9 }
  0x58   : > { %2758 = shalt.err (!%p2755_p0)
}
  0x59   : > { %2536 = dma.hbm_to_vmem [thread:$0]  (!%p2958_p6), %s3321_s7, 14336, %s310_s13, [#allocation13], %s3323_s23, %s3323_s23, %s3324_s24  }
  0x5a   : > { %s1935_s15 = sadd.s32 4294967294, %s2863_s30   ;;  %s3041_s18 = sadd.s32 1, %s2863_s30  }
  0x5b   : > { %s31_s20 = ssub.s32 %s2863_s30, %s3041_s18  ;;  %s34_s21 = sadd.s32 1, %s2859_s29 }
  0x5c   : > { %p32_p7 = scmp.eq.s32.totalorder %s31_s20, 0  ;;  %p41_p13 = scmp.ne.s32.totalorder %s2859_s29, %s2855_s28 }
  0x5d   : > { %p42_p2 = scmp.eq.s32.totalorder %s2863_s30, 0  ;;  %p47_p5 = scmp.ne.s32.totalorder %s2855_s28, %s2851_s27 }
  0x5e   : > { %s3052_s17 = scalar_select %p32_p7, %s2859_s29, %s34_s21  }
  0x5f   : > { %p3054_p8 = por %p42_p2, %p41_p13  ;;  %p3060_p6 = por %p3325_p1, %p47_p5 }
  0x60   : > { %p218_p9 = scmp.eq.s32.totalorder %s2944_s11, 1  ;;  %p224_p11 = scmp.eq.s32.totalorder %s1935_s15, 1 }
  0x61   : > { %s3337_s25 = scalar_select %p3060_p6, 1, 0 }
  0x62   : > { %p2551_p10 = scmp.lt.s32.totalorder %s2863_s30, 2  ;;  %s323_s26 = sand.u32 1, %s2859_s29  }
  0x63   : > { %p3067_p12 = por %p218_p9, %p41_p13  ;;  %p3071_p0 = por %p224_p11, %p47_p5 }
  0x64   : > { %s1944_s13 = sshll.u32 %s323_s26, 5  ;;  %s1978_s14 = sshll.u32 %s2863_s30, 9 }
  0x65   : > { %s3338_s9 = scalar_select %p3067_p12, 1, 0 }
  0x66   : > { %s3339_s10 = scalar_select %p3071_p0, 1, 0 }
  0x67   : > { %s3079_s20 = scalar_lea.hbm %s3314_s0, %s1978_s14  ;;  %s327_s15 = scalar_lea.vmem [#allocation3], %s1944_s13 }
  0x68   : > { %s334_s21 = sshll.u32 %s327_s15, 4  ;;  %p3085_p7 = pnand %p2551_p10, %p3054_p8  ;;  %s3081_s21 = int_to_ptr.vmem [resolvable:$true] %s334_s21 }
  0x69   : > { %s3089_s24 = scalar_lea.sflag [#allocation4], %s323_s26  ;;  %s2759_s1 = scalar_lea.hbm %s3079_s20, 512 }
  0x6a   : > { %p2760_p13 = scmp.ne.s32.totalorder %s3079_s20, %s2759_s1  ;;  %p2761_p2 = pneg %p3085_p7 }
  0x6b   : > { %s2764_s13 = scalar_lea.hbm %s3314_s0, 1024  ;;  %p2765_p8 = scmp.lt.s32.totalorder %s3079_s20, %s3314_s0 }
  0x6c   : > { %p2762_p5 = pnand %p2761_p2, %p2760_p13  ;;  %p2766_p11 = scmp.lt.s32.totalorder %s2764_s13, %s2759_s1 }
  0x6e   : > { %p2763_p9 = pneg %p2762_p5  ;;  %p2767_p10 = por %p2766_p11, %p2765_p8 }
  0x70   : > { %p2768_p4 = pnand %p2767_p10, %p2763_p9 }
  0x72   : > { %2771 = shalt.err (!%p2768_p4)
}
  0x73   : > { %s2772_s22 = scalar_lea.vmem %s3081_s21, 512  ;;  %s2873_s26 = smov [#allocation3]  }
  0x74   : > { %p2773_p1 = scmp.ne.s32.totalorder %s3081_s21, %s2772_s22  ;;  %s2777_s3 = sshll.u32 %s2873_s26, 4  ;;  %s2778_s3 = int_to_ptr.vmem [resolvable:$false] %s2777_s3 }
  0x75   : > { %s2779_s14 = scalar_lea.vmem %s2778_s3, 1024  ;;  %p2780_p5 = scmp.lt.s32.totalorder %s3081_s21, %s2778_s3 }
  0x76   : > { %p2775_p0 = pnand %p2773_p1, %p2761_p2  ;;  %p2781_p12 = scmp.lt.s32.totalorder %s2779_s14, %s2772_s22 }
  0x78   : > { %p2776_p13 = pneg %p2775_p0  ;;  %p2782_p6 = por %p2781_p12, %p2780_p5 }
  0x7a   : > { %p2783_p3 = pnand %p2782_p6, %p2776_p13 }
  0x7c   : > { %2786 = shalt.err (!%p2783_p3)
}
  0x7d   : > { %s3341_s1 = smov 8   ;;  %s3342_s16 = smov 128  }
  0x7e   : > { %2540 = dma.hbm_to_vmem [thread:$0]  (!%p3085_p7), %s3079_s20, 512, %s3081_s21, %s3089_s24, %s3342_s16, %s3342_s16, %s3341_s1  }
  0x7f   : > { %p3343_p1 = scmp.ne.s32.totalorder %s3331_s12, 0 }
  0x80   : > { %s3116_s13 = sand.u32 (!%p3343_p1), 1, %s2855_s28   ;;  %p3344_p3 = scmp.ne.s32.totalorder (!%p3343_p1), %s3337_s25, 0 }
  0x81   : > { %346 = sbr.rel (%p3343_p1) target bundleno = 1288 (0x508), region = 52  ;;  %s1948_s3 = sshll.u32 (!%p3343_p1), %s3116_s13, 5 }
  0x82   : > { %s349_s19 = scalar_lea.sflag (!%p3343_p1), [#allocation4], %s3116_s13  ;;  %s3122_s23 = scalar_lea.vmem (!%p3343_p1), [#allocation3], %s1948_s3 }
  0x86   : > { %2830 = dma.done.wait (%p3344_p3), %s349_s19, 512  }
  0x87   : > { %2832 = vsyncadd (%p3344_p3), %s349_s19, 4294966784  ;;  %p3345_p4 = scmp.eq.s32.totalorder %s2944_s11, 0 }
  0x89   : > { %2834 = dma.done.wait (%p3345_p4), [#allocation7], 2112   ;;  %p3346_p6 = pmov %p3345_p4 }
  0x8a   : > { %p3347_p12 = pmov %p3345_p4 }
  0x8b   : > { %2836 = vsyncadd (%p3346_p6), [#allocation7], 4294965184 }
  0x8c   : > { %2838 = dma.done.wait (%p3347_p12), [#allocation10], 8192   ;;  %p3348_p0 = pmov %p3345_p4 }
  0x8e   : > { %2840 = vsyncadd (%p3348_p0), [#allocation10], 4294959104  ;;  %p3349_p7 = pmov %p3348_p0 }
  0x8f   : > { %p3350_p2 = pmov %p3348_p0 }
  0x90   : > { %2842 = dma.done.wait (%p3349_p7), [#allocation13], 20480  }
  0x91   : > { %2844 = vsyncadd (%p3350_p2), [#allocation13], 4294946816  ;;  %v2874_v0 = vmov 0.0   ;;  %v511_v1 = vld [vmem:[#allocation8 + $0x78] sm:$0xff]  ;;  %v510_v2 = vld [vmem:[#allocation8 + $0x70] sm:$0xff]  ;;  %s408_s25 = scalar_lea.vmem [#allocation15], %s1948_s3 }
  0x92   : > { %411 = vst [vmem:[#allocation2] sm:$0xff] %v2874_v0  ;;  %416 = vst [vmem:[#allocation2 + $0x28] sm:$0xff] %v2874_v0  ;;  %2300 = vmatprep.subr.mxu0 %v511_v1  ;;  %v509_v3 = vld [vmem:[#allocation8 + $0x68] sm:$0xff]  ;;  %v508_v4 = vld [vmem:[#allocation8 + $0x60] sm:$0xff]  ;;  %s1805_s20 = sshll.u32 %s408_s25, 4  ;;  %s1979_s21 = sshll.u32 %s2944_s11, 9  ;;  %s3266_s20 = int_to_ptr.vmem [resolvable:$true] %s1805_s20 }
  0x93   : > { %2301 = vmatpush3.msra.mxu0 %v511_v1  ;;  %v3143_v5 = vld [vmem:[%s3122_s23] sm:$0xff]  ;;  %v506_v12 = vld [vmem:[#allocation8 + $0x50] sm:$0xff]  ;;  %v505_v16 = vld [vmem:[#allocation8 + $0x48] sm:$0xff]  ;;  %s3271_s26 = scalar_lea.hbm %s3322_s8, %s1979_s21  ;;  %s1792_s14 = scalar_lea.sflag [#allocation5], %s3116_s13 }
  0x94   : > { %2302 = vmatprep.subr.mxu0 %v510_v2  ;;  %v3145_v6 = vld [vmem:[#allocation6] ss:$0 sm:$0xff]  ;;  %v3147_v8 = vld [vmem:[#allocation6 + $0x1] ss:$0 sm:$0xff]  ;;  %v675_v14 = vld [vmem:[#allocation9 + $0xf0] sm:$0xff]  ;;  %s2787_s1 = scalar_lea.vmem %s3266_s20, 512 }
  0x95   : > { %2303 = vmatpush3.msra.mxu0 %v510_v2  ;;  %v507_v7 = vld [vmem:[#allocation8 + $0x58] sm:$0xff]  ;;  %v480_v9 = vmul.f32 %v3145_v6, %v3143_v5  ;;  %v659_v15 = vld [vmem:[#allocation9 + $0x70] sm:$0xff]  ;;  %v674_v18 = vld [vmem:[#allocation9 + $0xe8] sm:$0xff]  ;;  %p2788_p9 = scmp.ne.s32.totalorder %s3266_s20, %s2787_s1  ;;  %p3351_p8 = scmp.ne.s32.totalorder %s3338_s9, 0 }
  0x96   : > { %2304 = vmatprep.subr.mxu0 %v509_v3  ;;  %v676_v10 = vld [vmem:[#allocation9 + $0xf8] sm:$0xff]  ;;  %v658_v19 = vld [vmem:[#allocation9 + $0x68] sm:$0xff]  ;;  %v504_v20 = vld [vmem:[#allocation8 + $0x40] sm:$0xff]  ;;  %s2875_s11 = smov [#allocation15]  }
  0x97   : > { %2305 = vmatpush3.msra.mxu0 %v509_v3  ;;  %v660_v11 = vld [vmem:[#allocation9 + $0x78] sm:$0xff]  ;;  %v488_v13 = vadd.f32 %v3147_v8, %v480_v9  ;;  %2000 = vmatprep.subr.mxu1 %v676_v10  ;;  %v673_v21 = vld [vmem:[#allocation9 + $0xe0] sm:$0xff]  ;;  %v502_v26 = vld [vmem:[#allocation8 + $0x30] sm:$0xff]  ;;  %p2789_p11 = pnand %p2788_p9, %p3351_p8  ;;  %s2791_s16 = sshll.u32 %s2875_s11, 4  ;;  %s2792_s16 = int_to_ptr.vmem [resolvable:$false] %s2791_s16 }
  0x98   : > { %2306 = vmatprep.subr.mxu0 %v508_v4  ;;  %2001 = vmatpush3.msra.mxu1 %v660_v11  ;;  %v657_v22 = vld [vmem:[#allocation9 + $0x60] sm:$0xff]  ;;  %v503_v23 = vld [vmem:[#allocation8 + $0x38] sm:$0xff]  ;;  %v671_v27 = vld [vmem:[#allocation9 + $0xd0] sm:$0xff]  ;;  %s2793_s3 = scalar_lea.vmem %s2792_s16, 1024  ;;  %p2794_p13 = scmp.lt.s32.totalorder %s3266_s20, %s2792_s16 }
  0x99   : > { %2307 = vmatpush3.msra.mxu0 %v508_v4  ;;  %v492_v17 = vmax.f32 %v488_v13, 0.0  ;;  %2002 = vmatprep.subr.mxu1 %v675_v14  ;;  %v672_v24 = vld [vmem:[#allocation9 + $0xd8] sm:$0xff]  ;;  %v655_v28 = vld [vmem:[#allocation9 + $0x50] sm:$0xff]  ;;  %v501_v29 = vld [vmem:[#allocation8 + $0x28] sm:$0xff]  ;;  %p2790_p10 = pneg %p2789_p11  ;;  %p2795_p5 = scmp.lt.s32.totalorder %s2793_s3, %s2787_s1 }
  0x9a   : > { %2308 = vmatprep.subr.mxu0 %v507_v7  ;;  %2003 = vmatpush3.msra.mxu1 %v659_v15  ;;  %v656_v25 = vld [vmem:[#allocation9 + $0x58] sm:$0xff]  ;;  %v3153_v30 = vld [vmem:[%s3122_s23 + $0x8] sm:$0xff]  ;;  %v3156_v32 = vld [vmem:[%s3122_s23 + $0x10] sm:$0xff] }
  0x9b   : > { %2309 = vmatpush3.msra.mxu0 %v507_v7  ;;  %2332 = vmatprep.mubr.f32.mxu0 %v492_v17  ;;  %v670_v31 = vld [vmem:[#allocation9 + $0xc8] sm:$0xff]  ;;  %v500_v34 = vld [vmem:[#allocation8 + $0x20] sm:$0xff]  ;;  %v481_v36 = vmul.f32 %v3145_v6, %v3153_v30  ;;  %v499_v38 = vld [vmem:[#allocation8 + $0x18] sm:$0xff]  ;;  %v482_v39 = vmul.f32 %v3145_v6, %v3156_v32  ;;  %p2796_p1 = por %p2795_p5, %p2794_p13 }
  0x9c   : > { %2310 = vmatprep.subr.mxu0 %v506_v12  ;;  %2004 = vmatprep.subr.mxu1 %v674_v18  ;;  %v654_v33 = vld [vmem:[#allocation9 + $0x48] sm:$0xff]  ;;  %v669_v35 = vld [vmem:[#allocation9 + $0xc0] sm:$0xff]  ;;  %v3163_v40 = vld [vmem:[%s3122_s23 + $0x18] sm:$0xff] }
  0x9d   : > { %2311 = vmatpush3.msra.mxu0 %v506_v12  ;;  %2005 = vmatpush3.msra.mxu1 %v658_v19  ;;  %v653_v37 = vld [vmem:[#allocation9 + $0x40] sm:$0xff]  ;;  %v668_v41 = vld [vmem:[#allocation9 + $0xb8] sm:$0xff]  ;;  %v498_v42 = vld [vmem:[#allocation8 + $0x10] sm:$0xff]  ;;  %v489_v43 = vadd.f32 %v3147_v8, %v481_v36  ;;  %v483_v44 = vmul.f32 %v3145_v6, %v3163_v40  ;;  %v490_v46 = vadd.f32 %v3147_v8, %v482_v39  ;;  %p2797_p3 = pnand %p2796_p1, %p2790_p10 }
  0x9e   : > { %2312 = vmatprep.subr.mxu0 %v505_v16  ;;  %2006 = vmatprep.subr.mxu1 %v673_v21  ;;  %v497_v45 = vld [vmem:[#allocation8 + $0x8] sm:$0xff]  ;;  %v496_v47 = vld [vmem:[#allocation8] sm:$0xff]  ;;  %v692_v51 = vld [vmem:[#allocation9 + $0x178] sm:$0xff] }
  0x9f   : > { %2313 = vmatpush3.msra.mxu0 %v505_v16  ;;  %2007 = vmatpush3.msra.mxu1 %v657_v22  ;;  %v493_v48 = vmax.f32 %v489_v43, 0.0  ;;  %v491_v49 = vadd.f32 %v3147_v8, %v483_v44  ;;  %v494_v50 = vmax.f32 %v490_v46, 0.0  ;;  %v691_v52 = vld [vmem:[#allocation9 + $0x170] sm:$0xff]  ;;  %v690_v54 = vld [vmem:[#allocation9 + $0x168] sm:$0xff]  ;;  %v689_v55 = vld [vmem:[#allocation9 + $0x160] sm:$0xff]  ;;  %v417_v22 = vlaneseq }
  0xa0   : > { %2314 = vmatprep.subr.mxu0 %v504_v20  ;;  %2008 = vmatprep.subr.mxu1 %v672_v24  ;;  %v688_v56 = vld [vmem:[#allocation9 + $0x158] sm:$0xff]  ;;  %v687_v57 = vld [vmem:[#allocation9 + $0x150] sm:$0xff]  ;;  %v686_v58 = vld [vmem:[#allocation9 + $0x148] sm:$0xff] }
  0xa1   : > { %2315 = vmatpush3.msra.mxu0 %v504_v20  ;;  %2009 = vmatpush3.msra.mxu1 %v656_v25  ;;  %v495_v53 = vmax.f32 %v491_v49, 0.0  ;;  %v652_v59 = vld [vmem:[#allocation9 + $0x38] sm:$0xff]  ;;  %v667_v60 = vld [vmem:[#allocation9 + $0xb0] sm:$0xff]  ;;  %v685_v61 = vld [vmem:[#allocation9 + $0x140] sm:$0xff] }
  0xa2   : > { %2316 = vmatprep.subr.mxu0 %v503_v23  ;;  %2010 = vmatprep.subr.mxu1 %v671_v27  ;;  %v651_v62 = vld [vmem:[#allocation9 + $0x30] sm:$0xff]  ;;  %v666_v63 = vld [vmem:[#allocation9 + $0xa8] sm:$0xff]  ;;  %v684_v1 = vld [vmem:[#allocation9 + $0x138] sm:$0xff] }
  0xa3   : > { %2317 = vmatpush3.msra.mxu0 %v503_v23  ;;  %2011 = vmatpush3.msra.mxu1 %v655_v28  ;;  %v650_v2 = vld [vmem:[#allocation9 + $0x28] sm:$0xff]  ;;  %v665_v3 = vld [vmem:[#allocation9 + $0xa0] sm:$0xff]  ;;  %v683_v4 = vld [vmem:[#allocation9 + $0x130] sm:$0xff]  ;;  %v418_v23 = vshrl.u32 %v417_v22, 7 }
  0xa4   : > { %2318 = vmatprep.subr.mxu0 %v502_v26  ;;  %2012 = vmatprep.subr.mxu1 %v670_v31  ;;  %v649_v6 = vld [vmem:[#allocation9 + $0x20] sm:$0xff]  ;;  %v664_v7 = vld [vmem:[#allocation9 + $0x98] sm:$0xff]  ;;  %v682_v8 = vld [vmem:[#allocation9 + $0x128] sm:$0xff] }
  0xa5   : > { %2319 = vmatpush3.msra.mxu0 %v502_v26  ;;  %2013 = vmatpush3.msra.mxu1 %v654_v33  ;;  %v648_v9 = vld [vmem:[#allocation9 + $0x18] sm:$0xff]  ;;  %v663_v10 = vld [vmem:[#allocation9 + $0x90] sm:$0xff]  ;;  %v681_v11 = vld [vmem:[#allocation9 + $0x120] sm:$0xff]  ;;  %v3170_v27 = vand.u32 15, %v418_v23 }
  0xa6   : > { %2320 = vmatprep.subr.mxu0 %v501_v29  ;;  %2014 = vmatprep.subr.mxu1 %v669_v35  ;;  %v647_v12 = vld [vmem:[#allocation9 + $0x10] sm:$0xff]  ;;  %v662_v13 = vld [vmem:[#allocation9 + $0x88] sm:$0xff]  ;;  %v680_v14 = vld [vmem:[#allocation9 + $0x118] sm:$0xff] }
  0xa7   : > { %2321 = vmatpush3.msra.mxu0 %v501_v29  ;;  %2015 = vmatpush3.msra.mxu1 %v653_v37  ;;  %v646_v15 = vld [vmem:[#allocation9 + $0x8] sm:$0xff]  ;;  %v661_v16 = vld [vmem:[#allocation9 + $0x80] sm:$0xff]  ;;  %v679_v17 = vld [vmem:[#allocation9 + $0x110] sm:$0xff]  ;;  %v419_v29 = vadd.s32 8, %v418_v23  ;;  %vm609_vm0 = vcmp.ge.s32.totalorder %v3170_v27, 1  ;;  %v420_v37 = vadd.s32 16, %v418_v23 }
  0xa8   : > { %2322 = vmatprep.subr.mxu0 %v500_v34  ;;  %2016 = vmatprep.subr.mxu1 %v668_v41  ;;  %v645_v18 = vld [vmem:[#allocation9] sm:$0xff]  ;;  %v678_v19 = vld [vmem:[#allocation9 + $0x108] sm:$0xff]  ;;  %v900_v21 = vld [vmem:[#allocation11 + $0x78] sm:$0xff]  ;;  %v3176_v39 = vsel %vm609_vm0, 1.0, %v2874_v0  ;;  %vm998_vm4 = vcmp.ge.s32.totalorder %v3170_v27, 2  ;;  %vm1260_vm8 = vcmp.ge.s32.totalorder %v3170_v27, 3 }
  0xa9   : > { %2323 = vmatpush3.msra.mxu0 %v500_v34  ;;  %2017 = vmatpush3.msra.mxu1 %v652_v59  ;;  %v677_v20 = vld [vmem:[#allocation9 + $0x100] sm:$0xff]  ;;  %v3173_v36 = vand.u32 15, %v419_v29  ;;  %v3179_v41 = vand.u32 15, %v420_v37  ;;  %v1060_v22 = vld [vmem:[#allocation12 + $0xd0] sm:$0xff]  ;;  %v1057_v29 = vld [vmem:[#allocation12 + $0xb8] sm:$0xff] }
  0xaa   : > { %2324 = vmatprep.subr.mxu0 %v499_v38  ;;  %2018 = vmatprep.subr.mxu1 %v667_v60  ;;  %v897_v59 = vld [vmem:[#allocation11 + $0x60] sm:$0xff]  ;;  %v896_v60 = vld [vmem:[#allocation11 + $0x58] sm:$0xff]  ;;  %v1438_v27 = vld [vmem:[#allocation14 + $0x370] sm:$0xff] }
  0xab   : > { %2325 = vmatpush3.msra.mxu0 %v499_v38  ;;  %2019 = vmatpush3.msra.mxu1 %v651_v62  ;;  %v421_v38 = vadd.s32 24, %v418_v23  ;;  %vm630_vm1 = vcmp.lt.s32.totalorder %v3173_v36, 15  ;;  %vm611_vm2 = vcmp.ge.s32.totalorder %v3179_v41, 1  ;;  %v895_v62 = vld [vmem:[#allocation11 + $0x50] sm:$0xff]  ;;  %vm1000_vm5 = vcmp.ge.s32.totalorder %v3179_v41, 2 }
  0xac   : > { %2326 = vmatprep.subr.mxu0 %v498_v42  ;;  %2020 = vmatprep.subr.mxu1 %v666_v63  ;;  %v3185_v46 = vsel %vm630_vm1, 1.0, %v2874_v0  ;;  %v894_v63 = vld [vmem:[#allocation11 + $0x48] sm:$0xff]  ;;  %v1044_v23 = vld [vmem:[#allocation12 + $0x50] sm:$0xff]  ;;  %vm1019_vm6 = vcmp.lt.s32.totalorder %v3173_v36, 14  ;;  %vm1262_vm9 = vcmp.ge.s32.totalorder %v3179_v41, 3  ;;  %v1419_v41 = vld [vmem:[#allocation14 + $0x2d8] sm:$0xff] }
  0xad   : > { %2327 = vmatpush3.msra.mxu0 %v498_v42  ;;  %2021 = vmatpush3.msra.mxu1 %v650_v2  ;;  %v3181_v42 = vand.u32 15, %v421_v38  ;;  %v892_v2 = vld [vmem:[#allocation11 + $0x38] sm:$0xff]  ;;  %vm1313_vm10 = vcmp.lt.s32.totalorder %v3173_v36, 13  ;;  %v1392_v36 = vld [vmem:[#allocation14 + $0x200] sm:$0xff] }
  0xae   : > { %2328 = vmatprep.subr.mxu0 %v497_v45  ;;  %2022 = vmatprep.subr.mxu1 %v665_v3  ;;  %v891_v3 = vld [vmem:[#allocation11 + $0x30] sm:$0xff] }
  0xaf   : > { %2329 = vmatpush3.msra.mxu0 %v497_v45  ;;  %2023 = vmatpush3.msra.mxu1 %v649_v6  ;;  %vm632_vm3 = vcmp.lt.s32.totalorder %v3181_v42, 15  ;;  %v889_v6 = vld [vmem:[#allocation11 + $0x20] sm:$0xff]  ;;  %vm1021_vm7 = vcmp.lt.s32.totalorder %v3181_v42, 14  ;;  %vm1315_vm11 = vcmp.lt.s32.totalorder %v3181_v42, 13 }
  0xb0   : > { %2330 = vmatprep.subr.mxu0 %v496_v47  ;;  %2024 = vmatprep.subr.mxu1 %v664_v7  ;;  %v888_v7 = vld [vmem:[#allocation11 + $0x18] sm:$0xff] }
  0xb1   : > { %2331 = vmatpush3.msra.mxu0 %v496_v47  ;;  %2025 = vmatpush3.msra.mxu1 %v648_v9  ;;  %v899_v47 = vld [vmem:[#allocation11 + $0x70] sm:$0xff]  ;;  %v886_v9 = vld [vmem:[#allocation11 + $0x8] sm:$0xff] }
  0xb2   : > { %2333 = vmatmul.mubr.f32.vlgmr.msra.gmra.mxu0 %v493_v48  ;;  %2338 = vmatprep.subr.mxu0 %v692_v51 }
  0xb3   : > { %2335 = vmatprep.mubr.f32.mxu0 %v494_v50  ;;  %2339 = vmatpush3.msra.mxu0 %v692_v51  ;;  %v898_v51 = vld [vmem:[#allocation11 + $0x68] sm:$0xff] }
  0xb4   : > { %2340 = vmatprep.subr.mxu0 %v691_v52  ;;  %2026 = vmatprep.subr.mxu1 %v663_v10  ;;  %v885_v10 = vld [vmem:[#allocation11] sm:$0xff] }
  0xb5   : > { %2341 = vmatpush3.msra.mxu0 %v691_v52  ;;  %2027 = vmatpush3.msra.mxu1 %v647_v12  ;;  %v1049_v12 = vld [vmem:[#allocation12 + $0x78] sm:$0xff] }
  0xb6   : > { %2336 = vmatmul.mubr.f32.gmra.mxu0 %v495_v53  ;;  %2342 = vmatprep.subr.mxu0 %v690_v54 }
  0xb7   : > { %2343 = vmatpush3.msra.mxu0 %v690_v54  ;;  %2028 = vmatprep.subr.mxu1 %v662_v13  ;;  %v3191_v54 = vsel %vm611_vm2, 1.0, %v2874_v0  ;;  %v1064_v13 = vld [vmem:[#allocation12 + $0xf0] sm:$0xff] }
  0xb8   : > { %2344 = vmatprep.subr.mxu0 %v689_v55  ;;  %2029 = vmatpush3.msra.mxu1 %v646_v15  ;;  %v1063_v15 = vld [vmem:[#allocation12 + $0xe8] sm:$0xff] }
  0xb9   : > { %2345 = vmatpush3.msra.mxu0 %v689_v55  ;;  %2030 = vmatprep.subr.mxu1 %v661_v16  ;;  %v1047_v16 = vld [vmem:[#allocation12 + $0x68] sm:$0xff] }
  0xba   : > { %2346 = vmatprep.subr.mxu0 %v688_v56  ;;  %2031 = vmatpush3.msra.mxu1 %v645_v18  ;;  %v1062_v18 = vld [vmem:[#allocation12 + $0xe0] sm:$0xff] }
  0xbb   : > { %2347 = vmatpush3.msra.mxu0 %v688_v56  ;;  %2376 = vmatprep.subr.mxu1 %v900_v21  ;;  %v3194_v56 = vsel %vm632_vm3, 1.0, %v2874_v0 }
  0xbc   : > { %2348 = vmatprep.subr.mxu0 %v687_v57 }
  0xbd   : > { %2349 = vmatpush3.msra.mxu0 %v687_v57 }
  0xbe   : > { %2350 = vmatprep.subr.mxu0 %v686_v58 }
  0xbf   : > { %2351 = vmatpush3.msra.mxu0 %v686_v58 }
  0xc0   : > { %2352 = vmatprep.subr.mxu0 %v685_v61 }
  0xc1   : > { %2353 = vmatpush3.msra.mxu0 %v685_v61 }
  0xc2   : > { %2354 = vmatprep.subr.mxu0 %v684_v1 }
  0xc3   : > { %2355 = vmatpush3.msra.mxu0 %v684_v1  ;;  %v893_v1 = vld [vmem:[#allocation11 + $0x40] sm:$0xff] }
  0xc4   : > { %2356 = vmatprep.subr.mxu0 %v683_v4 }
  0xc5   : > { %2357 = vmatpush3.msra.mxu0 %v683_v4  ;;  %v890_v4 = vld [vmem:[#allocation11 + $0x28] sm:$0xff] }
  0xc6   : > { %2358 = vmatprep.subr.mxu0 %v682_v8 }
  0xc7   : > { %2359 = vmatpush3.msra.mxu0 %v682_v8  ;;  %v887_v8 = vld [vmem:[#allocation11 + $0x10] sm:$0xff] }
  0xc8   : > { %2360 = vmatprep.subr.mxu0 %v681_v11 }
  0xc9   : > { %2361 = vmatpush3.msra.mxu0 %v681_v11  ;;  %v1065_v11 = vld [vmem:[#allocation12 + $0xf8] sm:$0xff] }
  0xca   : > { %2362 = vmatprep.subr.mxu0 %v680_v14 }
  0xcb   : > { %2363 = vmatpush3.msra.mxu0 %v680_v14  ;;  %v1048_v14 = vld [vmem:[#allocation12 + $0x70] sm:$0xff] }
  0xcc   : > { %2364 = vmatprep.subr.mxu0 %v679_v17 }
  0xcd   : > { %2365 = vmatpush3.msra.mxu0 %v679_v17  ;;  %v3198_v17 = vld [vmem:[#allocation12 + $0x178] sm:$0xff] }
  0xce   : > { %2366 = vmatprep.subr.mxu0 %v678_v19 }
  0xcf   : > { %2367 = vmatpush3.msra.mxu0 %v678_v19  ;;  %v1046_v19 = vld [vmem:[#allocation12 + $0x60] sm:$0xff] }
  0xd0   : > { %2368 = vmatprep.subr.mxu0 %v677_v20 }
  0xd1   : > { %2369 = vmatpush3.msra.mxu0 %v677_v20  ;;  %v1061_v20 = vld [vmem:[#allocation12 + $0xd8] sm:$0xff] }
  0xd2   : > { %2084 = vmatprep.subr.mxu0 %v1065_v11 }
 0x172   : > { %v2334_v24 = vpop.f32.mrf.mxu0 }
 0x173   : > { %v598_v25 = vmax.f32 %v2334_v24, 0.0  ;;  %v1059_v24 = vld [vmem:[#allocation12 + $0xc8] sm:$0xff] }
 0x174   : > { %v578_v26 = vpop.f32.mrf.mxu0 }
 0x175   : > { %602 = vst [vmem:[#allocation2 + $0x10] sm:$0xff] %v598_v25  ;;  %v597_v28 = vmax.f32 %v578_v26, 0.0  ;;  %v1058_v26 = vld [vmem:[#allocation12 + $0xc0] sm:$0xff] }
 0x176   : > { %v2337_v31 = vpop.f32.mrf.mxu0 }
 0x177   : > { %601 = vst [vmem:[#allocation2 + $0x8] sm:$0xff] %v597_v28  ;;  %v600_v33 = vmax.f32 %v2337_v31, 0.0  ;;  %757 = vmatprep.mubr.f32.mxu1 %v597_v28  ;;  %v1042_v28 = vld [vmem:[#allocation12 + $0x40] sm:$0xff] }
 0x178   : > { %v588_v34 = vpop.f32.mrf.mxu0 }
 0x179   : > { %604 = vst [vmem:[#allocation2 + $0x20] sm:$0xff] %v600_v33  ;;  %v599_v35 = vmax.f32 %v588_v34, 0.0 }
 0x17b   : > { %603 = vst [vmem:[#allocation2 + $0x18] sm:$0xff] %v599_v35 }
 0x17e   : > { %v625_v43 = vld [vmem:[#allocation2 + $0x9] sm:$0xff] }
 0x17f   : > { %v605_v44 = vld [vmem:[#allocation2 + $0x7] sm:$0xff]  ;;  %2370 = vmatprep.mubr.f32.mxu0 %v625_v43  ;;  %v606_v52 = vld [vmem:[#allocation2 + $0xf] sm:$0xff] }
 0x180   : > { %v621_v45 = vmul.f32 %v3176_v39, %v605_v44  ;;  %v628_v55 = vld [vmem:[#allocation2 + $0x21] sm:$0xff]  ;;  %v1962_v44 = vld [vmem:[#allocation6 + $0x2] ss:$0 sm:$0xff] }
 0x181   : > { %v644_v58 = vmul.f32 %v3194_v56, %v628_v55 }
 0x182   : > { %758 = vmatmul.mubr.f32.vlgmr.msra.gmra.mxu1 %v621_v45  ;;  %v626_v48 = vld [vmem:[#allocation2 + $0x11] sm:$0xff]  ;;  %v627_v50 = vld [vmem:[#allocation2 + $0x19] sm:$0xff] }
 0x183   : > { %762 = vmatprep.mubr.f32.mxu1 %v598_v25  ;;  %2377 = vmatpush3.msra.mxu1 %v900_v21  ;;  %v642_v49 = vmul.f32 %v3185_v46, %v626_v48  ;;  %v607_v53 = vld [vmem:[#allocation2 + $0x17] sm:$0xff]  ;;  %v608_v61 = vld [vmem:[#allocation2 + $0x1f] sm:$0xff]  ;;  %v1045_v21 = vld [vmem:[#allocation12 + $0x58] sm:$0xff] }
 0x184   : > { %2378 = vmatprep.subr.mxu1 %v899_v47  ;;  %v623_v57 = vmul.f32 %v3191_v54, %v607_v53  ;;  %v1043_v25 = vld [vmem:[#allocation12 + $0x48] sm:$0xff] }
 0x185   : > { %2379 = vmatpush3.msra.mxu1 %v899_v47  ;;  %2371 = vmatmul.mubr.f32.vlgmr.msra.gmra.mxu0 %v642_v49  ;;  %v1963_v49 = vld [vmem:[#allocation6 + $0x3] ss:$0 sm:$0xff] }
 0x186   : > { %763 = vmatmul.mubr.f32.gmra.mxu1 %v606_v52  ;;  %2373 = vmatprep.mubr.f32.mxu0 %v627_v50 }
 0x187   : > { %767 = vmatprep.mubr.f32.mxu1 %v599_v35  ;;  %2380 = vmatprep.subr.mxu1 %v898_v51 }
 0x188   : > { %2381 = vmatpush3.msra.mxu1 %v898_v51  ;;  %2085 = vmatpush3.msra.mxu0 %v1049_v12 }
 0x189   : > { %2374 = vmatmul.mubr.f32.gmra.mxu0 %v644_v58  ;;  %2382 = vmatprep.subr.mxu1 %v897_v59 }
 0x18a   : > { %768 = vmatmul.mubr.f32.gmra.mxu1 %v623_v57  ;;  %2086 = vmatprep.subr.mxu0 %v1064_v13  ;;  %v1078_v13 = vld [vmem:[#allocation12 + $0x160] sm:$0xff] }
 0x18b   : > { %772 = vmatprep.mubr.f32.mxu1 %v600_v33  ;;  %2383 = vmatpush3.msra.mxu1 %v897_v59 }
 0x18c   : > { %2384 = vmatprep.subr.mxu1 %v896_v60  ;;  %2087 = vmatpush3.msra.mxu0 %v1048_v14 }
 0x18d   : > { %2385 = vmatpush3.msra.mxu1 %v896_v60  ;;  %2088 = vmatprep.subr.mxu0 %v1063_v15  ;;  %v1077_v15 = vld [vmem:[#allocation12 + $0x158] sm:$0xff] }
 0x18e   : > { %773 = vmatmul.mubr.f32.gmra.mxu1 %v608_v61  ;;  %2386 = vmatprep.subr.mxu1 %v895_v62 }
 0x18f   : > { %2387 = vmatpush3.msra.mxu1 %v895_v62  ;;  %2089 = vmatpush3.msra.mxu0 %v1047_v16  ;;  %v1041_v16 = vld [vmem:[#allocation12 + $0x38] sm:$0xff] }
 0x190   : > { %2388 = vmatprep.subr.mxu1 %v894_v63  ;;  %2090 = vmatprep.subr.mxu0 %v1062_v18  ;;  %v1076_v18 = vld [vmem:[#allocation12 + $0x150] sm:$0xff] }
 0x191   : > { %2389 = vmatpush3.msra.mxu1 %v894_v63  ;;  %2091 = vmatpush3.msra.mxu0 %v1046_v19  ;;  %v1040_v19 = vld [vmem:[#allocation12 + $0x30] sm:$0xff] }
 0x192   : > { %2390 = vmatprep.subr.mxu1 %v893_v1  ;;  %2092 = vmatprep.subr.mxu0 %v1061_v20  ;;  %v1055_v20 = vld [vmem:[#allocation12 + $0xa8] sm:$0xff] }
 0x193   : > { %2391 = vmatpush3.msra.mxu1 %v893_v1  ;;  %2093 = vmatpush3.msra.mxu0 %v1045_v21  ;;  %v1075_v21 = vld [vmem:[#allocation12 + $0x148] sm:$0xff] }
 0x194   : > { %2392 = vmatprep.subr.mxu1 %v892_v2  ;;  %2094 = vmatprep.subr.mxu0 %v1060_v22  ;;  %v1039_v22 = vld [vmem:[#allocation12 + $0x28] sm:$0xff] }
 0x195   : > { %2393 = vmatpush3.msra.mxu1 %v892_v2  ;;  %2095 = vmatpush3.msra.mxu0 %v1044_v23  ;;  %v1054_v23 = vld [vmem:[#allocation12 + $0xa0] sm:$0xff] }
 0x196   : > { %2394 = vmatprep.subr.mxu1 %v891_v3  ;;  %2096 = vmatprep.subr.mxu0 %v1059_v24  ;;  %v1074_v24 = vld [vmem:[#allocation12 + $0x140] sm:$0xff] }
 0x197   : > { %2395 = vmatpush3.msra.mxu1 %v891_v3  ;;  %2097 = vmatpush3.msra.mxu0 %v1043_v25  ;;  %v1038_v25 = vld [vmem:[#allocation12 + $0x20] sm:$0xff] }
 0x198   : > { %2396 = vmatprep.subr.mxu1 %v890_v4  ;;  %2098 = vmatprep.subr.mxu0 %v1058_v26  ;;  %v1053_v26 = vld [vmem:[#allocation12 + $0x98] sm:$0xff] }
 0x199   : > { %2397 = vmatpush3.msra.mxu1 %v890_v4  ;;  %2099 = vmatpush3.msra.mxu0 %v1042_v28  ;;  %v1073_v28 = vld [vmem:[#allocation12 + $0x138] sm:$0xff] }
 0x19a   : > { %2398 = vmatprep.subr.mxu1 %v889_v6  ;;  %2100 = vmatprep.subr.mxu0 %v1057_v29  ;;  %v1037_v29 = vld [vmem:[#allocation12 + $0x18] sm:$0xff] }
 0x19b   : > { %2399 = vmatpush3.msra.mxu1 %v889_v6  ;;  %2101 = vmatpush3.msra.mxu0 %v1041_v16 }
 0x19c   : > { %2400 = vmatprep.subr.mxu1 %v888_v7 }
 0x19d   : > { %2401 = vmatpush3.msra.mxu1 %v888_v7 }
 0x19e   : > { %2402 = vmatprep.subr.mxu1 %v887_v8 }
 0x19f   : > { %2403 = vmatpush3.msra.mxu1 %v887_v8  ;;  %v1080_v8 = vld [vmem:[#allocation12 + $0x170] sm:$0xff] }
 0x1a0   : > { %2404 = vmatprep.subr.mxu1 %v886_v9 }
 0x1a1   : > { %2405 = vmatpush3.msra.mxu1 %v886_v9 }
 0x1a2   : > { %2406 = vmatprep.subr.mxu1 %v885_v10 }
 0x1a3   : > { %2407 = vmatpush3.msra.mxu1 %v885_v10 }
 0x1a4   : > { %2414 = vmatprep.subr.mxu1 %v3198_v17 }
 0x242   : > { %v2032_v31 = vpop.f32.mrf.mxu1 }
 0x244   : > { %v2033_v33 = vpop.f32.mrf.mxu1 }
 0x245   : > { %v2034_v34 = vadd.f32 %v2033_v33, %v2032_v31  ;;  %v2372_v37 = vpop.f32.mrf.mxu0  ;;  %v1052_v31 = vld [vmem:[#allocation12 + $0x90] sm:$0xff] }
 0x246   : > { %v2035_v35 = vpop.f32.mrf.mxu1  ;;  %v1072_v33 = vld [vmem:[#allocation12 + $0x130] sm:$0xff] }
 0x247   : > { %v760_v38 = vadd.f32 %v2034_v34, %v3143_v5  ;;  %v844_v45 = vpop.f32.mrf.mxu0  ;;  %v1036_v34 = vld [vmem:[#allocation12 + $0x10] sm:$0xff] }
 0x248   : > { %v2036_v43 = vpop.f32.mrf.mxu1 }
 0x249   : > { %v2037_v47 = vadd.f32 %v2036_v43, %v2035_v35  ;;  %v3202_v48 = vadd.f32 %v844_v45, %v760_v38  ;;  %v2375_v53 = vpop.f32.mrf.mxu0  ;;  %v1051_v35 = vld [vmem:[#allocation12 + $0x88] sm:$0xff]  ;;  %v1050_v43 = vld [vmem:[#allocation12 + $0x80] sm:$0xff] }
 0x24a   : > { %v2038_v50 = vpop.f32.mrf.mxu1  ;;  %v1035_v38 = vld [vmem:[#allocation12 + $0x8] sm:$0xff]  ;;  %v1034_v45 = vld [vmem:[#allocation12] sm:$0xff] }
 0x24b   : > { %v765_v51 = vadd.f32 %v2037_v47, %v3153_v30  ;;  %v869_v52 = vmul.f32 %v1962_v44, %v3202_v48  ;;  %v854_v63 = vpop.f32.mrf.mxu0  ;;  %v1069_v47 = vld [vmem:[#allocation12 + $0x118] sm:$0xff] }
 0x24c   : > { %v2039_v55 = vpop.f32.mrf.mxu1 }
 0x24d   : > { %v3206_v57 = vadd.f32 %v2372_v37, %v765_v51  ;;  %v2040_v58 = vadd.f32 %v2039_v55, %v2038_v50  ;;  %v877_v59 = vadd.f32 %v1963_v49, %v869_v52  ;;  %v1071_v37 = vld [vmem:[#allocation12 + $0x128] sm:$0xff]  ;;  %v1066_v51 = vld [vmem:[#allocation12 + $0x100] sm:$0xff]  ;;  %v1391_v52 = vld [vmem:[#allocation14 + $0x1f8] sm:$0xff] }
 0x24e   : > { %v2041_v60 = vpop.f32.mrf.mxu1  ;;  %v1067_v50 = vld [vmem:[#allocation12 + $0x108] sm:$0xff] }
 0x24f   : > { %v870_v5 = vmul.f32 %v1962_v44, %v3206_v57  ;;  %v770_v61 = vadd.f32 %v2040_v58, %v3156_v32  ;;  %v881_v62 = vmax.f32 %v877_v59, 0.0  ;;  %v1079_v32 = vld [vmem:[#allocation12 + $0x168] sm:$0xff] }
 0x250   : > { %v2042_v1 = vpop.f32.mrf.mxu1 }
 0x251   : > { %v878_v2 = vadd.f32 %v1963_v49, %v870_v5  ;;  %v3210_v3 = vadd.f32 %v854_v63, %v770_v61  ;;  %v2043_v30 = vadd.f32 %v2042_v1, %v2041_v60  ;;  %2408 = vmatprep.mubr.f32.mxu1 %v881_v62  ;;  %v3220_v63 = vsel %vm998_vm4, 1.0, %v2874_v0 }
 0x253   : > { %v882_v4 = vmax.f32 %v878_v2, 0.0  ;;  %v871_v6 = vmul.f32 %v1962_v44, %v3210_v3  ;;  %v775_v7 = vadd.f32 %v2043_v30, %v3163_v40 }
 0x255   : > { %v3214_v9 = vadd.f32 %v2375_v53, %v775_v7  ;;  %2409 = vmatmul.mubr.f32.vlgmr.msra.gmra.mxu1 %v882_v4  ;;  %v879_v10 = vadd.f32 %v1963_v49, %v871_v6  ;;  %v1359_v53 = vld [vmem:[#allocation14 + $0xf8] sm:$0xff]  ;;  %v1358_v7 = vld [vmem:[#allocation14 + $0xf0] sm:$0xff] }
 0x256   : > { %2415 = vmatpush3.msra.mxu1 %v3198_v17  ;;  %v1056_v17 = vld [vmem:[#allocation12 + $0xb0] sm:$0xff]  ;;  %v1343_v6 = vld [vmem:[#allocation14 + $0x78] sm:$0xff] }
 0x257   : > { %v883_v11 = vmax.f32 %v879_v10, 0.0  ;;  %v872_v12 = vmul.f32 %v1962_v44, %v3214_v9  ;;  %2416 = vmatprep.subr.mxu1 %v1080_v8  ;;  %2102 = vmatprep.subr.mxu0 %v1056_v17  ;;  %v1070_v44 = vld [vmem:[#allocation12 + $0x120] sm:$0xff]  ;;  %v1357_v10 = vld [vmem:[#allocation14 + $0xe8] sm:$0xff] }
 0x258   : > { %2417 = vmatpush3.msra.mxu1 %v1080_v8  ;;  %2103 = vmatpush3.msra.mxu0 %v1040_v19  ;;  %v1342_v8 = vld [vmem:[#allocation14 + $0x70] sm:$0xff] }
 0x259   : > { %2411 = vmatprep.mubr.f32.mxu1 %v883_v11  ;;  %v880_v14 = vadd.f32 %v1963_v49, %v872_v12  ;;  %2418 = vmatprep.subr.mxu1 %v1079_v32  ;;  %v1068_v49 = vld [vmem:[#allocation12 + $0x110] sm:$0xff]  ;;  %v3226_v12 = vsel %vm1000_vm5, 1.0, %v2874_v0 }
 0x25a   : > { %2419 = vmatpush3.msra.mxu1 %v1079_v32  ;;  %2104 = vmatprep.subr.mxu0 %v1055_v20  ;;  %v1341_v32 = vld [vmem:[#allocation14 + $0x68] sm:$0xff]  ;;  %v3235_v20 = vsel %vm1021_vm7, 1.0, %v2874_v0 }
 0x25b   : > { %v884_v40 = vmax.f32 %v880_v14, 0.0  ;;  %2420 = vmatprep.subr.mxu1 %v1078_v13  ;;  %2105 = vmatpush3.msra.mxu0 %v1039_v22  ;;  %v1356_v14 = vld [vmem:[#allocation14 + $0xe0] sm:$0xff]  ;;  %v1355_v22 = vld [vmem:[#allocation14 + $0xd8] sm:$0xff] }
 0x25c   : > { %2421 = vmatpush3.msra.mxu1 %v1078_v13  ;;  %2106 = vmatprep.subr.mxu0 %v1054_v23  ;;  %v3229_v13 = vsel %vm1019_vm6, 1.0, %v2874_v0  ;;  %v1373_v0 = vld [vmem:[#allocation14 + $0x168] sm:$0xff] }
 0x25d   : > { %2412 = vmatmul.mubr.f32.gmra.mxu1 %v884_v40  ;;  %2422 = vmatprep.subr.mxu1 %v1077_v15 }
 0x25e   : > { %2423 = vmatpush3.msra.mxu1 %v1077_v15  ;;  %2107 = vmatpush3.msra.mxu0 %v1038_v25  ;;  %v1340_v15 = vld [vmem:[#allocation14 + $0x60] sm:$0xff] }
 0x25f   : > { %2424 = vmatprep.subr.mxu1 %v1076_v18  ;;  %2108 = vmatprep.subr.mxu0 %v1053_v26  ;;  %v1374_v26 = vld [vmem:[#allocation14 + $0x170] sm:$0xff] }
 0x260   : > { %2425 = vmatpush3.msra.mxu1 %v1076_v18  ;;  %2109 = vmatpush3.msra.mxu0 %v1037_v29  ;;  %v1389_v29 = vld [vmem:[#allocation14 + $0x1e8] sm:$0xff] }
 0x261   : > { %2426 = vmatprep.subr.mxu1 %v1075_v21  ;;  %2110 = vmatprep.subr.mxu0 %v1052_v31  ;;  %v1388_v31 = vld [vmem:[#allocation14 + $0x1e0] sm:$0xff] }
 0x262   : > { %2427 = vmatpush3.msra.mxu1 %v1075_v21  ;;  %2111 = vmatpush3.msra.mxu0 %v1036_v34  ;;  %v1375_v21 = vld [vmem:[#allocation14 + $0x178] sm:$0xff] }
 0x263   : > { %2428 = vmatprep.subr.mxu1 %v1074_v24  ;;  %2112 = vmatprep.subr.mxu0 %v1051_v35  ;;  %v1387_v34 = vld [vmem:[#allocation14 + $0x1d8] sm:$0xff] }
 0x264   : > { %2429 = vmatpush3.msra.mxu1 %v1074_v24  ;;  %2113 = vmatpush3.msra.mxu0 %v1035_v38  ;;  %v1390_v24 = vld [vmem:[#allocation14 + $0x1f0] sm:$0xff]  ;;  %v1371_v35 = vld [vmem:[#allocation14 + $0x158] sm:$0xff] }
 0x265   : > { %2430 = vmatprep.subr.mxu1 %v1073_v28  ;;  %2114 = vmatprep.subr.mxu0 %v1050_v43  ;;  %v1386_v38 = vld [vmem:[#allocation14 + $0x1d0] sm:$0xff] }
 0x266   : > { %2431 = vmatpush3.msra.mxu1 %v1073_v28  ;;  %2115 = vmatpush3.msra.mxu0 %v1034_v45  ;;  %v1354_v43 = vld [vmem:[#allocation14 + $0xd0] sm:$0xff] }
 0x267   : > { %2432 = vmatprep.subr.mxu1 %v1072_v33  ;;  %2148 = vmatprep.subr.mxu0 %v1359_v53  ;;  %v1338_v45 = vld [vmem:[#allocation14 + $0x50] sm:$0xff]  ;;  %v1352_v53 = vld [vmem:[#allocation14 + $0xc0] sm:$0xff] }
 0x268   : > { %2433 = vmatpush3.msra.mxu1 %v1072_v33  ;;  %v1372_v33 = vld [vmem:[#allocation14 + $0x160] sm:$0xff] }
 0x269   : > { %2434 = vmatprep.subr.mxu1 %v1071_v37 }
 0x26a   : > { %2435 = vmatpush3.msra.mxu1 %v1071_v37  ;;  %v1339_v37 = vld [vmem:[#allocation14 + $0x58] sm:$0xff] }
 0x26b   : > { %2436 = vmatprep.subr.mxu1 %v1070_v44 }
 0x26c   : > { %2437 = vmatpush3.msra.mxu1 %v1070_v44  ;;  %v1370_v44 = vld [vmem:[#allocation14 + $0x150] sm:$0xff] }
 0x26d   : > { %2438 = vmatprep.subr.mxu1 %v1069_v47 }
 0x26e   : > { %2439 = vmatpush3.msra.mxu1 %v1069_v47  ;;  %v1385_v47 = vld [vmem:[#allocation14 + $0x1c8] sm:$0xff] }
 0x26f   : > { %2440 = vmatprep.subr.mxu1 %v1068_v49 }
 0x270   : > { %2441 = vmatpush3.msra.mxu1 %v1068_v49  ;;  %v1353_v49 = vld [vmem:[#allocation14 + $0xc8] sm:$0xff] }
 0x271   : > { %2442 = vmatprep.subr.mxu1 %v1067_v50 }
 0x272   : > { %2443 = vmatpush3.msra.mxu1 %v1067_v50  ;;  %v1369_v50 = vld [vmem:[#allocation14 + $0x148] sm:$0xff] }
 0x273   : > { %2444 = vmatprep.subr.mxu1 %v1066_v51 }
 0x274   : > { %2445 = vmatpush3.msra.mxu1 %v1066_v51  ;;  %v1337_v51 = vld [vmem:[#allocation14 + $0x48] sm:$0xff] }
 0x275   : > { %2192 = vmatprep.subr.mxu1 %v1391_v52  ;;  %v1384_v52 = vld [vmem:[#allocation14 + $0x1c0] sm:$0xff] }
 0x315   : > { %v2410_v55 = vpop.f32.mrf.mxu1 }
 0x316   : > { %v987_v58 = vmax.f32 %v2410_v55, 0.0  ;;  %v1368_v55 = vld [vmem:[#allocation14 + $0x140] sm:$0xff] }
 0x317   : > { %v967_v59 = vpop.f32.mrf.mxu1 }
 0x318   : > { %991 = vst [vmem:[#allocation2 + $0x10] sm:$0xff] %v987_v58  ;;  %v986_v60 = vmax.f32 %v967_v59, 0.0  ;;  %v1383_v59 = vld [vmem:[#allocation14 + $0x1b8] sm:$0xff] }
 0x31a   : > { %990 = vst [vmem:[#allocation2 + $0x8] sm:$0xff] %v986_v60  ;;  %1146 = vmatprep.mubr.f32.mxu0 %v986_v60  ;;  %v1351_v60 = vld [vmem:[#allocation14 + $0xb8] sm:$0xff] }
 0x31d   : > { %v2413_v5 = vpop.f32.mrf.mxu1 }
 0x31e   : > { %v989_v61 = vmax.f32 %v2413_v5, 0.0  ;;  %v1367_v5 = vld [vmem:[#allocation14 + $0x138] sm:$0xff] }
 0x31f   : > { %v977_v62 = vpop.f32.mrf.mxu1 }
 0x320   : > { %993 = vst [vmem:[#allocation2 + $0x20] sm:$0xff] %v989_v61  ;;  %v988_v1 = vmax.f32 %v977_v62, 0.0  ;;  %v1382_v62 = vld [vmem:[#allocation14 + $0x1b0] sm:$0xff] }
 0x321   : > { %v1014_v2 = vld [vmem:[#allocation2 + $0xa] sm:$0xff] }
 0x322   : > { %v994_v30 = vld [vmem:[#allocation2 + $0x6] sm:$0xff]  ;;  %992 = vst [vmem:[#allocation2 + $0x18] sm:$0xff] %v988_v1  ;;  %2446 = vmatprep.mubr.f32.mxu1 %v1014_v2  ;;  %v995_v11 = vld [vmem:[#allocation2 + $0xe] sm:$0xff] }
 0x323   : > { %v1010_v4 = vmul.f32 %v3220_v63, %v994_v30  ;;  %v1366_v2 = vld [vmem:[#allocation14 + $0x130] sm:$0xff] }
 0x324   : > { %v1334_v30 = vld [vmem:[#allocation14 + $0x30] sm:$0xff] }
 0x325   : > { %1147 = vmatmul.mubr.f32.vlgmr.msra.gmra.mxu0 %v1010_v4  ;;  %v1381_v4 = vld [vmem:[#allocation14 + $0x1a8] sm:$0xff] }
 0x326   : > { %1151 = vmatprep.mubr.f32.mxu0 %v987_v58  ;;  %2149 = vmatpush3.msra.mxu0 %v1343_v6  ;;  %v1336_v58 = vld [vmem:[#allocation14 + $0x40] sm:$0xff]  ;;  %v1349_v6 = vld [vmem:[#allocation14 + $0xa8] sm:$0xff] }
 0x327   : > { %2150 = vmatprep.subr.mxu0 %v1358_v7  ;;  %v1017_v19 = vld [vmem:[#allocation2 + $0x22] sm:$0xff] }
 0x328   : > { %2151 = vmatpush3.msra.mxu0 %v1342_v8  ;;  %v1033_v25 = vmul.f32 %v3235_v20, %v1017_v19  ;;  %v1365_v7 = vld [vmem:[#allocation14 + $0x128] sm:$0xff]  ;;  %v1346_v19 = vld [vmem:[#allocation14 + $0x90] sm:$0xff] }
 0x329   : > { %1152 = vmatmul.mubr.f32.gmra.mxu0 %v995_v11  ;;  %2152 = vmatprep.subr.mxu0 %v1357_v10  ;;  %v996_v40 = vld [vmem:[#allocation2 + $0x16] sm:$0xff]  ;;  %v997_v28 = vld [vmem:[#allocation2 + $0x1e] sm:$0xff] }
 0x32a   : > { %1156 = vmatprep.mubr.f32.mxu0 %v988_v1  ;;  %v1015_v16 = vld [vmem:[#allocation2 + $0x12] sm:$0xff]  ;;  %2153 = vmatpush3.msra.mxu0 %v1341_v32  ;;  %v1012_v17 = vmul.f32 %v3226_v12, %v996_v40  ;;  %v1016_v23 = vld [vmem:[#allocation2 + $0x1a] sm:$0xff]  ;;  %v1350_v1 = vld [vmem:[#allocation14 + $0xb0] sm:$0xff] }
 0x32b   : > { %v1031_v18 = vmul.f32 %v3229_v13, %v1015_v16  ;;  %2154 = vmatprep.subr.mxu0 %v1356_v14  ;;  %v1333_v8 = vld [vmem:[#allocation14 + $0x28] sm:$0xff]  ;;  %v1380_v10 = vld [vmem:[#allocation14 + $0x1a0] sm:$0xff]  ;;  %v1347_v40 = vld [vmem:[#allocation14 + $0x98] sm:$0xff] }
 0x32c   : > { %2155 = vmatpush3.msra.mxu0 %v1340_v15  ;;  %v1348_v32 = vld [vmem:[#allocation14 + $0xa0] sm:$0xff]  ;;  %v1379_v15 = vld [vmem:[#allocation14 + $0x198] sm:$0xff] }
 0x32d   : > { %1157 = vmatmul.mubr.f32.gmra.mxu0 %v1012_v17  ;;  %2447 = vmatmul.mubr.f32.vlgmr.msra.gmra.mxu1 %v1031_v18  ;;  %v1364_v11 = vld [vmem:[#allocation14 + $0x120] sm:$0xff]  ;;  %v1363_v16 = vld [vmem:[#allocation14 + $0x118] sm:$0xff]  ;;  %v1378_v18 = vld [vmem:[#allocation14 + $0x190] sm:$0xff] }
 0x32e   : > { %1161 = vmatprep.mubr.f32.mxu0 %v989_v61  ;;  %2449 = vmatprep.mubr.f32.mxu1 %v1016_v23  ;;  %v1335_v61 = vld [vmem:[#allocation14 + $0x38] sm:$0xff]  ;;  %v1332_v14 = vld [vmem:[#allocation14 + $0x20] sm:$0xff]  ;;  %v1377_v23 = vld [vmem:[#allocation14 + $0x188] sm:$0xff] }
 0x32f   : > { %2193 = vmatpush3.msra.mxu1 %v1375_v21  ;;  %2156 = vmatprep.subr.mxu0 %v1355_v22  ;;  %v1331_v17 = vld [vmem:[#allocation14 + $0x18] sm:$0xff]  ;;  %v1362_v21 = vld [vmem:[#allocation14 + $0x110] sm:$0xff] }
 0x330   : > { %2194 = vmatprep.subr.mxu1 %v1390_v24  ;;  %2157 = vmatpush3.msra.mxu0 %v1339_v37  ;;  %v1330_v22 = vld [vmem:[#allocation14 + $0x10] sm:$0xff]  ;;  %v1345_v24 = vld [vmem:[#allocation14 + $0x88] sm:$0xff] }
 0x331   : > { %1162 = vmatmul.mubr.f32.gmra.mxu0 %v997_v28  ;;  %2450 = vmatmul.mubr.f32.gmra.mxu1 %v1033_v25  ;;  %v1361_v25 = vld [vmem:[#allocation14 + $0x108] sm:$0xff]  ;;  %v1376_v28 = vld [vmem:[#allocation14 + $0x180] sm:$0xff] }
 0x332   : > { %2195 = vmatpush3.msra.mxu1 %v1374_v26  ;;  %2158 = vmatprep.subr.mxu0 %v1354_v43  ;;  %v1329_v26 = vld [vmem:[#allocation14 + $0x8] sm:$0xff] }
 0x333   : > { %2196 = vmatprep.subr.mxu1 %v1389_v29  ;;  %2159 = vmatpush3.msra.mxu0 %v1338_v45  ;;  %v1344_v29 = vld [vmem:[#allocation14 + $0x80] sm:$0xff] }
 0x334   : > { %2197 = vmatpush3.msra.mxu1 %v1373_v0  ;;  %2160 = vmatprep.subr.mxu0 %v1353_v49  ;;  %v1360_v0 = vld [vmem:[#allocation14 + $0x100] sm:$0xff] }
 0x335   : > { %2198 = vmatprep.subr.mxu1 %v1388_v31  ;;  %2161 = vmatpush3.msra.mxu0 %v1337_v51  ;;  %v1328_v31 = vld [vmem:[#allocation14] sm:$0xff] }
 0x336   : > { %2199 = vmatpush3.msra.mxu1 %v1372_v33  ;;  %2162 = vmatprep.subr.mxu0 %v1352_v53  ;;  %v1439_v33 = vld [vmem:[#allocation14 + $0x378] sm:$0xff] }
 0x337   : > { %2200 = vmatprep.subr.mxu1 %v1387_v34  ;;  %2163 = vmatpush3.msra.mxu0 %v1336_v58  ;;  %v1423_v34 = vld [vmem:[#allocation14 + $0x2f8] sm:$0xff] }
 0x338   : > { %2201 = vmatpush3.msra.mxu1 %v1371_v35  ;;  %2164 = vmatprep.subr.mxu0 %v1351_v60 }
 0x339   : > { %2202 = vmatprep.subr.mxu1 %v1386_v38  ;;  %2165 = vmatpush3.msra.mxu0 %v1335_v61 }
 0x33a   : > { %2203 = vmatpush3.msra.mxu1 %v1370_v44  ;;  %2166 = vmatprep.subr.mxu0 %v1350_v1 }
 0x33b   : > { %2204 = vmatprep.subr.mxu1 %v1385_v47  ;;  %2167 = vmatpush3.msra.mxu0 %v1334_v30 }
 0x33c   : > { %2205 = vmatpush3.msra.mxu1 %v1369_v50  ;;  %2168 = vmatprep.subr.mxu0 %v1349_v6 }
 0x33d   : > { %2206 = vmatprep.subr.mxu1 %v1384_v52  ;;  %2169 = vmatpush3.msra.mxu0 %v1333_v8 }
 0x33e   : > { %2207 = vmatpush3.msra.mxu1 %v1368_v55  ;;  %2170 = vmatprep.subr.mxu0 %v1348_v32 }
 0x33f   : > { %2208 = vmatprep.subr.mxu1 %v1383_v59  ;;  %2171 = vmatpush3.msra.mxu0 %v1332_v14  ;;  %v1407_v14 = vld [vmem:[#allocation14 + $0x278] sm:$0xff] }
 0x340   : > { %2209 = vmatpush3.msra.mxu1 %v1367_v5  ;;  %2172 = vmatprep.subr.mxu0 %v1347_v40  ;;  %v1406_v40 = vld [vmem:[#allocation14 + $0x270] sm:$0xff] }
 0x341   : > { %2210 = vmatprep.subr.mxu1 %v1382_v62  ;;  %2173 = vmatpush3.msra.mxu0 %v1331_v17  ;;  %v1421_v17 = vld [vmem:[#allocation14 + $0x2e8] sm:$0xff] }
 0x342   : > { %2211 = vmatpush3.msra.mxu1 %v1366_v2  ;;  %2174 = vmatprep.subr.mxu0 %v1346_v19 }
 0x343   : > { %2212 = vmatprep.subr.mxu1 %v1381_v4  ;;  %2175 = vmatpush3.msra.mxu0 %v1330_v22 }
 0x344   : > { %2213 = vmatpush3.msra.mxu1 %v1365_v7  ;;  %2176 = vmatprep.subr.mxu0 %v1345_v24 }
 0x345   : > { %2214 = vmatprep.subr.mxu1 %v1380_v10  ;;  %2177 = vmatpush3.msra.mxu0 %v1329_v26  ;;  %v1435_v26 = vld [vmem:[#allocation14 + $0x358] sm:$0xff] }
 0x346   : > { %2215 = vmatpush3.msra.mxu1 %v1364_v11  ;;  %2178 = vmatprep.subr.mxu0 %v1344_v29 }
 0x347   : > { %2216 = vmatprep.subr.mxu1 %v1379_v15  ;;  %2179 = vmatpush3.msra.mxu0 %v1328_v31 }
 0x348   : > { %2217 = vmatpush3.msra.mxu1 %v1363_v16  ;;  %2236 = vmatprep.subr.mxu0 %v1423_v34  ;;  %v1437_v16 = vld [vmem:[#allocation14 + $0x368] sm:$0xff]  ;;  %v1418_v34 = vld [vmem:[#allocation14 + $0x2d0] sm:$0xff] }
 0x349   : > { %2218 = vmatprep.subr.mxu1 %v1378_v18  ;;  %v1405_v18 = vld [vmem:[#allocation14 + $0x268] sm:$0xff] }
 0x34a   : > { %2219 = vmatpush3.msra.mxu1 %v1362_v21  ;;  %v1436_v21 = vld [vmem:[#allocation14 + $0x360] sm:$0xff] }
 0x34b   : > { %2220 = vmatprep.subr.mxu1 %v1377_v23  ;;  %v1420_v23 = vld [vmem:[#allocation14 + $0x2e0] sm:$0xff] }
 0x34c   : > { %2221 = vmatpush3.msra.mxu1 %v1361_v25  ;;  %v1404_v25 = vld [vmem:[#allocation14 + $0x260] sm:$0xff] }
 0x34d   : > { %2222 = vmatprep.subr.mxu1 %v1376_v28 }
 0x34e   : > { %2223 = vmatpush3.msra.mxu1 %v1360_v0 }
 0x34f   : > { %2452 = vmatprep.subr.mxu1 %v1439_v33 }
 0x3e5   : > { %v2116_v35 = vpop.f32.mrf.mxu0 }
 0x3e7   : > { %v2117_v37 = vpop.f32.mrf.mxu0 }
 0x3e8   : > { %v2118_v43 = vadd.f32 %v2117_v37, %v2116_v35  ;;  %v1402_v37 = vld [vmem:[#allocation14 + $0x250] sm:$0xff] }
 0x3e9   : > { %v2119_v38 = vpop.f32.mrf.mxu0 }
 0x3ea   : > { %v1149_v51 = vadd.f32 %v2118_v43, %v3202_v48  ;;  %v1417_v43 = vld [vmem:[#allocation14 + $0x2c8] sm:$0xff] }
 0x3eb   : > { %v2120_v44 = vpop.f32.mrf.mxu0 }
 0x3ec   : > { %v2121_v45 = vadd.f32 %v2120_v44, %v2119_v38  ;;  %v1433_v38 = vld [vmem:[#allocation14 + $0x348] sm:$0xff] }
 0x3ed   : > { %v2122_v47 = vpop.f32.mrf.mxu0  ;;  %v2448_v49 = vpop.f32.mrf.mxu1  ;;  %v1401_v44 = vld [vmem:[#allocation14 + $0x248] sm:$0xff] }
 0x3ee   : > { %v1154_v50 = vadd.f32 %v2121_v45, %v3206_v57  ;;  %v3243_v57 = vld [vmem:[#allocation2] sm:$0xff]  ;;  %v1432_v45 = vld [vmem:[#allocation14 + $0x340] sm:$0xff] }
 0x3ef   : > { %v2123_v52 = vpop.f32.mrf.mxu0  ;;  %v1233_v53 = vpop.f32.mrf.mxu1  ;;  %v1968_v4 = vsel %vm1260_vm8, 1.0, %v3243_v57  ;;  %v1969_v29 = vsel %vm1262_vm9, 1.0, %v3243_v57 }
 0x3f0   : > { %v1239_v55 = vadd.f32 %v2448_v49, %v1154_v50  ;;  %v2124_v58 = vadd.f32 %v2123_v52, %v2122_v47  ;;  %v1234_v59 = vadd.f32 %v1233_v53, %v1149_v51  ;;  %v1416_v49 = vld [vmem:[#allocation14 + $0x2c0] sm:$0xff]  ;;  %v1431_v52 = vld [vmem:[#allocation14 + $0x338] sm:$0xff] }
 0x3f1   : > { %v2125_v60 = vpop.f32.mrf.mxu0  ;;  %v2451_v5 = vpop.f32.mrf.mxu1  ;;  %v1400_v51 = vld [vmem:[#allocation14 + $0x240] sm:$0xff] }
 0x3f2   : > { %1253 = vst [vmem:[#allocation2 + $0x10] sm:$0xff] %v1239_v55  ;;  %1252 = vst [vmem:[#allocation2 + $0x8] sm:$0xff] %v1234_v59  ;;  %1596 = vmatprep.mubr.f32.mxu1 %v1234_v59  ;;  %v1159_v61 = vadd.f32 %v2124_v58, %v3210_v3  ;;  %v1399_v58 = vld [vmem:[#allocation14 + $0x238] sm:$0xff]  ;;  %v1430_v59 = vld [vmem:[#allocation14 + $0x330] sm:$0xff] }
 0x3f3   : > { %v2126_v62 = vpop.f32.mrf.mxu0  ;;  %v1243_v1 = vpop.f32.mrf.mxu1 }
 0x3f4   : > { %v2127_v2 = vadd.f32 %v2126_v62, %v2125_v60  ;;  %v1244_v30 = vadd.f32 %v1243_v1, %v1159_v61  ;;  %v1414_v60 = vld [vmem:[#allocation14 + $0x2b0] sm:$0xff]  ;;  %v1429_v61 = vld [vmem:[#allocation14 + $0x328] sm:$0xff] }
 0x3f5   : > { %v1413_v62 = vld [vmem:[#allocation14 + $0x2a8] sm:$0xff] }
 0x3f6   : > { %v1164_v48 = vadd.f32 %v2127_v2, %v3214_v9  ;;  %1254 = vst [vmem:[#allocation2 + $0x18] sm:$0xff] %v1244_v30  ;;  %v1422_v9 = vld [vmem:[#allocation14 + $0x2f0] sm:$0xff]  ;;  %v1397_v1 = vld [vmem:[#allocation14 + $0x228] sm:$0xff]  ;;  %v1428_v2 = vld [vmem:[#allocation14 + $0x320] sm:$0xff] }
 0x3f8   : > { %v1249_v6 = vadd.f32 %v2451_v5, %v1164_v48  ;;  %v1398_v5 = vld [vmem:[#allocation14 + $0x230] sm:$0xff]  ;;  %v1396_v48 = vld [vmem:[#allocation14 + $0x220] sm:$0xff] }
 0x3f9   : > { %v1276_v7 = vld [vmem:[#allocation2 + $0x6] sm:$0xff]  ;;  %v1277_v15 = vld [vmem:[#allocation2 + $0xe] sm:$0xff] }
 0x3fa   : > { %v1284_v8 = vld [vmem:[#allocation2 + $0x7] sm:$0xff]  ;;  %v1280_v32 = vmul.f32 %v3220_v63, %v1276_v7  ;;  %1255 = vst [vmem:[#allocation2 + $0x20] sm:$0xff] %v1249_v6  ;;  %v1285_v63 = vld [vmem:[#allocation2 + $0xf] sm:$0xff] }
 0x3fb   : > { %v1256_v10 = vld [vmem:[#allocation2 + $0x5] sm:$0xff]  ;;  %v1288_v3 = vmul.f32 %v3176_v39, %v1284_v8  ;;  %v1257_v19 = vld [vmem:[#allocation2 + $0xd] sm:$0xff] }
 0x3fc   : > { %v1272_v11 = vmul.f32 %v1968_v4, %v1256_v10  ;;  %1511 = vmatprep.mubr.f32.mxu0 %v1280_v32  ;;  %v1308_v50 = vld [vmem:[#allocation2 + $0xb] sm:$0xff] }
 0x3fd   : > { %1597 = vmatmul.mubr.f32.vlgmr.msra.gmra.mxu1 %v1288_v3  ;;  %v1278_v39 = vld [vmem:[#allocation2 + $0x16] sm:$0xff]  ;;  %v1300_v53 = vld [vmem:[#allocation2 + $0xa] sm:$0xff] }
 0x3fe   : > { %2453 = vmatpush3.msra.mxu1 %v1439_v33  ;;  %1512 = vmatmul.mubr.f32.vlgmr.msra.gmra.mxu0 %v1272_v11  ;;  %v1282_v22 = vmul.f32 %v3226_v12, %v1278_v39  ;;  %v1286_v24 = vld [vmem:[#allocation2 + $0x17] sm:$0xff]  ;;  %v1403_v12 = vld [vmem:[#allocation14 + $0x258] sm:$0xff]  ;;  %v1434_v33 = vld [vmem:[#allocation14 + $0x350] sm:$0xff] }
 0x3ff   : > { %1601 = vmatprep.mubr.f32.mxu1 %v1239_v55  ;;  %2237 = vmatpush3.msra.mxu0 %v1407_v14  ;;  %v1258_v28 = vld [vmem:[#allocation2 + $0x15] sm:$0xff]  ;;  %v1290_v0 = vmul.f32 %v3191_v54, %v1286_v24  ;;  %v1415_v55 = vld [vmem:[#allocation14 + $0x2b8] sm:$0xff]  ;;  %v1426_v8 = vld [vmem:[#allocation14 + $0x310] sm:$0xff] }
 0x400   : > { %2454 = vmatprep.subr.mxu1 %v1438_v27  ;;  %1516 = vmatprep.mubr.f32.mxu0 %v1277_v15  ;;  %v1274_v31 = vmul.f32 %v1969_v29, %v1258_v28  ;;  %v1427_v4 = vld [vmem:[#allocation14 + $0x318] sm:$0xff]  ;;  %v1410_v10 = vld [vmem:[#allocation14 + $0x290] sm:$0xff]  ;;  %v1425_v3 = vld [vmem:[#allocation14 + $0x308] sm:$0xff]  ;;  %v1970_v15 = vsel %vm1313_vm10, 1.0, %v3243_v57 }
 0x401   : > { %2238 = vmatprep.subr.mxu0 %v1422_v9  ;;  %2455 = vmatpush3.msra.mxu1 %v1438_v27  ;;  %v1279_v35 = vld [vmem:[#allocation2 + $0x1e] sm:$0xff]  ;;  %v1395_v7 = vld [vmem:[#allocation14 + $0x218] sm:$0xff]  ;;  %v1424_v27 = vld [vmem:[#allocation14 + $0x300] sm:$0xff] }
 0x402   : > { %2239 = vmatpush3.msra.mxu0 %v1406_v40  ;;  %2456 = vmatprep.subr.mxu1 %v1437_v16  ;;  %v1287_v54 = vld [vmem:[#allocation2 + $0x1f] sm:$0xff]  ;;  %v1309_v9 = vld [vmem:[#allocation2 + $0x13] sm:$0xff] }
 0x403   : > { %1602 = vmatmul.mubr.f32.gmra.mxu1 %v1285_v63  ;;  %2240 = vmatprep.subr.mxu0 %v1421_v17  ;;  %v1259_v47 = vld [vmem:[#allocation2 + $0x1d] sm:$0xff]  ;;  %v1408_v40 = vld [vmem:[#allocation14 + $0x280] sm:$0xff]  ;;  %v1325_v17 = vmul.f32 %v1970_v15, %v1309_v9  ;;  %v1971_v63 = vsel %vm1315_vm11, 1.0, %v3243_v57 }
 0x404   : > { %2457 = vmatpush3.msra.mxu1 %v1437_v16  ;;  %1517 = vmatmul.mubr.f32.gmra.mxu0 %v1257_v19  ;;  %v1394_v32 = vld [vmem:[#allocation14 + $0x210] sm:$0xff]  ;;  %v1409_v11 = vld [vmem:[#allocation14 + $0x288] sm:$0xff]  ;;  %v1301_v16 = vld [vmem:[#allocation2 + $0x12] sm:$0xff] }
 0x405   : > { %1606 = vmatprep.mubr.f32.mxu1 %v1244_v30  ;;  %2241 = vmatpush3.msra.mxu0 %v1405_v18  ;;  %v1412_v30 = vld [vmem:[#allocation14 + $0x2a0] sm:$0xff]  ;;  %v1393_v14 = vld [vmem:[#allocation14 + $0x208] sm:$0xff]  ;;  %v1292_v18 = vld [vmem:[#allocation2 + $0x9] sm:$0xff] }
 0x406   : > { %2458 = vmatprep.subr.mxu1 %v1436_v21  ;;  %1521 = vmatprep.mubr.f32.mxu0 %v1282_v22  ;;  %v1311_v39 = vld [vmem:[#allocation2 + $0x23] sm:$0xff]  ;;  %v1310_v19 = vld [vmem:[#allocation2 + $0x1b] sm:$0xff]  ;;  %v1293_v22 = vld [vmem:[#allocation2 + $0x11] sm:$0xff] }
 0x407   : > { %2242 = vmatprep.subr.mxu0 %v1420_v23  ;;  %2459 = vmatpush3.msra.mxu1 %v1436_v21  ;;  %v1305_v21 = vmul.f32 %v3229_v13, %v1301_v16  ;;  %v1327_v42 = vmul.f32 %v1971_v63, %v1311_v39  ;;  %v1297_v23 = vmul.f32 %v3185_v46, %v1293_v22  ;;  %v1302_v24 = vld [vmem:[#allocation2 + $0x1a] sm:$0xff] }
 0x408   : > { %2243 = vmatpush3.msra.mxu0 %v1404_v25  ;;  %2460 = vmatprep.subr.mxu1 %v1435_v26  ;;  %v1303_v25 = vld [vmem:[#allocation2 + $0x22] sm:$0xff] }
 0x409   : > { %1607 = vmatmul.mubr.f32.gmra.mxu1 %v1290_v0  ;;  %2244 = vmatprep.subr.mxu0 %v1419_v41  ;;  %v1307_v57 = vmul.f32 %v3235_v20, %v1303_v25  ;;  %v1295_v28 = vld [vmem:[#allocation2 + $0x21] sm:$0xff] }
 0x40a   : > { %2461 = vmatpush3.msra.mxu1 %v1435_v26  ;;  %1522 = vmatmul.mubr.f32.gmra.mxu0 %v1274_v31  ;;  %v1294_v26 = vld [vmem:[#allocation2 + $0x19] sm:$0xff]  ;;  %v1299_v13 = vmul.f32 %v3194_v56, %v1295_v28 }
 0x40b   : > { %1611 = vmatprep.mubr.f32.mxu1 %v1249_v6  ;;  %2245 = vmatpush3.msra.mxu0 %v1403_v12  ;;  %v1411_v6 = vld [vmem:[#allocation14 + $0x298] sm:$0xff] }
 0x40c   : > { %2462 = vmatprep.subr.mxu1 %v1434_v33  ;;  %1526 = vmatprep.mubr.f32.mxu0 %v1279_v35 }
 0x40d   : > { %2246 = vmatprep.subr.mxu0 %v1418_v34  ;;  %2463 = vmatpush3.msra.mxu1 %v1434_v33 }
 0x40e   : > { %2247 = vmatpush3.msra.mxu0 %v1402_v37  ;;  %2464 = vmatprep.subr.mxu1 %v1433_v38 }
 0x40f   : > { %1612 = vmatmul.mubr.f32.gmra.mxu1 %v1287_v54  ;;  %2248 = vmatprep.subr.mxu0 %v1417_v43 }
 0x410   : > { %2465 = vmatpush3.msra.mxu1 %v1433_v38  ;;  %1527 = vmatmul.mubr.f32.gmra.mxu0 %v1259_v47 }
 0x411   : > { %2249 = vmatpush3.msra.mxu0 %v1401_v44  ;;  %2466 = vmatprep.subr.mxu1 %v1432_v45  ;;  %v1972_v44 = vld [vmem:[%s3316_s2] ss:$0 sm:$0xff] }
 0x412   : > { %2484 = vmatprep.mubr.f32.mxu1 %v1308_v50  ;;  %2250 = vmatprep.subr.mxu0 %v1416_v49 }
 0x413   : > { %1681 = vmatprep.mubr.f32.mxu0 %v1300_v53  ;;  %2467 = vmatpush3.msra.mxu1 %v1432_v45 }
 0x414   : > { %2251 = vmatpush3.msra.mxu0 %v1400_v51  ;;  %2468 = vmatprep.subr.mxu1 %v1431_v52 }
 0x415   : > { %2252 = vmatprep.subr.mxu0 %v1415_v55  ;;  %2469 = vmatpush3.msra.mxu1 %v1431_v52 }
 0x416   : > { %2253 = vmatpush3.msra.mxu0 %v1399_v58  ;;  %2470 = vmatprep.subr.mxu1 %v1430_v59 }
 0x417   : > { %2254 = vmatprep.subr.mxu0 %v1414_v60  ;;  %2471 = vmatpush3.msra.mxu1 %v1430_v59 }
 0x418   : > { %2255 = vmatpush3.msra.mxu0 %v1398_v5  ;;  %2472 = vmatprep.subr.mxu1 %v1429_v61 }
 0x419   : > { %2256 = vmatprep.subr.mxu0 %v1413_v62  ;;  %2473 = vmatpush3.msra.mxu1 %v1429_v61 }
 0x41a   : > { %2257 = vmatpush3.msra.mxu0 %v1397_v1  ;;  %2474 = vmatprep.subr.mxu1 %v1428_v2 }
 0x41b   : > { %2258 = vmatprep.subr.mxu0 %v1412_v30  ;;  %2475 = vmatpush3.msra.mxu1 %v1428_v2 }
 0x41c   : > { %2259 = vmatpush3.msra.mxu0 %v1396_v48  ;;  %2476 = vmatprep.subr.mxu1 %v1427_v4 }
 0x41d   : > { %2260 = vmatprep.subr.mxu0 %v1411_v6  ;;  %2477 = vmatpush3.msra.mxu1 %v1427_v4 }
 0x41e   : > { %2261 = vmatpush3.msra.mxu0 %v1395_v7  ;;  %2478 = vmatprep.subr.mxu1 %v1426_v8 }
 0x41f   : > { %2262 = vmatprep.subr.mxu0 %v1410_v10  ;;  %2479 = vmatpush3.msra.mxu1 %v1426_v8 }
 0x420   : > { %2263 = vmatpush3.msra.mxu0 %v1394_v32  ;;  %2480 = vmatprep.subr.mxu1 %v1425_v3 }
 0x421   : > { %2264 = vmatprep.subr.mxu0 %v1409_v11  ;;  %2481 = vmatpush3.msra.mxu1 %v1425_v3 }
 0x422   : > { %2265 = vmatpush3.msra.mxu0 %v1393_v14  ;;  %2482 = vmatprep.subr.mxu1 %v1424_v27 }
 0x423   : > { %2266 = vmatprep.subr.mxu0 %v1408_v40  ;;  %2483 = vmatpush3.msra.mxu1 %v1424_v27 }
 0x424   : > { %2267 = vmatpush3.msra.mxu0 %v1392_v36  ;;  %2485 = vmatmul.mubr.f32.vlgmr.msra.gmra.mxu1 %v1325_v17 }
 0x425   : > { %1682 = vmatmul.mubr.f32.vlgmr.msra.gmra.mxu0 %v1292_v18  ;;  %2487 = vmatprep.mubr.f32.mxu1 %v1310_v19 }
 0x426   : > { %1686 = vmatprep.mubr.f32.mxu0 %v1305_v21 }
 0x428   : > { %2488 = vmatmul.mubr.f32.gmra.mxu1 %v1327_v42 }
 0x429   : > { %1687 = vmatmul.mubr.f32.gmra.mxu0 %v1297_v23 }
 0x42a   : > { %1691 = vmatprep.mubr.f32.mxu0 %v1302_v24 }
 0x42d   : > { %1692 = vmatmul.mubr.f32.gmra.mxu0 %v1294_v26 }
 0x42e   : > { %1696 = vmatprep.mubr.f32.mxu0 %v1307_v57 }
 0x431   : > { %1697 = vmatmul.mubr.f32.gmra.mxu0 %v1299_v13 }
 0x4bd   : > { %v2224_v41 = vpop.f32.mrf.mxu1 }
 0x4be   : > { %v2180_v29 = vpop.f32.mrf.mxu0 }
 0x4bf   : > { %v2225_v31 = vpop.f32.mrf.mxu1 }
 0x4c0   : > { %v2181_v0 = vpop.f32.mrf.mxu0  ;;  %v2226_v52 = vadd.f32 %v2225_v31, %v2224_v41 }
 0x4c1   : > { %v2182_v20 = vadd.f32 %v2181_v0, %v2180_v29 }
 0x4c3   : > { %v2227_v46 = vpop.f32.mrf.mxu1  ;;  %v1514_v49 = vadd.f32 %v2182_v20, %v1972_v44 }
 0x4c4   : > { %v2183_v12 = vpop.f32.mrf.mxu0 }
 0x4c5   : > { %v2228_v34 = vpop.f32.mrf.mxu1  ;;  %v1599_v60 = vadd.f32 %v2226_v52, %v1514_v49 }
 0x4c6   : > { %v2184_v33 = vpop.f32.mrf.mxu0  ;;  %v2229_v61 = vadd.f32 %v2228_v34, %v2227_v46 }
 0x4c7   : > { %v2185_v45 = vadd.f32 %v2184_v33, %v2183_v12 }
 0x4c9   : > { %v2230_v37 = vpop.f32.mrf.mxu1  ;;  %v1519_v53 = vadd.f32 %v2185_v45, %v1972_v44 }
 0x4ca   : > { %v2186_v35 = vpop.f32.mrf.mxu0 }
 0x4cb   : > { %v2231_v43 = vpop.f32.mrf.mxu1  ;;  %v1604_v30 = vadd.f32 %v2229_v61, %v1519_v53 }
 0x4cc   : > { %v2187_v38 = vpop.f32.mrf.mxu0  ;;  %v2232_v32 = vadd.f32 %v2231_v43, %v2230_v37 }
 0x4cd   : > { %v2188_v59 = vadd.f32 %v2187_v38, %v2186_v35 }
 0x4cf   : > { %v2233_v56 = vpop.f32.mrf.mxu1  ;;  %v1524_v4 = vadd.f32 %v2188_v59, %v1972_v44 }
 0x4d0   : > { %v2189_v54 = vpop.f32.mrf.mxu0 }
 0x4d1   : > { %v2234_v50 = vpop.f32.mrf.mxu1  ;;  %v1609_v15 = vadd.f32 %v2232_v32, %v1524_v4 }
 0x4d2   : > { %v2190_v47 = vpop.f32.mrf.mxu0  ;;  %v2235_v16 = vadd.f32 %v2234_v50, %v2233_v56 }
 0x4d3   : > { %v2191_v6 = vadd.f32 %v2190_v47, %v2189_v54 }
 0x4d5   : > { %v1529_v27 = vadd.f32 %v2191_v6, %v1972_v44 }
 0x4d7   : > { %v1614_v19 = vadd.f32 %v2235_v16, %v1529_v27 }
 0x4e4   : > { %v2486_v55 = vpop.f32.mrf.mxu1 }
 0x4e5   : > { %v2268_v51 = vpop.f32.mrf.mxu0 }
 0x4e6   : > { %v1768_v2 = vpop.f32.mrf.mxu1 }
 0x4e7   : > { %v2269_v58 = vpop.f32.mrf.mxu0 }
 0x4e8   : > { %v2270_v5 = vadd.f32 %v2269_v58, %v2268_v51  ;;  %v2489_v11 = vpop.f32.mrf.mxu1 }
 0x4e9   : > { %v2271_v62 = vpop.f32.mrf.mxu0 }
 0x4ea   : > { %v1684_v1 = vadd.f32 %v2270_v5, %v1599_v60  ;;  %v1778_v39 = vpop.f32.mrf.mxu1 }
 0x4eb   : > { %v2272_v48 = vpop.f32.mrf.mxu0 }
 0x4ec   : > { %v1769_v7 = vadd.f32 %v1768_v2, %v1684_v1  ;;  %v2273_v8 = vadd.f32 %v2272_v48, %v2271_v62 }
 0x4ed   : > { %v2274_v10 = vpop.f32.mrf.mxu0 }
 0x4ee   : > { %1787 = vst [vmem:[%s408_s25] sm:$0xff] %v1769_v7  ;;  %v1689_v3 = vadd.f32 %v2273_v8, %v1604_v30 }
 0x4ef   : > { %v2275_v14 = vpop.f32.mrf.mxu0 }
 0x4f0   : > { %v1774_v9 = vadd.f32 %v2486_v55, %v1689_v3  ;;  %v2276_v40 = vadd.f32 %v2275_v14, %v2274_v10 }
 0x4f1   : > { %v2277_v36 = vpop.f32.mrf.mxu0 }
 0x4f2   : > { %1788 = vst [vmem:[%s408_s25 + $0x8] sm:$0xff] %v1774_v9  ;;  %v1694_v17 = vadd.f32 %v2276_v40, %v1609_v15 }
 0x4f3   : > { %v2278_v63 = vpop.f32.mrf.mxu0 }
 0x4f4   : > { %v1779_v18 = vadd.f32 %v1778_v39, %v1694_v17  ;;  %v2279_v21 = vadd.f32 %v2278_v63, %v2277_v36 }
 0x4f6   : > { %1789 = vst [vmem:[%s408_s25 + $0x10] sm:$0xff] %v1779_v18  ;;  %v1699_v22 = vadd.f32 %v2279_v21, %v1614_v19 }
 0x4f8   : > { %v1784_v42 = vadd.f32 %v2489_v11, %v1699_v22 }
 0x4fa   : > { %1790 = vst [vmem:[%s408_s25 + $0x18] sm:$0xff] %v1784_v42 }
 0x4fb   : > { %2800 = shalt.err (!%p2797_p3)
}
 0x4fc   : > { %s2801_s19 = scalar_lea.hbm %s3271_s26, 512  ;;  %s2805_s24 = scalar_lea.hbm %s3322_s8, 1024 }
 0x4fd   : > { %p2802_p4 = scmp.ne.s32.totalorder %s3271_s26, %s2801_s19  ;;  %p2806_p0 = scmp.lt.s32.totalorder %s3271_s26, %s3322_s8 }
 0x4fe   : > { %p2807_p7 = scmp.lt.s32.totalorder %s2805_s24, %s2801_s19 }
 0x4ff   : > { %p2803_p6 = pnand %p2802_p4, %p3351_p8 }
 0x500   : > { %p2808_p2 = por %p2807_p7, %p2806_p0 }
 0x501   : > { %p2804_p12 = pneg %p2803_p6 }
 0x503   : > { %p2809_p9 = pnand %p2808_p2, %p2804_p12 }
 0x505   : > { %2812 = shalt.err (!%p2809_p9)
}
 0x506   : > { %s2876_s15 = smov 128   ;;  %s2877_s22 = smov 8  }
 0x507   : > { %2516 = dma.vmem_to_hbm [thread:$0]  (%p3351_p8), %s3266_s20, 512, %s3271_s26, %s1792_s14, %s2876_s15, %s2876_s15, %s2877_s22  }
 0x508 PF: > { %s1820_s1 = sand.u32 1, %s2851_s27   ;;  %p3352_p11 = scmp.ne.s32.totalorder %s3339_s10, 0 }
 0x509   : > { %p3353_p10 = scmp.ge.s32.totalorder %s2863_s30, 2  ;;  %s1821_s11 = scalar_lea.sflag [#allocation5], %s1820_s1 }
 0x50b   : > { %p2542_p13 = pnand %p3353_p10, %p3352_p11 }
 0x50d   : > { %p2543_p5 = pneg %p2542_p13 }
 0x50f   : > { %2846 = dma.done.wait (%p2543_p5), %s1821_s11, 512  }
 0x510   : > { %2848 = vsyncadd (%p2543_p5), %s1821_s11, 4294966784  ;;  %p24_p1 = scmp.ge.s32.totalorder %s3041_s18, 4   ;;  %s3354_s27 = smov %s2855_s28 }
 0x511   : > { %s3355_s28 = smov %s2859_s29  ;;  %s3356_s29 = smov %s3052_s17 }
 0x512   : > { %s3357_s30 = smov %s3041_s18  ;;  %26 = sbr.rel (!%p24_p1) target bundleno = 11 (0xb), region = 121 }
 0x517   :  { %1826 = vsyncpa [#allocation4], 1 }
 0x518   :  { %1828 = vsyncpa [#allocation4 + $0x1], 1 }
 0x519   :  { %1829 = vsyncpa [#allocation7], 1 }
 0x51a   :  { %1830 = vsyncpa [#allocation10], 1 }
 0x51b   :  { %1831 = vsyncpa [#allocation13], 1 }
 0x51c   :  { %1832 = vsyncpa [#allocation5], 1 }
 0x51d   :  { %1834 = vsyncpa [#allocation5 + $0x1], 1 }

</bundles_post_ra>
